<compile_context>
chip_gen: v7x
topology: tpu7x:2x2x1
jax: 0.10.0
libtpu: 0.0.40
codegen_flags: <defaults>
</compile_context>

<pallas_src>
import functools
import math

import jax
import jax.numpy as jnp
from jax.experimental import pallas as pl
from jax.experimental.pallas import tpu as pltpu


def _pick_query_tile(hw):
    """Largest lane-friendly query tile: multiple of 128 dividing HW, <= 512."""
    if hw <= 512:
        return hw
    for t in (512, 384, 256, 128):
        if hw % t == 0:
            return t
    return hw  # fallback: single tile (block == full array dim, still legal)


def _warping_kernel(H, W, C, Cimg, TQ,
                    feat_ref, img_ref, grid_ref, gamma_ref, beta_ref,
                    w_ref, b_ref, flow_ref, warp_ref, pad_ref):
    HW = H * W
    OFF = 3 * W + 3                      # flattened offset of the 3-pixel pad
    qi = pl.program_id(1)

    # ---- flow head (once per batch element, at the first query tile) -------
    @pl.when(qi == 0)
    def _():
        x = feat_ref[0]                                    # (C, HW) f32
        mean = jnp.mean(x)                                 # single-sweep stats
        var = jnp.maximum(jnp.mean(x * x) - mean * mean, 0.0)
        y = (x - mean) * jax.lax.rsqrt(var + 1e-5)         # F.layer_norm (biased)
        y = y * gamma_ref[...] + beta_ref[...]             # per-channel affine
        y = jnp.where(y >= 0.0, y, 0.1 * y)                # LeakyReLU(0.1)

        # zero-padded flattened-HW copy (bf16): vertical taps read real zeros,
        # horizontal wrap is masked per-dx below.
        pad_ref[:, 0:OFF] = jnp.zeros((C, OFF), jnp.bfloat16)
        pad_ref[:, OFF + HW:OFF + HW + OFF] = jnp.zeros((C, OFF), jnp.bfloat16)
        pad_ref[:, OFF:OFF + HW] = y.astype(jnp.bfloat16)

        # 7x7 conv (C -> 2) as 49 MXU dots (2,C)@(C,HW) on shifted windows.
        xcoord = jax.lax.broadcasted_iota(jnp.int32, (1, HW), 1) % W
        flow = jnp.zeros((2, HW), jnp.float32)
        for dxi in range(7):
            dx = dxi - 3
            acc = jnp.zeros((2, HW), jnp.float32)
            for dyi in range(7):
                start = OFF + (dyi - 3) * W + dx
                win = pad_ref[:, start:start + HW]          # (C, HW) bf16
                acc = acc + jnp.dot(w_ref[dyi, dxi].astype(jnp.bfloat16), win,
                                    preferred_element_type=jnp.float32)
            keep = ((xcoord + dx) >= 0) & ((xcoord + dx) < W)   # x-wrap mask
            flow = flow + jnp.where(keep, acc, 0.0)
        flow_ref[0] = flow + b_ref[...]                     # (2, HW) resident

    # ---- bilinear warp of this query tile (separable one-hot gather) -------
    qs = qi * TQ
    if TQ % 128 == 0:
        qs = pl.multiple_of(qs, 128)
    ft = flow_ref[0, :, pl.ds(qs, TQ)]                      # (2, TQ) f32
    bg = grid_ref[...]                                      # (2, TQ) base grid
    gx = bg[0:1, :] + (2.0 / (W - 1)) * ft[0:1, :]          # flow -> deformation
    gy = bg[1:2, :] + (2.0 / (H - 1)) * ft[1:2, :]
    ix = (gx + 1.0) * (0.5 * W) - 0.5                       # align_corners=False
    iy = (gy + 1.0) * (0.5 * H) - 0.5
    x0f = jnp.floor(ix)
    y0f = jnp.floor(iy)
    tx = ix - x0f
    ty = iy - y0f
    x0 = x0f.astype(jnp.int32)
    y0 = y0f.astype(jnp.int32)
    x1 = x0 + 1
    y1 = y0 + 1

    w_iota = jax.lax.broadcasted_iota(jnp.int32, (W, 1), 0)
    h_iota = jax.lax.broadcasted_iota(jnp.int32, (H, 1), 0)
    # The == against the in-range iota also implements padding_mode='zeros':
    # out-of-range corner indices match no row/column and contribute 0.
    ax = (jnp.where(w_iota == x0, 1.0 - tx, 0.0)
          + jnp.where(w_iota == x1, tx, 0.0))               # (W, TQ)
    ay = (jnp.where(h_iota == y0, 1.0 - ty, 0.0)
          + jnp.where(h_iota == y1, ty, 0.0))               # (H, TQ)

    # x interpolation on the MXU: (Cimg*H, W) @ (W, TQ) with f32 accumulation.
    rows = jnp.dot(img_ref[0], ax.astype(jnp.bfloat16),
                   preferred_element_type=jnp.float32)      # (Cimg*H, TQ)
    # y interpolation: weighted sublane reduction per image channel.
    for c in range(Cimg):
        rc = rows[c * H:(c + 1) * H, :] * ay                # (H, TQ)
        warp_ref[0, c:c + 1, :] = jnp.sum(rc, axis=0, keepdims=True)


def warping_net_forward(input_image, descriptor, hourglass_feat, params):
    """WarpingNet.forward from the hourglass output onward.

    input_image:    (B, image_nc, H, W)     NCHW
    descriptor:     (B, descriptor_nc)      -- only consumed by the
                                               (unavailable) ADAINHourglass.
    hourglass_feat: (B, hourglass_nc, H, W) NCHW, stand-in for hourglass out.
    """
    del descriptor  # TODO(synk): used only inside ADAINHourglass (not provided)
    B, Cimg, H, W = input_image.shape
    Bf, C, Hf, Wf = hourglass_feat.shape
    assert (Bf, Hf, Wf) == (B, H, W)
    HW = H * W

    feat = hourglass_feat.reshape(B, C, HW)                 # free row-major reshape
    # Image as (Cimg*H, W): row-gatherable layout for the separable warp;
    # bf16 halves HBM traffic and feeds the MXU natively.
    img2 = input_image.reshape(B, Cimg * H, W).astype(jnp.bfloat16)

    # make_coordinate_grid, hoisted: row 0 = x, row 1 = y, values in [-1, 1].
    bx = 2.0 * jnp.arange(W, dtype=jnp.float32) / (W - 1) - 1.0
    by = 2.0 * jnp.arange(H, dtype=jnp.float32) / (H - 1) - 1.0
    base_grid = jnp.stack([jnp.tile(bx, H), jnp.repeat(by, W)], axis=0)  # (2, HW)

    TQ = _pick_query_tile(HW)
    NQ = HW // TQ

    flops = int(B * (2 * Cimg * HW * HW            # separable warp matmul
                     + 49 * 2 * 2 * C * HW         # 7x7 conv
                     + 12 * C * HW))               # LN / activation
    bytes_accessed = int(B * (4 * C * HW + 2 * Cimg * HW      # feat + bf16 image
                              + 4 * Cimg * HW + 4 * 2 * HW    # warp + flow out
                              + 4 * 2 * HW)                   # base-grid tiles
                         + 4 * (49 * 2 * C + 2 * C + 2))      # params

    kernel = functools.partial(_warping_kernel, H, W, C, Cimg, TQ)
    flow, warped = pl.pallas_call(
        kernel,
        out_shape=(jax.ShapeDtypeStruct((B, 2, HW), jnp.float32),
                   jax.ShapeDtypeStruct((B, Cimg, HW), jnp.float32)),
        grid=(B, NQ),
        in_specs=[
            pl.BlockSpec((1, C, HW), lambda b, q: (b, 0, 0)),        # features
            pl.BlockSpec((1, Cimg * H, W), lambda b, q: (b, 0, 0)),  # image
            pl.BlockSpec((2, TQ), lambda b, q: (0, q)),              # base grid
            pl.BlockSpec((C, 1), lambda b, q: (0, 0)),               # LN gamma
            pl.BlockSpec((C, 1), lambda b, q: (0, 0)),               # LN beta
            pl.BlockSpec((7, 7, 2, C), lambda b, q: (0, 0, 0, 0)),   # conv weight
            pl.BlockSpec((2, 1), lambda b, q: (0, 0)),               # conv bias
        ],
        out_specs=(pl.BlockSpec((1, 2, HW), lambda b, q: (b, 0, 0)),
                   pl.BlockSpec((1, Cimg, TQ), lambda b, q: (b, 0, q))),
        scratch_shapes=[pltpu.VMEM((C, HW + 6 * W + 6), jnp.bfloat16)],
        compiler_params=pltpu.CompilerParams(
            dimension_semantics=("parallel", "arbitrary"),
            vmem_limit_bytes=48 * 1024 * 1024),
        cost_estimate=pl.CostEstimate(flops=flops, transcendentals=B,
                                      bytes_accessed=bytes_accessed),
    )(feat, img2, base_grid, params["ln_gamma"], params["ln_beta"],
      params["conv_w"], params["conv_b"])

    return {"flow_field": flow.reshape(B, 2, H, W),
            "warp_image": warped.reshape(B, Cimg, H, W)}


def init_params(key, hourglass_nc):
    kw, kb = jax.random.split(key)
    fan_in = hourglass_nc * 7 * 7
    bound = 1.0 / math.sqrt(fan_in)
    # PyTorch Conv2d weight is (out=2, in=C, ky, kx); stored here as
    # (ky, kx, out, in) so conv_w[ky, kx] is the (2, C) matrix fed to the MXU.
    conv_w = jax.random.uniform(kw, (7, 7, 2, hourglass_nc), jnp.float32,
                                -bound, bound)
    conv_b = jax.random.uniform(kb, (2, 1), jnp.float32, -bound, bound)
    return {
        "ln_gamma": jnp.ones((hourglass_nc, 1), jnp.float32),  # LayerNorm2d affine
        "ln_beta": jnp.zeros((hourglass_nc, 1), jnp.float32),
        "conv_w": conv_w,
        "conv_b": conv_b,
    }


if __name__ == "__main__":
    B, image_nc, H, W = 2, 3, 16, 16
    descriptor_nc, hourglass_nc = 16, 32

    key = jax.random.PRNGKey(0)
    k1, k2, k3, k4 = jax.random.split(key, 4)
    input_image = jax.random.normal(k1, (B, image_nc, H, W), jnp.float32)
    descriptor = jax.random.normal(k2, (B, descriptor_nc), jnp.float32)
    hourglass_feat = jax.random.normal(k3, (B, hourglass_nc, H, W), jnp.float32)
    params = init_params(k4, hourglass_nc)

    fwd = jax.jit(warping_net_forward)
    out = fwd(input_image, descriptor, hourglass_feat, params)
    out = jax.block_until_ready(out)

    assert out["flow_field"].shape == (B, 2, H, W)
    assert out["warp_image"].shape == (B, image_nc, H, W)
    assert bool(jnp.isfinite(out["flow_field"]).all())
    assert bool(jnp.isfinite(out["warp_image"]).all())
    print("KERNEL_OK")
</pallas_src>

<mosaic_0001>
module attributes {stable_mosaic.version = 11 : i64} {
  func.func @_warping_kernel(%arg0: i32, %arg1: i32, %arg2: memref<1x32x256xf32, #tpu.memory_space<vmem>>, %arg3: memref<1x48x16xbf16, #tpu.memory_space<vmem>>, %arg4: memref<2x256xf32, #tpu.memory_space<vmem>>, %arg5: memref<32x1xf32, #tpu.memory_space<vmem>>, %arg6: memref<32x1xf32, #tpu.memory_space<vmem>>, %arg7: memref<7x7x2x32xf32, #tpu.memory_space<vmem>>, %arg8: memref<2x1xf32, #tpu.memory_space<vmem>>, %arg9: memref<1x2x256xf32, #tpu.memory_space<vmem>>, %arg10: memref<1x3x256xf32, #tpu.memory_space<vmem>>, %arg11: memref<32x358xbf16, #tpu.memory_space<vmem>>) attributes {dimension_semantics = [#tpu.dimension_semantics<parallel>, #tpu.dimension_semantics<arbitrary>], iteration_bounds = array<i64: 2, 1>, scalar_prefetch = 0 : i64, scratch_operands = 1 : i64, tpu.core_type = #tpu.core_type<tc>, window_params = [{transform_indices = @transform_0, window_bounds = array<i64: 1, 32, 256>}, {transform_indices = @transform_1, window_bounds = array<i64: 1, 48, 16>}, {transform_indices = @transform_2, window_bounds = array<i64: 2, 256>}, {pipeline_mode = #tpu.pipeline_mode<synchronous>, transform_indices = @transform_3, window_bounds = array<i64: 32, 1>}, {pipeline_mode = #tpu.pipeline_mode<synchronous>, transform_indices = @transform_4, window_bounds = array<i64: 32, 1>}, {pipeline_mode = #tpu.pipeline_mode<synchronous>, transform_indices = @transform_5, window_bounds = array<i64: 7, 7, 2, 32>}, {pipeline_mode = #tpu.pipeline_mode<synchronous>, transform_indices = @transform_6, window_bounds = array<i64: 2, 1>}, {transform_indices = @transform_7, window_bounds = array<i64: 1, 2, 256>}, {transform_indices = @transform_8, window_bounds = array<i64: 1, 3, 256>}]} {
    %c0_i32 = arith.constant 0 : i32
    %0 = arith.cmpi eq, %arg1, %c0_i32 : i32
    %1 = arith.extui %0 : i1 to i32
    %c0_i32_0 = arith.constant 0 : i32
    %2 = arith.cmpi ne, %1, %c0_i32_0 : i32
    scf.if %2 {
      %c0_32 = arith.constant 0 : index
      %c0_33 = arith.constant 0 : index
      %c0_34 = arith.constant 0 : index
      %102 = vector.load %arg2[%c0_32, %c0_33, %c0_34] : memref<1x32x256xf32, #tpu.memory_space<vmem>>, vector<1x32x256xf32>
      %103 = vector.shape_cast %102 : vector<1x32x256xf32> to vector<32x256xf32>
      %104 = vector.shape_cast %103 : vector<32x256xf32> to vector<1x32x256xf32>
      %cst_35 = arith.constant dense<0.000000e+00> : vector<1xf32>
      %105 = vector.multi_reduction <add>, %104, %cst_35 [1, 2] : vector<1x32x256xf32> to vector<1xf32>
      %106 = vector.shape_cast %105 : vector<1xf32> to vector<1x1x1xf32>
      %107 = vector.extract %106[0, 0, 0] : f32 from vector<1x1x1xf32>
      %cst_36 = arith.constant 8.192000e+03 : f32
      %108 = arith.divf %107, %cst_36 : f32
      %109 = arith.mulf %103, %103 : vector<32x256xf32>
      %110 = vector.shape_cast %109 : vector<32x256xf32> to vector<1x32x256xf32>
      %cst_37 = arith.constant dense<0.000000e+00> : vector<1xf32>
      %111 = vector.multi_reduction <add>, %110, %cst_37 [1, 2] : vector<1x32x256xf32> to vector<1xf32>
      %112 = vector.shape_cast %111 : vector<1xf32> to vector<1x1x1xf32>
      %113 = vector.extract %112[0, 0, 0] : f32 from vector<1x1x1xf32>
      %cst_38 = arith.constant 8.192000e+03 : f32
      %114 = arith.divf %113, %cst_38 : f32
      %115 = arith.mulf %108, %108 : f32
      %116 = arith.subf %114, %115 : f32
      %cst_39 = arith.constant 0.000000e+00 : f32
      %117 = arith.maximumf %116, %cst_39 : f32
      %118 = vector.broadcast %108 : f32 to vector<32x256xf32>
      %119 = arith.subf %103, %118 : vector<32x256xf32>
      %cst_40 = arith.constant 9.99999974E-6 : f32
      %120 = arith.addf %117, %cst_40 : f32
      %121 = math.rsqrt %120 : f32
      %122 = vector.broadcast %121 : f32 to vector<32x256xf32>
      %123 = arith.mulf %119, %122 : vector<32x256xf32>
      %c0_41 = arith.constant 0 : index
      %c0_42 = arith.constant 0 : index
      %124 = vector.load %arg5[%c0_41, %c0_42] : memref<32x1xf32, #tpu.memory_space<vmem>>, vector<32x1xf32>
      %125 = vector.broadcast %124 : vector<32x1xf32> to vector<32x256xf32>
      %126 = arith.mulf %123, %125 : vector<32x256xf32>
      %c0_43 = arith.constant 0 : index
      %c0_44 = arith.constant 0 : index
      %127 = vector.load %arg6[%c0_43, %c0_44] : memref<32x1xf32, #tpu.memory_space<vmem>>, vector<32x1xf32>
      %128 = vector.broadcast %127 : vector<32x1xf32> to vector<32x256xf32>
      %129 = arith.addf %126, %128 : vector<32x256xf32>
      %cst_45 = arith.constant 0.000000e+00 : f32
      %130 = vector.broadcast %cst_45 : f32 to vector<32x256xf32>
      %131 = arith.cmpf oge, %129, %130 : vector<32x256xf32>
      %cst_46 = arith.constant 1.000000e-01 : f32
      %132 = vector.broadcast %cst_46 : f32 to vector<32x256xf32>
      %133 = arith.mulf %132, %129 : vector<32x256xf32>
      %134 = arith.select %131, %129, %133 : vector<32x256xi1>, vector<32x256xf32>
      %cst_47 = arith.constant 0.000000e+00 : bf16
      %135 = vector.broadcast %cst_47 : bf16 to vector<32x51xbf16>
      %c0_48 = arith.constant 0 : index
      %c0_49 = arith.constant 0 : index
      %136 = vector.load %arg11[%c0_48, %c0_49] : memref<32x358xbf16, #tpu.memory_space<vmem>>, vector<32x51xbf16>
      tpu.vector_store %arg11[%c0_48, %c0_49], %135 {strides = array<i32>} : memref<32x358xbf16, #tpu.memory_space<vmem>>, vector<32x51xbf16>,
      %cst_50 = arith.constant 0.000000e+00 : bf16
      %137 = vector.broadcast %cst_50 : bf16 to vector<32x51xbf16>
      %c0_51 = arith.constant 0 : index
      %c307 = arith.constant 307 : index
      %138 = vector.load %arg11[%c0_51, %c307] : memref<32x358xbf16, #tpu.memory_space<vmem>>, vector<32x51xbf16>
      tpu.vector_store %arg11[%c0_51, %c307], %137 {strides = array<i32>} : memref<32x358xbf16, #tpu.memory_space<vmem>>, vector<32x51xbf16>,
      %139 = arith.truncf %134 : vector<32x256xf32> to vector<32x256xbf16>
      %c0_52 = arith.constant 0 : index
      %c51 = arith.constant 51 : index
      %140 = vector.load %arg11[%c0_52, %c51] : memref<32x358xbf16, #tpu.memory_space<vmem>>, vector<32x256xbf16>
      tpu.vector_store %arg11[%c0_52, %c51], %139 {strides = array<i32>} : memref<32x358xbf16, #tpu.memory_space<vmem>>, vector<32x256xbf16>,
      %141 = tpu.iota {dimensions = array<i32: 1>} : vector<1x256xi32>
      %c16_i32 = arith.constant 16 : i32
      %c0_i32_53 = arith.constant 0 : i32
      %142 = arith.cmpi eq, %c16_i32, %c0_i32_53 : i32
      %c1_i32_54 = arith.constant 1 : i32
      %143 = arith.select %142, %c1_i32_54, %c16_i32 : i32
      %144 = vector.broadcast %143 : i32 to vector<1x256xi32>
      %145 = arith.remsi %141, %144 : vector<1x256xi32>
      %c0_i32_55 = arith.constant 0 : i32
      %146 = vector.broadcast %c0_i32_55 : i32 to vector<1x256xi32>
      %147 = arith.cmpi ne, %145, %146 : vector<1x256xi32>
      %c0_i32_56 = arith.constant 0 : i32
      %148 = vector.broadcast %c0_i32_56 : i32 to vector<1x256xi32>
      %149 = arith.cmpi slt, %145, %148 : vector<1x256xi32>
      %c0_i32_57 = arith.constant 0 : i32
      %150 = arith.cmpi slt, %143, %c0_i32_57 : i32
      %151 = vector.broadcast %150 : i1 to vector<1x256xi1>
      %152 = vector.broadcast %151 : vector<1x256xi1> to vector<1x256xi1>
      %153 = arith.xori %149, %152 : vector<1x256xi1>
      %154 = arith.andi %153, %147 : vector<1x256xi1>
      %155 = vector.broadcast %143 : i32 to vector<1x256xi32>
      %156 = arith.addi %145, %155 : vector<1x256xi32>
      %157 = arith.select %154, %156, %145 : vector<1x256xi1>, vector<1x256xi32>
      %cst_58 = arith.constant 0.000000e+00 : f32
      %158 = vector.broadcast %cst_58 : f32 to vector<2x256xf32>
      %cst_59 = arith.constant 0.000000e+00 : f32
      %159 = vector.broadcast %cst_59 : f32 to vector<2x256xf32>
      %c0_60 = arith.constant 0 : index
      %c0_61 = arith.constant 0 : index
      %160 = vector.load %arg11[%c0_60, %c0_61] : memref<32x358xbf16, #tpu.memory_space<vmem>>, vector<32x256xbf16>
      %c0_62 = arith.constant 0 : index
      %c0_63 = arith.constant 0 : index
      %c0_64 = arith.constant 0 : index
      %c0_65 = arith.constant 0 : index
      %161 = vector.load %arg7[%c0_62, %c0_63, %c0_64, %c0_65] : memref<7x7x2x32xf32, #tpu.memory_space<vmem>>, vector<1x1x2x32xf32>
      %162 = vector.shape_cast %161 : vector<1x1x2x32xf32> to vector<2x32xf32>
      %163 = arith.truncf %162 : vector<2x32xf32> to vector<2x32xbf16>
      %cst_66 = arith.constant dense<0.000000e+00> : vector<2x256xf32>
      %164 = tpu.matmul %163, %160, %cst_66 {dimension_numbers = #tpu.dot_dimension_numbers<[1], [0], [0], [1], [0, 0, 1, 1], [], []>} : vector<2x32xbf16>, vector<32x256xbf16>, vector<2x256xf32> -> vector<2x256xf32>
      %165 = arith.addf %159, %164 : vector<2x256xf32>
      %c0_67 = arith.constant 0 : index
      %c16 = arith.constant 16 : index
      %166 = vector.load %arg11[%c0_67, %c16] : memref<32x358xbf16, #tpu.memory_space<vmem>>, vector<32x256xbf16>
      %c1_68 = arith.constant 1 : index
      %c0_69 = arith.constant 0 : index
      %c0_70 = arith.constant 0 : index
      %c0_71 = arith.constant 0 : index
      %167 = vector.load %arg7[%c1_68, %c0_69, %c0_70, %c0_71] : memref<7x7x2x32xf32, #tpu.memory_space<vmem>>, vector<1x1x2x32xf32>
      %168 = vector.shape_cast %167 : vector<1x1x2x32xf32> to vector<2x32xf32>
      %169 = arith.truncf %168 : vector<2x32xf32> to vector<2x32xbf16>
      %cst_72 = arith.constant dense<0.000000e+00> : vector<2x256xf32>
      %170 = tpu.matmul %169, %166, %cst_72 {dimension_numbers = #tpu.dot_dimension_numbers<[1], [0], [0], [1], [0, 0, 1, 1], [], []>} : vector<2x32xbf16>, vector<32x256xbf16>, vector<2x256xf32> -> vector<2x256xf32>
      %171 = arith.addf %165, %170 : vector<2x256xf32>
      %c0_73 = arith.constant 0 : index
      %c32 = arith.constant 32 : index
      %172 = vector.load %arg11[%c0_73, %c32] : memref<32x358xbf16, #tpu.memory_space<vmem>>, vector<32x256xbf16>
      %c2_74 = arith.constant 2 : index
      %c0_75 = arith.constant 0 : index
      %c0_76 = arith.constant 0 : index
      %c0_77 = arith.constant 0 : index
      %173 = vector.load %arg7[%c2_74, %c0_75, %c0_76, %c0_77] : memref<7x7x2x32xf32, #tpu.memory_space<vmem>>, vector<1x1x2x32xf32>
      %174 = vector.shape_cast %173 : vector<1x1x2x32xf32> to vector<2x32xf32>
      %175 = arith.truncf %174 : vector<2x32xf32> to vector<2x32xbf16>
      %cst_78 = arith.constant dense<0.000000e+00> : vector<2x256xf32>
      %176 = tpu.matmul %175, %172, %cst_78 {dimension_numbers = #tpu.dot_dimension_numbers<[1], [0], [0], [1], [0, 0, 1, 1], [], []>} : vector<2x32xbf16>, vector<32x256xbf16>, vector<2x256xf32> -> vector<2x256xf32>
      %177 = arith.addf %171, %176 : vector<2x256xf32>
      %c0_79 = arith.constant 0 : index
      %c48 = arith.constant 48 : index
      %178 = vector.load %arg11[%c0_79, %c48] : memref<32x358xbf16, #tpu.memory_space<vmem>>, vector<32x256xbf16>
      %c3 = arith.constant 3 : index
      %c0_80 = arith.constant 0 : index
      %c0_81 = arith.constant 0 : index
      %c0_82 = arith.constant 0 : index
      %179 = vector.load %arg7[%c3, %c0_80, %c0_81, %c0_82] : memref<7x7x2x32xf32, #tpu.memory_space<vmem>>, vector<1x1x2x32xf32>
      %180 = vector.shape_cast %179 : vector<1x1x2x32xf32> to vector<2x32xf32>
      %181 = arith.truncf %180 : vector<2x32xf32> to vector<2x32xbf16>
      %cst_83 = arith.constant dense<0.000000e+00> : vector<2x256xf32>
      %182 = tpu.matmul %181, %178, %cst_83 {dimension_numbers = #tpu.dot_dimension_numbers<[1], [0], [0], [1], [0, 0, 1, 1], [], []>} : vector<2x32xbf16>, vector<32x256xbf16>, vector<2x256xf32> -> vector<2x256xf32>
      %183 = arith.addf %177, %182 : vector<2x256xf32>
      %c0_84 = arith.constant 0 : index
      %c64 = arith.constant 64 : index
      %184 = vector.load %arg11[%c0_84, %c64] : memref<32x358xbf16, #tpu.memory_space<vmem>>, vector<32x256xbf16>
      %c4 = arith.constant 4 : index
      %c0_85 = arith.constant 0 : index
      %c0_86 = arith.constant 0 : index
      %c0_87 = arith.constant 0 : index
      %185 = vector.load %arg7[%c4, %c0_85, %c0_86, %c0_87] : memref<7x7x2x32xf32, #tpu.memory_space<vmem>>, vector<1x1x2x32xf32>
      %186 = vector.shape_cast %185 : vector<1x1x2x32xf32> to vector<2x32xf32>
      %187 = arith.truncf %186 : vector<2x32xf32> to vector<2x32xbf16>
      %cst_88 = arith.constant dense<0.000000e+00> : vector<2x256xf32>
      %188 = tpu.matmul %187, %184, %cst_88 {dimension_numbers = #tpu.dot_dimension_numbers<[1], [0], [0], [1], [0, 0, 1, 1], [], []>} : vector<2x32xbf16>, vector<32x256xbf16>, vector<2x256xf32> -> vector<2x256xf32>
      %189 = arith.addf %183, %188 : vector<2x256xf32>
      %c0_89 = arith.constant 0 : index
      %c80 = arith.constant 80 : index
      %190 = vector.load %arg11[%c0_89, %c80] : memref<32x358xbf16, #tpu.memory_space<vmem>>, vector<32x256xbf16>
      %c5 = arith.constant 5 : index
      %c0_90 = arith.constant 0 : index
      %c0_91 = arith.constant 0 : index
      %c0_92 = arith.constant 0 : index
      %191 = vector.load %arg7[%c5, %c0_90, %c0_91, %c0_92] : memref<7x7x2x32xf32, #tpu.memory_space<vmem>>, vector<1x1x2x32xf32>
      %192 = vector.shape_cast %191 : vector<1x1x2x32xf32> to vector<2x32xf32>
      %193 = arith.truncf %192 : vector<2x32xf32> to vector<2x32xbf16>
      %cst_93 = arith.constant dense<0.000000e+00> : vector<2x256xf32>
      %194 = tpu.matmul %193, %190, %cst_93 {dimension_numbers = #tpu.dot_dimension_numbers<[1], [0], [0], [1], [0, 0, 1, 1], [], []>} : vector<2x32xbf16>, vector<32x256xbf16>, vector<2x256xf32> -> vector<2x256xf32>
      %195 = arith.addf %189, %194 : vector<2x256xf32>
      %c0_94 = arith.constant 0 : index
      %c96 = arith.constant 96 : index
      %196 = vector.load %arg11[%c0_94, %c96] : memref<32x358xbf16, #tpu.memory_space<vmem>>, vector<32x256xbf16>
      %c6 = arith.constant 6 : index
      %c0_95 = arith.constant 0 : index
      %c0_96 = arith.constant 0 : index
      %c0_97 = arith.constant 0 : index
      %197 = vector.load %arg7[%c6, %c0_95, %c0_96, %c0_97] : memref<7x7x2x32xf32, #tpu.memory_space<vmem>>, vector<1x1x2x32xf32>
      %198 = vector.shape_cast %197 : vector<1x1x2x32xf32> to vector<2x32xf32>
      %199 = arith.truncf %198 : vector<2x32xf32> to vector<2x32xbf16>
      %cst_98 = arith.constant dense<0.000000e+00> : vector<2x256xf32>
      %200 = tpu.matmul %199, %196, %cst_98 {dimension_numbers = #tpu.dot_dimension_numbers<[1], [0], [0], [1], [0, 0, 1, 1], [], []>} : vector<2x32xbf16>, vector<32x256xbf16>, vector<2x256xf32> -> vector<2x256xf32>
      %201 = arith.addf %195, %200 : vector<2x256xf32>
      %c-3_i32 = arith.constant -3 : i32
      %202 = vector.broadcast %c-3_i32 : i32 to vector<1x256xi32>
      %203 = arith.addi %157, %202 : vector<1x256xi32>
      %c0_i32_99 = arith.constant 0 : i32
      %204 = vector.broadcast %c0_i32_99 : i32 to vector<1x256xi32>
      %205 = arith.cmpi sge, %203, %204 : vector<1x256xi32>
      %c-3_i32_100 = arith.constant -3 : i32
      %206 = vector.broadcast %c-3_i32_100 : i32 to vector<1x256xi32>
      %207 = arith.addi %157, %206 : vector<1x256xi32>
      %c16_i32_101 = arith.constant 16 : i32
      %208 = vector.broadcast %c16_i32_101 : i32 to vector<1x256xi32>
      %209 = arith.cmpi slt, %207, %208 : vector<1x256xi32>
      %210 = arith.andi %205, %209 : vector<1x256xi1>
      %cst_102 = arith.constant 0.000000e+00 : f32
      %211 = vector.shape_cast %210 : vector<1x256xi1> to vector<1x256xi1>
      %212 = vector.broadcast %211 : vector<1x256xi1> to vector<2x256xi1>
      %213 = vector.broadcast %cst_102 : f32 to vector<2x256xf32>
      %214 = arith.select %212, %201, %213 : vector<2x256xi1>, vector<2x256xf32>
      %215 = arith.addf %158, %214 : vector<2x256xf32>
      %cst_103 = arith.constant 0.000000e+00 : f32
      %216 = vector.broadcast %cst_103 : f32 to vector<2x256xf32>
      %c0_104 = arith.constant 0 : index
      %c1_105 = arith.constant 1 : index
      %217 = vector.load %arg11[%c0_104, %c1_105] : memref<32x358xbf16, #tpu.memory_space<vmem>>, vector<32x256xbf16>
      %c0_106 = arith.constant 0 : index
      %c1_107 = arith.constant 1 : index
      %c0_108 = arith.constant 0 : index
      %c0_109 = arith.constant 0 : index
      %218 = vector.load %arg7[%c0_106, %c1_107, %c0_108, %c0_109] : memref<7x7x2x32xf32, #tpu.memory_space<vmem>>, vector<1x1x2x32xf32>
      %219 = vector.shape_cast %218 : vector<1x1x2x32xf32> to vector<2x32xf32>
      %220 = arith.truncf %219 : vector<2x32xf32> to vector<2x32xbf16>
      %cst_110 = arith.constant dense<0.000000e+00> : vector<2x256xf32>
      %221 = tpu.matmul %220, %217, %cst_110 {dimension_numbers = #tpu.dot_dimension_numbers<[1], [0], [0], [1], [0, 0, 1, 1], [], []>} : vector<2x32xbf16>, vector<32x256xbf16>, vector<2x256xf32> -> vector<2x256xf32>
      %222 = arith.addf %216, %221 : vector<2x256xf32>
      %c0_111 = arith.constant 0 : index
      %c17 = arith.constant 17 : index
      %223 = vector.load %arg11[%c0_111, %c17] : memref<32x358xbf16, #tpu.memory_space<vmem>>, vector<32x256xbf16>
      %c1_112 = arith.constant 1 : index
      %c1_113 = arith.constant 1 : index
      %c0_114 = arith.constant 0 : index
      %c0_115 = arith.constant 0 : index
      %224 = vector.load %arg7[%c1_112, %c1_113, %c0_114, %c0_115] : memref<7x7x2x32xf32, #tpu.memory_space<vmem>>, vector<1x1x2x32xf32>
      %225 = vector.shape_cast %224 : vector<1x1x2x32xf32> to vector<2x32xf32>
      %226 = arith.truncf %225 : vector<2x32xf32> to vector<2x32xbf16>
      %cst_116 = arith.constant dense<0.000000e+00> : vector<2x256xf32>
      %227 = tpu.matmul %226, %223, %cst_116 {dimension_numbers = #tpu.dot_dimension_numbers<[1], [0], [0], [1], [0, 0, 1, 1], [], []>} : vector<2x32xbf16>, vector<32x256xbf16>, vector<2x256xf32> -> vector<2x256xf32>
      %228 = arith.addf %222, %227 : vector<2x256xf32>
      %c0_117 = arith.constant 0 : index
      %c33 = arith.constant 33 : index
      %229 = vector.load %arg11[%c0_117, %c33] : memref<32x358xbf16, #tpu.memory_space<vmem>>, vector<32x256xbf16>
      %c2_118 = arith.constant 2 : index
      %c1_119 = arith.constant 1 : index
      %c0_120 = arith.constant 0 : index
      %c0_121 = arith.constant 0 : index
      %230 = vector.load %arg7[%c2_118, %c1_119, %c0_120, %c0_121] : memref<7x7x2x32xf32, #tpu.memory_space<vmem>>, vector<1x1x2x32xf32>
      %231 = vector.shape_cast %230 : vector<1x1x2x32xf32> to vector<2x32xf32>
      %232 = arith.truncf %231 : vector<2x32xf32> to vector<2x32xbf16>
      %cst_122 = arith.constant dense<0.000000e+00> : vector<2x256xf32>
      %233 = tpu.matmul %232, %229, %cst_122 {dimension_numbers = #tpu.dot_dimension_numbers<[1], [0], [0], [1], [0, 0, 1, 1], [], []>} : vector<2x32xbf16>, vector<32x256xbf16>, vector<2x256xf32> -> vector<2x256xf32>
      %234 = arith.addf %228, %233 : vector<2x256xf32>
      %c0_123 = arith.constant 0 : index
      %c49 = arith.constant 49 : index
      %235 = vector.load %arg11[%c0_123, %c49] : memref<32x358xbf16, #tpu.memory_space<vmem>>, vector<32x256xbf16>
      %c3_124 = arith.constant 3 : index
      %c1_125 = arith.constant 1 : index
      %c0_126 = arith.constant 0 : index
      %c0_127 = arith.constant 0 : index
      %236 = vector.load %arg7[%c3_124, %c1_125, %c0_126, %c0_127] : memref<7x7x2x32xf32, #tpu.memory_space<vmem>>, vector<1x1x2x32xf32>
      %237 = vector.shape_cast %236 : vector<1x1x2x32xf32> to vector<2x32xf32>
      %238 = arith.truncf %237 : vector<2x32xf32> to vector<2x32xbf16>
      %cst_128 = arith.constant dense<0.000000e+00> : vector<2x256xf32>
      %239 = tpu.matmul %238, %235, %cst_128 {dimension_numbers = #tpu.dot_dimension_numbers<[1], [0], [0], [1], [0, 0, 1, 1], [], []>} : vector<2x32xbf16>, vector<32x256xbf16>, vector<2x256xf32> -> vector<2x256xf32>
      %240 = arith.addf %234, %239 : vector<2x256xf32>
      %c0_129 = arith.constant 0 : index
      %c65 = arith.constant 65 : index
      %241 = vector.load %arg11[%c0_129, %c65] : memref<32x358xbf16, #tpu.memory_space<vmem>>, vector<32x256xbf16>
      %c4_130 = arith.constant 4 : index
      %c1_131 = arith.constant 1 : index
      %c0_132 = arith.constant 0 : index
      %c0_133 = arith.constant 0 : index
      %242 = vector.load %arg7[%c4_130, %c1_131, %c0_132, %c0_133] : memref<7x7x2x32xf32, #tpu.memory_space<vmem>>, vector<1x1x2x32xf32>
      %243 = vector.shape_cast %242 : vector<1x1x2x32xf32> to vector<2x32xf32>
      %244 = arith.truncf %243 : vector<2x32xf32> to vector<2x32xbf16>
      %cst_134 = arith.constant dense<0.000000e+00> : vector<2x256xf32>
      %245 = tpu.matmul %244, %241, %cst_134 {dimension_numbers = #tpu.dot_dimension_numbers<[1], [0], [0], [1], [0, 0, 1, 1], [], []>} : vector<2x32xbf16>, vector<32x256xbf16>, vector<2x256xf32> -> vector<2x256xf32>
      %246 = arith.addf %240, %245 : vector<2x256xf32>
      %c0_135 = arith.constant 0 : index
      %c81 = arith.constant 81 : index
      %247 = vector.load %arg11[%c0_135, %c81] : memref<32x358xbf16, #tpu.memory_space<vmem>>, vector<32x256xbf16>
      %c5_136 = arith.constant 5 : index
      %c1_137 = arith.constant 1 : index
      %c0_138 = arith.constant 0 : index
      %c0_139 = arith.constant 0 : index
      %248 = vector.load %arg7[%c5_136, %c1_137, %c0_138, %c0_139] : memref<7x7x2x32xf32, #tpu.memory_space<vmem>>, vector<1x1x2x32xf32>
      %249 = vector.shape_cast %248 : vector<1x1x2x32xf32> to vector<2x32xf32>
      %250 = arith.truncf %249 : vector<2x32xf32> to vector<2x32xbf16>
      %cst_140 = arith.constant dense<0.000000e+00> : vector<2x256xf32>
      %251 = tpu.matmul %250, %247, %cst_140 {dimension_numbers = #tpu.dot_dimension_numbers<[1], [0], [0], [1], [0, 0, 1, 1], [], []>} : vector<2x32xbf16>, vector<32x256xbf16>, vector<2x256xf32> -> vector<2x256xf32>
      %252 = arith.addf %246, %251 : vector<2x256xf32>
      %c0_141 = arith.constant 0 : index
      %c97 = arith.constant 97 : index
      %253 = vector.load %arg11[%c0_141, %c97] : memref<32x358xbf16, #tpu.memory_space<vmem>>, vector<32x256xbf16>
      %c6_142 = arith.constant 6 : index
      %c1_143 = arith.constant 1 : index
      %c0_144 = arith.constant 0 : index
      %c0_145 = arith.constant 0 : index
      %254 = vector.load %arg7[%c6_142, %c1_143, %c0_144, %c0_145] : memref<7x7x2x32xf32, #tpu.memory_space<vmem>>, vector<1x1x2x32xf32>
      %255 = vector.shape_cast %254 : vector<1x1x2x32xf32> to vector<2x32xf32>
      %256 = arith.truncf %255 : vector<2x32xf32> to vector<2x32xbf16>
      %cst_146 = arith.constant dense<0.000000e+00> : vector<2x256xf32>
      %257 = tpu.matmul %256, %253, %cst_146 {dimension_numbers = #tpu.dot_dimension_numbers<[1], [0], [0], [1], [0, 0, 1, 1], [], []>} : vector<2x32xbf16>, vector<32x256xbf16>, vector<2x256xf32> -> vector<2x256xf32>
      %258 = arith.addf %252, %257 : vector<2x256xf32>
      %c-2_i32 = arith.constant -2 : i32
      %259 = vector.broadcast %c-2_i32 : i32 to vector<1x256xi32>
      %260 = arith.addi %157, %259 : vector<1x256xi32>
      %c0_i32_147 = arith.constant 0 : i32
      %261 = vector.broadcast %c0_i32_147 : i32 to vector<1x256xi32>
      %262 = arith.cmpi sge, %260, %261 : vector<1x256xi32>
      %c-2_i32_148 = arith.constant -2 : i32
      %263 = vector.broadcast %c-2_i32_148 : i32 to vector<1x256xi32>
      %264 = arith.addi %157, %263 : vector<1x256xi32>
      %c16_i32_149 = arith.constant 16 : i32
      %265 = vector.broadcast %c16_i32_149 : i32 to vector<1x256xi32>
      %266 = arith.cmpi slt, %264, %265 : vector<1x256xi32>
      %267 = arith.andi %262, %266 : vector<1x256xi1>
      %cst_150 = arith.constant 0.000000e+00 : f32
      %268 = vector.shape_cast %267 : vector<1x256xi1> to vector<1x256xi1>
      %269 = vector.broadcast %268 : vector<1x256xi1> to vector<2x256xi1>
      %270 = vector.broadcast %cst_150 : f32 to vector<2x256xf32>
      %271 = arith.select %269, %258, %270 : vector<2x256xi1>, vector<2x256xf32>
      %272 = arith.addf %215, %271 : vector<2x256xf32>
      %cst_151 = arith.constant 0.000000e+00 : f32
      %273 = vector.broadcast %cst_151 : f32 to vector<2x256xf32>
      %c0_152 = arith.constant 0 : index
      %c2_153 = arith.constant 2 : index
      %274 = vector.load %arg11[%c0_152, %c2_153] : memref<32x358xbf16, #tpu.memory_space<vmem>>, vector<32x256xbf16>
      %c0_154 = arith.constant 0 : index
      %c2_155 = arith.constant 2 : index
      %c0_156 = arith.constant 0 : index
      %c0_157 = arith.constant 0 : index
      %275 = vector.load %arg7[%c0_154, %c2_155, %c0_156, %c0_157] : memref<7x7x2x32xf32, #tpu.memory_space<vmem>>, vector<1x1x2x32xf32>
      %276 = vector.shape_cast %275 : vector<1x1x2x32xf32> to vector<2x32xf32>
      %277 = arith.truncf %276 : vector<2x32xf32> to vector<2x32xbf16>
      %cst_158 = arith.constant dense<0.000000e+00> : vector<2x256xf32>
      %278 = tpu.matmul %277, %274, %cst_158 {dimension_numbers = #tpu.dot_dimension_numbers<[1], [0], [0], [1], [0, 0, 1, 1], [], []>} : vector<2x32xbf16>, vector<32x256xbf16>, vector<2x256xf32> -> vector<2x256xf32>
      %279 = arith.addf %273, %278 : vector<2x256xf32>
      %c0_159 = arith.constant 0 : index
      %c18 = arith.constant 18 : index
      %280 = vector.load %arg11[%c0_159, %c18] : memref<32x358xbf16, #tpu.memory_space<vmem>>, vector<32x256xbf16>
      %c1_160 = arith.constant 1 : index
      %c2_161 = arith.constant 2 : index
      %c0_162 = arith.constant 0 : index
      %c0_163 = arith.constant 0 : index
      %281 = vector.load %arg7[%c1_160, %c2_161, %c0_162, %c0_163] : memref<7x7x2x32xf32, #tpu.memory_space<vmem>>, vector<1x1x2x32xf32>
      %282 = vector.shape_cast %281 : vector<1x1x2x32xf32> to vector<2x32xf32>
      %283 = arith.truncf %282 : vector<2x32xf32> to vector<2x32xbf16>
      %cst_164 = arith.constant dense<0.000000e+00> : vector<2x256xf32>
      %284 = tpu.matmul %283, %280, %cst_164 {dimension_numbers = #tpu.dot_dimension_numbers<[1], [0], [0], [1], [0, 0, 1, 1], [], []>} : vector<2x32xbf16>, vector<32x256xbf16>, vector<2x256xf32> -> vector<2x256xf32>
      %285 = arith.addf %279, %284 : vector<2x256xf32>
      %c0_165 = arith.constant 0 : index
      %c34 = arith.constant 34 : index
      %286 = vector.load %arg11[%c0_165, %c34] : memref<32x358xbf16, #tpu.memory_space<vmem>>, vector<32x256xbf16>
      %c2_166 = arith.constant 2 : index
      %c2_167 = arith.constant 2 : index
      %c0_168 = arith.constant 0 : index
      %c0_169 = arith.constant 0 : index
      %287 = vector.load %arg7[%c2_166, %c2_167, %c0_168, %c0_169] : memref<7x7x2x32xf32, #tpu.memory_space<vmem>>, vector<1x1x2x32xf32>
      %288 = vector.shape_cast %287 : vector<1x1x2x32xf32> to vector<2x32xf32>
      %289 = arith.truncf %288 : vector<2x32xf32> to vector<2x32xbf16>
      %cst_170 = arith.constant dense<0.000000e+00> : vector<2x256xf32>
      %290 = tpu.matmul %289, %286, %cst_170 {dimension_numbers = #tpu.dot_dimension_numbers<[1], [0], [0], [1], [0, 0, 1, 1], [], []>} : vector<2x32xbf16>, vector<32x256xbf16>, vector<2x256xf32> -> vector<2x256xf32>
      %291 = arith.addf %285, %290 : vector<2x256xf32>
      %c0_171 = arith.constant 0 : index
      %c50 = arith.constant 50 : index
      %292 = vector.load %arg11[%c0_171, %c50] : memref<32x358xbf16, #tpu.memory_space<vmem>>, vector<32x256xbf16>
      %c3_172 = arith.constant 3 : index
      %c2_173 = arith.constant 2 : index
      %c0_174 = arith.constant 0 : index
      %c0_175 = arith.constant 0 : index
      %293 = vector.load %arg7[%c3_172, %c2_173, %c0_174, %c0_175] : memref<7x7x2x32xf32, #tpu.memory_space<vmem>>, vector<1x1x2x32xf32>
      %294 = vector.shape_cast %293 : vector<1x1x2x32xf32> to vector<2x32xf32>
      %295 = arith.truncf %294 : vector<2x32xf32> to vector<2x32xbf16>
      %cst_176 = arith.constant dense<0.000000e+00> : vector<2x256xf32>
      %296 = tpu.matmul %295, %292, %cst_176 {dimension_numbers = #tpu.dot_dimension_numbers<[1], [0], [0], [1], [0, 0, 1, 1], [], []>} : vector<2x32xbf16>, vector<32x256xbf16>, vector<2x256xf32> -> vector<2x256xf32>
      %297 = arith.addf %291, %296 : vector<2x256xf32>
      %c0_177 = arith.constant 0 : index
      %c66 = arith.constant 66 : index
      %298 = vector.load %arg11[%c0_177, %c66] : memref<32x358xbf16, #tpu.memory_space<vmem>>, vector<32x256xbf16>
      %c4_178 = arith.constant 4 : index
      %c2_179 = arith.constant 2 : index
      %c0_180 = arith.constant 0 : index
      %c0_181 = arith.constant 0 : index
      %299 = vector.load %arg7[%c4_178, %c2_179, %c0_180, %c0_181] : memref<7x7x2x32xf32, #tpu.memory_space<vmem>>, vector<1x1x2x32xf32>
      %300 = vector.shape_cast %299 : vector<1x1x2x32xf32> to vector<2x32xf32>
      %301 = arith.truncf %300 : vector<2x32xf32> to vector<2x32xbf16>
      %cst_182 = arith.constant dense<0.000000e+00> : vector<2x256xf32>
      %302 = tpu.matmul %301, %298, %cst_182 {dimension_numbers = #tpu.dot_dimension_numbers<[1], [0], [0], [1], [0, 0, 1, 1], [], []>} : vector<2x32xbf16>, vector<32x256xbf16>, vector<2x256xf32> -> vector<2x256xf32>
      %303 = arith.addf %297, %302 : vector<2x256xf32>
      %c0_183 = arith.constant 0 : index
      %c82 = arith.constant 82 : index
      %304 = vector.load %arg11[%c0_183, %c82] : memref<32x358xbf16, #tpu.memory_space<vmem>>, vector<32x256xbf16>
      %c5_184 = arith.constant 5 : index
      %c2_185 = arith.constant 2 : index
      %c0_186 = arith.constant 0 : index
      %c0_187 = arith.constant 0 : index
      %305 = vector.load %arg7[%c5_184, %c2_185, %c0_186, %c0_187] : memref<7x7x2x32xf32, #tpu.memory_space<vmem>>, vector<1x1x2x32xf32>
      %306 = vector.shape_cast %305 : vector<1x1x2x32xf32> to vector<2x32xf32>
      %307 = arith.truncf %306 : vector<2x32xf32> to vector<2x32xbf16>
      %cst_188 = arith.constant dense<0.000000e+00> : vector<2x256xf32>
      %308 = tpu.matmul %307, %304, %cst_188 {dimension_numbers = #tpu.dot_dimension_numbers<[1], [0], [0], [1], [0, 0, 1, 1], [], []>} : vector<2x32xbf16>, vector<32x256xbf16>, vector<2x256xf32> -> vector<2x256xf32>
      %309 = arith.addf %303, %308 : vector<2x256xf32>
      %c0_189 = arith.constant 0 : index
      %c98 = arith.constant 98 : index
      %310 = vector.load %arg11[%c0_189, %c98] : memref<32x358xbf16, #tpu.memory_space<vmem>>, vector<32x256xbf16>
      %c6_190 = arith.constant 6 : index
      %c2_191 = arith.constant 2 : index
      %c0_192 = arith.constant 0 : index
      %c0_193 = arith.constant 0 : index
      %311 = vector.load %arg7[%c6_190, %c2_191, %c0_192, %c0_193] : memref<7x7x2x32xf32, #tpu.memory_space<vmem>>, vector<1x1x2x32xf32>
      %312 = vector.shape_cast %311 : vector<1x1x2x32xf32> to vector<2x32xf32>
      %313 = arith.truncf %312 : vector<2x32xf32> to vector<2x32xbf16>
      %cst_194 = arith.constant dense<0.000000e+00> : vector<2x256xf32>
      %314 = tpu.matmul %313, %310, %cst_194 {dimension_numbers = #tpu.dot_dimension_numbers<[1], [0], [0], [1], [0, 0, 1, 1], [], []>} : vector<2x32xbf16>, vector<32x256xbf16>, vector<2x256xf32> -> vector<2x256xf32>
      %315 = arith.addf %309, %314 : vector<2x256xf32>
      %c-1_i32 = arith.constant -1 : i32
      %316 = vector.broadcast %c-1_i32 : i32 to vector<1x256xi32>
      %317 = arith.addi %157, %316 : vector<1x256xi32>
      %c0_i32_195 = arith.constant 0 : i32
      %318 = vector.broadcast %c0_i32_195 : i32 to vector<1x256xi32>
      %319 = arith.cmpi sge, %317, %318 : vector<1x256xi32>
      %c-1_i32_196 = arith.constant -1 : i32
      %320 = vector.broadcast %c-1_i32_196 : i32 to vector<1x256xi32>
      %321 = arith.addi %157, %320 : vector<1x256xi32>
      %c16_i32_197 = arith.constant 16 : i32
      %322 = vector.broadcast %c16_i32_197 : i32 to vector<1x256xi32>
      %323 = arith.cmpi slt, %321, %322 : vector<1x256xi32>
      %324 = arith.andi %319, %323 : vector<1x256xi1>
      %cst_198 = arith.constant 0.000000e+00 : f32
      %325 = vector.shape_cast %324 : vector<1x256xi1> to vector<1x256xi1>
      %326 = vector.broadcast %325 : vector<1x256xi1> to vector<2x256xi1>
      %327 = vector.broadcast %cst_198 : f32 to vector<2x256xf32>
      %328 = arith.select %326, %315, %327 : vector<2x256xi1>, vector<2x256xf32>
      %329 = arith.addf %272, %328 : vector<2x256xf32>
      %cst_199 = arith.constant 0.000000e+00 : f32
      %330 = vector.broadcast %cst_199 : f32 to vector<2x256xf32>
      %c0_200 = arith.constant 0 : index
      %c3_201 = arith.constant 3 : index
      %331 = vector.load %arg11[%c0_200, %c3_201] : memref<32x358xbf16, #tpu.memory_space<vmem>>, vector<32x256xbf16>
      %c0_202 = arith.constant 0 : index
      %c3_203 = arith.constant 3 : index
      %c0_204 = arith.constant 0 : index
      %c0_205 = arith.constant 0 : index
      %332 = vector.load %arg7[%c0_202, %c3_203, %c0_204, %c0_205] : memref<7x7x2x32xf32, #tpu.memory_space<vmem>>, vector<1x1x2x32xf32>
      %333 = vector.shape_cast %332 : vector<1x1x2x32xf32> to vector<2x32xf32>
      %334 = arith.truncf %333 : vector<2x32xf32> to vector<2x32xbf16>
      %cst_206 = arith.constant dense<0.000000e+00> : vector<2x256xf32>
      %335 = tpu.matmul %334, %331, %cst_206 {dimension_numbers = #tpu.dot_dimension_numbers<[1], [0], [0], [1], [0, 0, 1, 1], [], []>} : vector<2x32xbf16>, vector<32x256xbf16>, vector<2x256xf32> -> vector<2x256xf32>
      %336 = arith.addf %330, %335 : vector<2x256xf32>
      %c0_207 = arith.constant 0 : index
      %c19 = arith.constant 19 : index
      %337 = vector.load %arg11[%c0_207, %c19] : memref<32x358xbf16, #tpu.memory_space<vmem>>, vector<32x256xbf16>
      %c1_208 = arith.constant 1 : index
      %c3_209 = arith.constant 3 : index
      %c0_210 = arith.constant 0 : index
      %c0_211 = arith.constant 0 : index
      %338 = vector.load %arg7[%c1_208, %c3_209, %c0_210, %c0_211] : memref<7x7x2x32xf32, #tpu.memory_space<vmem>>, vector<1x1x2x32xf32>
      %339 = vector.shape_cast %338 : vector<1x1x2x32xf32> to vector<2x32xf32>
      %340 = arith.truncf %339 : vector<2x32xf32> to vector<2x32xbf16>
      %cst_212 = arith.constant dense<0.000000e+00> : vector<2x256xf32>
      %341 = tpu.matmul %340, %337, %cst_212 {dimension_numbers = #tpu.dot_dimension_numbers<[1], [0], [0], [1], [0, 0, 1, 1], [], []>} : vector<2x32xbf16>, vector<32x256xbf16>, vector<2x256xf32> -> vector<2x256xf32>
      %342 = arith.addf %336, %341 : vector<2x256xf32>
      %c0_213 = arith.constant 0 : index
      %c35 = arith.constant 35 : index
      %343 = vector.load %arg11[%c0_213, %c35] : memref<32x358xbf16, #tpu.memory_space<vmem>>, vector<32x256xbf16>
      %c2_214 = arith.constant 2 : index
      %c3_215 = arith.constant 3 : index
      %c0_216 = arith.constant 0 : index
      %c0_217 = arith.constant 0 : index
      %344 = vector.load %arg7[%c2_214, %c3_215, %c0_216, %c0_217] : memref<7x7x2x32xf32, #tpu.memory_space<vmem>>, vector<1x1x2x32xf32>
      %345 = vector.shape_cast %344 : vector<1x1x2x32xf32> to vector<2x32xf32>
      %346 = arith.truncf %345 : vector<2x32xf32> to vector<2x32xbf16>
      %cst_218 = arith.constant dense<0.000000e+00> : vector<2x256xf32>
      %347 = tpu.matmul %346, %343, %cst_218 {dimension_numbers = #tpu.dot_dimension_numbers<[1], [0], [0], [1], [0, 0, 1, 1], [], []>} : vector<2x32xbf16>, vector<32x256xbf16>, vector<2x256xf32> -> vector<2x256xf32>
      %348 = arith.addf %342, %347 : vector<2x256xf32>
      %c0_219 = arith.constant 0 : index
      %c51_220 = arith.constant 51 : index
      %349 = vector.load %arg11[%c0_219, %c51_220] : memref<32x358xbf16, #tpu.memory_space<vmem>>, vector<32x256xbf16>
      %c3_221 = arith.constant 3 : index
      %c3_222 = arith.constant 3 : index
      %c0_223 = arith.constant 0 : index
      %c0_224 = arith.constant 0 : index
      %350 = vector.load %arg7[%c3_221, %c3_222, %c0_223, %c0_224] : memref<7x7x2x32xf32, #tpu.memory_space<vmem>>, vector<1x1x2x32xf32>
      %351 = vector.shape_cast %350 : vector<1x1x2x32xf32> to vector<2x32xf32>
      %352 = arith.truncf %351 : vector<2x32xf32> to vector<2x32xbf16>
      %cst_225 = arith.constant dense<0.000000e+00> : vector<2x256xf32>
      %353 = tpu.matmul %352, %349, %cst_225 {dimension_numbers = #tpu.dot_dimension_numbers<[1], [0], [0], [1], [0, 0, 1, 1], [], []>} : vector<2x32xbf16>, vector<32x256xbf16>, vector<2x256xf32> -> vector<2x256xf32>
      %354 = arith.addf %348, %353 : vector<2x256xf32>
      %c0_226 = arith.constant 0 : index
      %c67 = arith.constant 67 : index
      %355 = vector.load %arg11[%c0_226, %c67] : memref<32x358xbf16, #tpu.memory_space<vmem>>, vector<32x256xbf16>
      %c4_227 = arith.constant 4 : index
      %c3_228 = arith.constant 3 : index
      %c0_229 = arith.constant 0 : index
      %c0_230 = arith.constant 0 : index
      %356 = vector.load %arg7[%c4_227, %c3_228, %c0_229, %c0_230] : memref<7x7x2x32xf32, #tpu.memory_space<vmem>>, vector<1x1x2x32xf32>
      %357 = vector.shape_cast %356 : vector<1x1x2x32xf32> to vector<2x32xf32>
      %358 = arith.truncf %357 : vector<2x32xf32> to vector<2x32xbf16>
      %cst_231 = arith.constant dense<0.000000e+00> : vector<2x256xf32>
      %359 = tpu.matmul %358, %355, %cst_231 {dimension_numbers = #tpu.dot_dimension_numbers<[1], [0], [0], [1], [0, 0, 1, 1], [], []>} : vector<2x32xbf16>, vector<32x256xbf16>, vector<2x256xf32> -> vector<2x256xf32>
      %360 = arith.addf %354, %359 : vector<2x256xf32>
      %c0_232 = arith.constant 0 : index
      %c83 = arith.constant 83 : index
      %361 = vector.load %arg11[%c0_232, %c83] : memref<32x358xbf16, #tpu.memory_space<vmem>>, vector<32x256xbf16>
      %c5_233 = arith.constant 5 : index
      %c3_234 = arith.constant 3 : index
      %c0_235 = arith.constant 0 : index
      %c0_236 = arith.constant 0 : index
      %362 = vector.load %arg7[%c5_233, %c3_234, %c0_235, %c0_236] : memref<7x7x2x32xf32, #tpu.memory_space<vmem>>, vector<1x1x2x32xf32>
      %363 = vector.shape_cast %362 : vector<1x1x2x32xf32> to vector<2x32xf32>
      %364 = arith.truncf %363 : vector<2x32xf32> to vector<2x32xbf16>
      %cst_237 = arith.constant dense<0.000000e+00> : vector<2x256xf32>
      %365 = tpu.matmul %364, %361, %cst_237 {dimension_numbers = #tpu.dot_dimension_numbers<[1], [0], [0], [1], [0, 0, 1, 1], [], []>} : vector<2x32xbf16>, vector<32x256xbf16>, vector<2x256xf32> -> vector<2x256xf32>
      %366 = arith.addf %360, %365 : vector<2x256xf32>
      %c0_238 = arith.constant 0 : index
      %c99 = arith.constant 99 : index
      %367 = vector.load %arg11[%c0_238, %c99] : memref<32x358xbf16, #tpu.memory_space<vmem>>, vector<32x256xbf16>
      %c6_239 = arith.constant 6 : index
      %c3_240 = arith.constant 3 : index
      %c0_241 = arith.constant 0 : index
      %c0_242 = arith.constant 0 : index
      %368 = vector.load %arg7[%c6_239, %c3_240, %c0_241, %c0_242] : memref<7x7x2x32xf32, #tpu.memory_space<vmem>>, vector<1x1x2x32xf32>
      %369 = vector.shape_cast %368 : vector<1x1x2x32xf32> to vector<2x32xf32>
      %370 = arith.truncf %369 : vector<2x32xf32> to vector<2x32xbf16>
      %cst_243 = arith.constant dense<0.000000e+00> : vector<2x256xf32>
      %371 = tpu.matmul %370, %367, %cst_243 {dimension_numbers = #tpu.dot_dimension_numbers<[1], [0], [0], [1], [0, 0, 1, 1], [], []>} : vector<2x32xbf16>, vector<32x256xbf16>, vector<2x256xf32> -> vector<2x256xf32>
      %372 = arith.addf %366, %371 : vector<2x256xf32>
      %c0_i32_244 = arith.constant 0 : i32
      %373 = vector.broadcast %c0_i32_244 : i32 to vector<1x256xi32>
      %374 = arith.addi %157, %373 : vector<1x256xi32>
      %c0_i32_245 = arith.constant 0 : i32
      %375 = vector.broadcast %c0_i32_245 : i32 to vector<1x256xi32>
      %376 = arith.cmpi sge, %374, %375 : vector<1x256xi32>
      %c0_i32_246 = arith.constant 0 : i32
      %377 = vector.broadcast %c0_i32_246 : i32 to vector<1x256xi32>
      %378 = arith.addi %157, %377 : vector<1x256xi32>
      %c16_i32_247 = arith.constant 16 : i32
      %379 = vector.broadcast %c16_i32_247 : i32 to vector<1x256xi32>
      %380 = arith.cmpi slt, %378, %379 : vector<1x256xi32>
      %381 = arith.andi %376, %380 : vector<1x256xi1>
      %cst_248 = arith.constant 0.000000e+00 : f32
      %382 = vector.shape_cast %381 : vector<1x256xi1> to vector<1x256xi1>
      %383 = vector.broadcast %382 : vector<1x256xi1> to vector<2x256xi1>
      %384 = vector.broadcast %cst_248 : f32 to vector<2x256xf32>
      %385 = arith.select %383, %372, %384 : vector<2x256xi1>, vector<2x256xf32>
      %386 = arith.addf %329, %385 : vector<2x256xf32>
      %cst_249 = arith.constant 0.000000e+00 : f32
      %387 = vector.broadcast %cst_249 : f32 to vector<2x256xf32>
      %c0_250 = arith.constant 0 : index
      %c4_251 = arith.constant 4 : index
      %388 = vector.load %arg11[%c0_250, %c4_251] : memref<32x358xbf16, #tpu.memory_space<vmem>>, vector<32x256xbf16>
      %c0_252 = arith.constant 0 : index
      %c4_253 = arith.constant 4 : index
      %c0_254 = arith.constant 0 : index
      %c0_255 = arith.constant 0 : index
      %389 = vector.load %arg7[%c0_252, %c4_253, %c0_254, %c0_255] : memref<7x7x2x32xf32, #tpu.memory_space<vmem>>, vector<1x1x2x32xf32>
      %390 = vector.shape_cast %389 : vector<1x1x2x32xf32> to vector<2x32xf32>
      %391 = arith.truncf %390 : vector<2x32xf32> to vector<2x32xbf16>
      %cst_256 = arith.constant dense<0.000000e+00> : vector<2x256xf32>
      %392 = tpu.matmul %391, %388, %cst_256 {dimension_numbers = #tpu.dot_dimension_numbers<[1], [0], [0], [1], [0, 0, 1, 1], [], []>} : vector<2x32xbf16>, vector<32x256xbf16>, vector<2x256xf32> -> vector<2x256xf32>
      %393 = arith.addf %387, %392 : vector<2x256xf32>
      %c0_257 = arith.constant 0 : index
      %c20 = arith.constant 20 : index
      %394 = vector.load %arg11[%c0_257, %c20] : memref<32x358xbf16, #tpu.memory_space<vmem>>, vector<32x256xbf16>
      %c1_258 = arith.constant 1 : index
      %c4_259 = arith.constant 4 : index
      %c0_260 = arith.constant 0 : index
      %c0_261 = arith.constant 0 : index
      %395 = vector.load %arg7[%c1_258, %c4_259, %c0_260, %c0_261] : memref<7x7x2x32xf32, #tpu.memory_space<vmem>>, vector<1x1x2x32xf32>
      %396 = vector.shape_cast %395 : vector<1x1x2x32xf32> to vector<2x32xf32>
      %397 = arith.truncf %396 : vector<2x32xf32> to vector<2x32xbf16>
      %cst_262 = arith.constant dense<0.000000e+00> : vector<2x256xf32>
      %398 = tpu.matmul %397, %394, %cst_262 {dimension_numbers = #tpu.dot_dimension_numbers<[1], [0], [0], [1], [0, 0, 1, 1], [], []>} : vector<2x32xbf16>, vector<32x256xbf16>, vector<2x256xf32> -> vector<2x256xf32>
      %399 = arith.addf %393, %398 : vector<2x256xf32>
      %c0_263 = arith.constant 0 : index
      %c36 = arith.constant 36 : index
      %400 = vector.load %arg11[%c0_263, %c36] : memref<32x358xbf16, #tpu.memory_space<vmem>>, vector<32x256xbf16>
      %c2_264 = arith.constant 2 : index
      %c4_265 = arith.constant 4 : index
      %c0_266 = arith.constant 0 : index
      %c0_267 = arith.constant 0 : index
      %401 = vector.load %arg7[%c2_264, %c4_265, %c0_266, %c0_267] : memref<7x7x2x32xf32, #tpu.memory_space<vmem>>, vector<1x1x2x32xf32>
      %402 = vector.shape_cast %401 : vector<1x1x2x32xf32> to vector<2x32xf32>
      %403 = arith.truncf %402 : vector<2x32xf32> to vector<2x32xbf16>
      %cst_268 = arith.constant dense<0.000000e+00> : vector<2x256xf32>
      %404 = tpu.matmul %403, %400, %cst_268 {dimension_numbers = #tpu.dot_dimension_numbers<[1], [0], [0], [1], [0, 0, 1, 1], [], []>} : vector<2x32xbf16>, vector<32x256xbf16>, vector<2x256xf32> -> vector<2x256xf32>
      %405 = arith.addf %399, %404 : vector<2x256xf32>
      %c0_269 = arith.constant 0 : index
      %c52 = arith.constant 52 : index
      %406 = vector.load %arg11[%c0_269, %c52] : memref<32x358xbf16, #tpu.memory_space<vmem>>, vector<32x256xbf16>
      %c3_270 = arith.constant 3 : index
      %c4_271 = arith.constant 4 : index
      %c0_272 = arith.constant 0 : index
      %c0_273 = arith.constant 0 : index
      %407 = vector.load %arg7[%c3_270, %c4_271, %c0_272, %c0_273] : memref<7x7x2x32xf32, #tpu.memory_space<vmem>>, vector<1x1x2x32xf32>
      %408 = vector.shape_cast %407 : vector<1x1x2x32xf32> to vector<2x32xf32>
      %409 = arith.truncf %408 : vector<2x32xf32> to vector<2x32xbf16>
      %cst_274 = arith.constant dense<0.000000e+00> : vector<2x256xf32>
      %410 = tpu.matmul %409, %406, %cst_274 {dimension_numbers = #tpu.dot_dimension_numbers<[1], [0], [0], [1], [0, 0, 1, 1], [], []>} : vector<2x32xbf16>, vector<32x256xbf16>, vector<2x256xf32> -> vector<2x256xf32>
      %411 = arith.addf %405, %410 : vector<2x256xf32>
      %c0_275 = arith.constant 0 : index
      %c68 = arith.constant 68 : index
      %412 = vector.load %arg11[%c0_275, %c68] : memref<32x358xbf16, #tpu.memory_space<vmem>>, vector<32x256xbf16>
      %c4_276 = arith.constant 4 : index
      %c4_277 = arith.constant 4 : index
      %c0_278 = arith.constant 0 : index
      %c0_279 = arith.constant 0 : index
      %413 = vector.load %arg7[%c4_276, %c4_277, %c0_278, %c0_279] : memref<7x7x2x32xf32, #tpu.memory_space<vmem>>, vector<1x1x2x32xf32>
      %414 = vector.shape_cast %413 : vector<1x1x2x32xf32> to vector<2x32xf32>
      %415 = arith.truncf %414 : vector<2x32xf32> to vector<2x32xbf16>
      %cst_280 = arith.constant dense<0.000000e+00> : vector<2x256xf32>
      %416 = tpu.matmul %415, %412, %cst_280 {dimension_numbers = #tpu.dot_dimension_numbers<[1], [0], [0], [1], [0, 0, 1, 1], [], []>} : vector<2x32xbf16>, vector<32x256xbf16>, vector<2x256xf32> -> vector<2x256xf32>
      %417 = arith.addf %411, %416 : vector<2x256xf32>
      %c0_281 = arith.constant 0 : index
      %c84 = arith.constant 84 : index
      %418 = vector.load %arg11[%c0_281, %c84] : memref<32x358xbf16, #tpu.memory_space<vmem>>, vector<32x256xbf16>
      %c5_282 = arith.constant 5 : index
      %c4_283 = arith.constant 4 : index
      %c0_284 = arith.constant 0 : index
      %c0_285 = arith.constant 0 : index
      %419 = vector.load %arg7[%c5_282, %c4_283, %c0_284, %c0_285] : memref<7x7x2x32xf32, #tpu.memory_space<vmem>>, vector<1x1x2x32xf32>
      %420 = vector.shape_cast %419 : vector<1x1x2x32xf32> to vector<2x32xf32>
      %421 = arith.truncf %420 : vector<2x32xf32> to vector<2x32xbf16>
      %cst_286 = arith.constant dense<0.000000e+00> : vector<2x256xf32>
      %422 = tpu.matmul %421, %418, %cst_286 {dimension_numbers = #tpu.dot_dimension_numbers<[1], [0], [0], [1], [0, 0, 1, 1], [], []>} : vector<2x32xbf16>, vector<32x256xbf16>, vector<2x256xf32> -> vector<2x256xf32>
      %423 = arith.addf %417, %422 : vector<2x256xf32>
      %c0_287 = arith.constant 0 : index
      %c100 = arith.constant 100 : index
      %424 = vector.load %arg11[%c0_287, %c100] : memref<32x358xbf16, #tpu.memory_space<vmem>>, vector<32x256xbf16>
      %c6_288 = arith.constant 6 : index
      %c4_289 = arith.constant 4 : index
      %c0_290 = arith.constant 0 : index
      %c0_291 = arith.constant 0 : index
      %425 = vector.load %arg7[%c6_288, %c4_289, %c0_290, %c0_291] : memref<7x7x2x32xf32, #tpu.memory_space<vmem>>, vector<1x1x2x32xf32>
      %426 = vector.shape_cast %425 : vector<1x1x2x32xf32> to vector<2x32xf32>
      %427 = arith.truncf %426 : vector<2x32xf32> to vector<2x32xbf16>
      %cst_292 = arith.constant dense<0.000000e+00> : vector<2x256xf32>
      %428 = tpu.matmul %427, %424, %cst_292 {dimension_numbers = #tpu.dot_dimension_numbers<[1], [0], [0], [1], [0, 0, 1, 1], [], []>} : vector<2x32xbf16>, vector<32x256xbf16>, vector<2x256xf32> -> vector<2x256xf32>
      %429 = arith.addf %423, %428 : vector<2x256xf32>
      %c1_i32_293 = arith.constant 1 : i32
      %430 = vector.broadcast %c1_i32_293 : i32 to vector<1x256xi32>
      %431 = arith.addi %157, %430 : vector<1x256xi32>
      %c0_i32_294 = arith.constant 0 : i32
      %432 = vector.broadcast %c0_i32_294 : i32 to vector<1x256xi32>
      %433 = arith.cmpi sge, %431, %432 : vector<1x256xi32>
      %c1_i32_295 = arith.constant 1 : i32
      %434 = vector.broadcast %c1_i32_295 : i32 to vector<1x256xi32>
      %435 = arith.addi %157, %434 : vector<1x256xi32>
      %c16_i32_296 = arith.constant 16 : i32
      %436 = vector.broadcast %c16_i32_296 : i32 to vector<1x256xi32>
      %437 = arith.cmpi slt, %435, %436 : vector<1x256xi32>
      %438 = arith.andi %433, %437 : vector<1x256xi1>
      %cst_297 = arith.constant 0.000000e+00 : f32
      %439 = vector.shape_cast %438 : vector<1x256xi1> to vector<1x256xi1>
      %440 = vector.broadcast %439 : vector<1x256xi1> to vector<2x256xi1>
      %441 = vector.broadcast %cst_297 : f32 to vector<2x256xf32>
      %442 = arith.select %440, %429, %441 : vector<2x256xi1>, vector<2x256xf32>
      %443 = arith.addf %386, %442 : vector<2x256xf32>
      %cst_298 = arith.constant 0.000000e+00 : f32
      %444 = vector.broadcast %cst_298 : f32 to vector<2x256xf32>
      %c0_299 = arith.constant 0 : index
      %c5_300 = arith.constant 5 : index
      %445 = vector.load %arg11[%c0_299, %c5_300] : memref<32x358xbf16, #tpu.memory_space<vmem>>, vector<32x256xbf16>
      %c0_301 = arith.constant 0 : index
      %c5_302 = arith.constant 5 : index
      %c0_303 = arith.constant 0 : index
      %c0_304 = arith.constant 0 : index
      %446 = vector.load %arg7[%c0_301, %c5_302, %c0_303, %c0_304] : memref<7x7x2x32xf32, #tpu.memory_space<vmem>>, vector<1x1x2x32xf32>
      %447 = vector.shape_cast %446 : vector<1x1x2x32xf32> to vector<2x32xf32>
      %448 = arith.truncf %447 : vector<2x32xf32> to vector<2x32xbf16>
      %cst_305 = arith.constant dense<0.000000e+00> : vector<2x256xf32>
      %449 = tpu.matmul %448, %445, %cst_305 {dimension_numbers = #tpu.dot_dimension_numbers<[1], [0], [0], [1], [0, 0, 1, 1], [], []>} : vector<2x32xbf16>, vector<32x256xbf16>, vector<2x256xf32> -> vector<2x256xf32>
      %450 = arith.addf %444, %449 : vector<2x256xf32>
      %c0_306 = arith.constant 0 : index
      %c21 = arith.constant 21 : index
      %451 = vector.load %arg11[%c0_306, %c21] : memref<32x358xbf16, #tpu.memory_space<vmem>>, vector<32x256xbf16>
      %c1_307 = arith.constant 1 : index
      %c5_308 = arith.constant 5 : index
      %c0_309 = arith.constant 0 : index
      %c0_310 = arith.constant 0 : index
      %452 = vector.load %arg7[%c1_307, %c5_308, %c0_309, %c0_310] : memref<7x7x2x32xf32, #tpu.memory_space<vmem>>, vector<1x1x2x32xf32>
      %453 = vector.shape_cast %452 : vector<1x1x2x32xf32> to vector<2x32xf32>
      %454 = arith.truncf %453 : vector<2x32xf32> to vector<2x32xbf16>
      %cst_311 = arith.constant dense<0.000000e+00> : vector<2x256xf32>
      %455 = tpu.matmul %454, %451, %cst_311 {dimension_numbers = #tpu.dot_dimension_numbers<[1], [0], [0], [1], [0, 0, 1, 1], [], []>} : vector<2x32xbf16>, vector<32x256xbf16>, vector<2x256xf32> -> vector<2x256xf32>
      %456 = arith.addf %450, %455 : vector<2x256xf32>
      %c0_312 = arith.constant 0 : index
      %c37 = arith.constant 37 : index
      %457 = vector.load %arg11[%c0_312, %c37] : memref<32x358xbf16, #tpu.memory_space<vmem>>, vector<32x256xbf16>
      %c2_313 = arith.constant 2 : index
      %c5_314 = arith.constant 5 : index
      %c0_315 = arith.constant 0 : index
      %c0_316 = arith.constant 0 : index
      %458 = vector.load %arg7[%c2_313, %c5_314, %c0_315, %c0_316] : memref<7x7x2x32xf32, #tpu.memory_space<vmem>>, vector<1x1x2x32xf32>
      %459 = vector.shape_cast %458 : vector<1x1x2x32xf32> to vector<2x32xf32>
      %460 = arith.truncf %459 : vector<2x32xf32> to vector<2x32xbf16>
      %cst_317 = arith.constant dense<0.000000e+00> : vector<2x256xf32>
      %461 = tpu.matmul %460, %457, %cst_317 {dimension_numbers = #tpu.dot_dimension_numbers<[1], [0], [0], [1], [0, 0, 1, 1], [], []>} : vector<2x32xbf16>, vector<32x256xbf16>, vector<2x256xf32> -> vector<2x256xf32>
      %462 = arith.addf %456, %461 : vector<2x256xf32>
      %c0_318 = arith.constant 0 : index
      %c53 = arith.constant 53 : index
      %463 = vector.load %arg11[%c0_318, %c53] : memref<32x358xbf16, #tpu.memory_space<vmem>>, vector<32x256xbf16>
      %c3_319 = arith.constant 3 : index
      %c5_320 = arith.constant 5 : index
      %c0_321 = arith.constant 0 : index
      %c0_322 = arith.constant 0 : index
      %464 = vector.load %arg7[%c3_319, %c5_320, %c0_321, %c0_322] : memref<7x7x2x32xf32, #tpu.memory_space<vmem>>, vector<1x1x2x32xf32>
      %465 = vector.shape_cast %464 : vector<1x1x2x32xf32> to vector<2x32xf32>
      %466 = arith.truncf %465 : vector<2x32xf32> to vector<2x32xbf16>
      %cst_323 = arith.constant dense<0.000000e+00> : vector<2x256xf32>
      %467 = tpu.matmul %466, %463, %cst_323 {dimension_numbers = #tpu.dot_dimension_numbers<[1], [0], [0], [1], [0, 0, 1, 1], [], []>} : vector<2x32xbf16>, vector<32x256xbf16>, vector<2x256xf32> -> vector<2x256xf32>
      %468 = arith.addf %462, %467 : vector<2x256xf32>
      %c0_324 = arith.constant 0 : index
      %c69 = arith.constant 69 : index
      %469 = vector.load %arg11[%c0_324, %c69] : memref<32x358xbf16, #tpu.memory_space<vmem>>, vector<32x256xbf16>
      %c4_325 = arith.constant 4 : index
      %c5_326 = arith.constant 5 : index
      %c0_327 = arith.constant 0 : index
      %c0_328 = arith.constant 0 : index
      %470 = vector.load %arg7[%c4_325, %c5_326, %c0_327, %c0_328] : memref<7x7x2x32xf32, #tpu.memory_space<vmem>>, vector<1x1x2x32xf32>
      %471 = vector.shape_cast %470 : vector<1x1x2x32xf32> to vector<2x32xf32>
      %472 = arith.truncf %471 : vector<2x32xf32> to vector<2x32xbf16>
      %cst_329 = arith.constant dense<0.000000e+00> : vector<2x256xf32>
      %473 = tpu.matmul %472, %469, %cst_329 {dimension_numbers = #tpu.dot_dimension_numbers<[1], [0], [0], [1], [0, 0, 1, 1], [], []>} : vector<2x32xbf16>, vector<32x256xbf16>, vector<2x256xf32> -> vector<2x256xf32>
      %474 = arith.addf %468, %473 : vector<2x256xf32>
      %c0_330 = arith.constant 0 : index
      %c85 = arith.constant 85 : index
      %475 = vector.load %arg11[%c0_330, %c85] : memref<32x358xbf16, #tpu.memory_space<vmem>>, vector<32x256xbf16>
      %c5_331 = arith.constant 5 : index
      %c5_332 = arith.constant 5 : index
      %c0_333 = arith.constant 0 : index
      %c0_334 = arith.constant 0 : index
      %476 = vector.load %arg7[%c5_331, %c5_332, %c0_333, %c0_334] : memref<7x7x2x32xf32, #tpu.memory_space<vmem>>, vector<1x1x2x32xf32>
      %477 = vector.shape_cast %476 : vector<1x1x2x32xf32> to vector<2x32xf32>
      %478 = arith.truncf %477 : vector<2x32xf32> to vector<2x32xbf16>
      %cst_335 = arith.constant dense<0.000000e+00> : vector<2x256xf32>
      %479 = tpu.matmul %478, %475, %cst_335 {dimension_numbers = #tpu.dot_dimension_numbers<[1], [0], [0], [1], [0, 0, 1, 1], [], []>} : vector<2x32xbf16>, vector<32x256xbf16>, vector<2x256xf32> -> vector<2x256xf32>
      %480 = arith.addf %474, %479 : vector<2x256xf32>
      %c0_336 = arith.constant 0 : index
      %c101 = arith.constant 101 : index
      %481 = vector.load %arg11[%c0_336, %c101] : memref<32x358xbf16, #tpu.memory_space<vmem>>, vector<32x256xbf16>
      %c6_337 = arith.constant 6 : index
      %c5_338 = arith.constant 5 : index
      %c0_339 = arith.constant 0 : index
      %c0_340 = arith.constant 0 : index
      %482 = vector.load %arg7[%c6_337, %c5_338, %c0_339, %c0_340] : memref<7x7x2x32xf32, #tpu.memory_space<vmem>>, vector<1x1x2x32xf32>
      %483 = vector.shape_cast %482 : vector<1x1x2x32xf32> to vector<2x32xf32>
      %484 = arith.truncf %483 : vector<2x32xf32> to vector<2x32xbf16>
      %cst_341 = arith.constant dense<0.000000e+00> : vector<2x256xf32>
      %485 = tpu.matmul %484, %481, %cst_341 {dimension_numbers = #tpu.dot_dimension_numbers<[1], [0], [0], [1], [0, 0, 1, 1], [], []>} : vector<2x32xbf16>, vector<32x256xbf16>, vector<2x256xf32> -> vector<2x256xf32>
      %486 = arith.addf %480, %485 : vector<2x256xf32>
      %c2_i32 = arith.constant 2 : i32
      %487 = vector.broadcast %c2_i32 : i32 to vector<1x256xi32>
      %488 = arith.addi %157, %487 : vector<1x256xi32>
      %c0_i32_342 = arith.constant 0 : i32
      %489 = vector.broadcast %c0_i32_342 : i32 to vector<1x256xi32>
      %490 = arith.cmpi sge, %488, %489 : vector<1x256xi32>
      %c2_i32_343 = arith.constant 2 : i32
      %491 = vector.broadcast %c2_i32_343 : i32 to vector<1x256xi32>
      %492 = arith.addi %157, %491 : vector<1x256xi32>
      %c16_i32_344 = arith.constant 16 : i32
      %493 = vector.broadcast %c16_i32_344 : i32 to vector<1x256xi32>
      %494 = arith.cmpi slt, %492, %493 : vector<1x256xi32>
      %495 = arith.andi %490, %494 : vector<1x256xi1>
      %cst_345 = arith.constant 0.000000e+00 : f32
      %496 = vector.shape_cast %495 : vector<1x256xi1> to vector<1x256xi1>
      %497 = vector.broadcast %496 : vector<1x256xi1> to vector<2x256xi1>
      %498 = vector.broadcast %cst_345 : f32 to vector<2x256xf32>
      %499 = arith.select %497, %486, %498 : vector<2x256xi1>, vector<2x256xf32>
      %500 = arith.addf %443, %499 : vector<2x256xf32>
      %cst_346 = arith.constant 0.000000e+00 : f32
      %501 = vector.broadcast %cst_346 : f32 to vector<2x256xf32>
      %c0_347 = arith.constant 0 : index
      %c6_348 = arith.constant 6 : index
      %502 = vector.load %arg11[%c0_347, %c6_348] : memref<32x358xbf16, #tpu.memory_space<vmem>>, vector<32x256xbf16>
      %c0_349 = arith.constant 0 : index
      %c6_350 = arith.constant 6 : index
      %c0_351 = arith.constant 0 : index
      %c0_352 = arith.constant 0 : index
      %503 = vector.load %arg7[%c0_349, %c6_350, %c0_351, %c0_352] : memref<7x7x2x32xf32, #tpu.memory_space<vmem>>, vector<1x1x2x32xf32>
      %504 = vector.shape_cast %503 : vector<1x1x2x32xf32> to vector<2x32xf32>
      %505 = arith.truncf %504 : vector<2x32xf32> to vector<2x32xbf16>
      %cst_353 = arith.constant dense<0.000000e+00> : vector<2x256xf32>
      %506 = tpu.matmul %505, %502, %cst_353 {dimension_numbers = #tpu.dot_dimension_numbers<[1], [0], [0], [1], [0, 0, 1, 1], [], []>} : vector<2x32xbf16>, vector<32x256xbf16>, vector<2x256xf32> -> vector<2x256xf32>
      %507 = arith.addf %501, %506 : vector<2x256xf32>
      %c0_354 = arith.constant 0 : index
      %c22 = arith.constant 22 : index
      %508 = vector.load %arg11[%c0_354, %c22] : memref<32x358xbf16, #tpu.memory_space<vmem>>, vector<32x256xbf16>
      %c1_355 = arith.constant 1 : index
      %c6_356 = arith.constant 6 : index
      %c0_357 = arith.constant 0 : index
      %c0_358 = arith.constant 0 : index
      %509 = vector.load %arg7[%c1_355, %c6_356, %c0_357, %c0_358] : memref<7x7x2x32xf32, #tpu.memory_space<vmem>>, vector<1x1x2x32xf32>
      %510 = vector.shape_cast %509 : vector<1x1x2x32xf32> to vector<2x32xf32>
      %511 = arith.truncf %510 : vector<2x32xf32> to vector<2x32xbf16>
      %cst_359 = arith.constant dense<0.000000e+00> : vector<2x256xf32>
      %512 = tpu.matmul %511, %508, %cst_359 {dimension_numbers = #tpu.dot_dimension_numbers<[1], [0], [0], [1], [0, 0, 1, 1], [], []>} : vector<2x32xbf16>, vector<32x256xbf16>, vector<2x256xf32> -> vector<2x256xf32>
      %513 = arith.addf %507, %512 : vector<2x256xf32>
      %c0_360 = arith.constant 0 : index
      %c38 = arith.constant 38 : index
      %514 = vector.load %arg11[%c0_360, %c38] : memref<32x358xbf16, #tpu.memory_space<vmem>>, vector<32x256xbf16>
      %c2_361 = arith.constant 2 : index
      %c6_362 = arith.constant 6 : index
      %c0_363 = arith.constant 0 : index
      %c0_364 = arith.constant 0 : index
      %515 = vector.load %arg7[%c2_361, %c6_362, %c0_363, %c0_364] : memref<7x7x2x32xf32, #tpu.memory_space<vmem>>, vector<1x1x2x32xf32>
      %516 = vector.shape_cast %515 : vector<1x1x2x32xf32> to vector<2x32xf32>
      %517 = arith.truncf %516 : vector<2x32xf32> to vector<2x32xbf16>
      %cst_365 = arith.constant dense<0.000000e+00> : vector<2x256xf32>
      %518 = tpu.matmul %517, %514, %cst_365 {dimension_numbers = #tpu.dot_dimension_numbers<[1], [0], [0], [1], [0, 0, 1, 1], [], []>} : vector<2x32xbf16>, vector<32x256xbf16>, vector<2x256xf32> -> vector<2x256xf32>
      %519 = arith.addf %513, %518 : vector<2x256xf32>
      %c0_366 = arith.constant 0 : index
      %c54 = arith.constant 54 : index
      %520 = vector.load %arg11[%c0_366, %c54] : memref<32x358xbf16, #tpu.memory_space<vmem>>, vector<32x256xbf16>
      %c3_367 = arith.constant 3 : index
      %c6_368 = arith.constant 6 : index
      %c0_369 = arith.constant 0 : index
      %c0_370 = arith.constant 0 : index
      %521 = vector.load %arg7[%c3_367, %c6_368, %c0_369, %c0_370] : memref<7x7x2x32xf32, #tpu.memory_space<vmem>>, vector<1x1x2x32xf32>
      %522 = vector.shape_cast %521 : vector<1x1x2x32xf32> to vector<2x32xf32>
      %523 = arith.truncf %522 : vector<2x32xf32> to vector<2x32xbf16>
      %cst_371 = arith.constant dense<0.000000e+00> : vector<2x256xf32>
      %524 = tpu.matmul %523, %520, %cst_371 {dimension_numbers = #tpu.dot_dimension_numbers<[1], [0], [0], [1], [0, 0, 1, 1], [], []>} : vector<2x32xbf16>, vector<32x256xbf16>, vector<2x256xf32> -> vector<2x256xf32>
      %525 = arith.addf %519, %524 : vector<2x256xf32>
      %c0_372 = arith.constant 0 : index
      %c70 = arith.constant 70 : index
      %526 = vector.load %arg11[%c0_372, %c70] : memref<32x358xbf16, #tpu.memory_space<vmem>>, vector<32x256xbf16>
      %c4_373 = arith.constant 4 : index
      %c6_374 = arith.constant 6 : index
      %c0_375 = arith.constant 0 : index
      %c0_376 = arith.constant 0 : index
      %527 = vector.load %arg7[%c4_373, %c6_374, %c0_375, %c0_376] : memref<7x7x2x32xf32, #tpu.memory_space<vmem>>, vector<1x1x2x32xf32>
      %528 = vector.shape_cast %527 : vector<1x1x2x32xf32> to vector<2x32xf32>
      %529 = arith.truncf %528 : vector<2x32xf32> to vector<2x32xbf16>
      %cst_377 = arith.constant dense<0.000000e+00> : vector<2x256xf32>
      %530 = tpu.matmul %529, %526, %cst_377 {dimension_numbers = #tpu.dot_dimension_numbers<[1], [0], [0], [1], [0, 0, 1, 1], [], []>} : vector<2x32xbf16>, vector<32x256xbf16>, vector<2x256xf32> -> vector<2x256xf32>
      %531 = arith.addf %525, %530 : vector<2x256xf32>
      %c0_378 = arith.constant 0 : index
      %c86 = arith.constant 86 : index
      %532 = vector.load %arg11[%c0_378, %c86] : memref<32x358xbf16, #tpu.memory_space<vmem>>, vector<32x256xbf16>
      %c5_379 = arith.constant 5 : index
      %c6_380 = arith.constant 6 : index
      %c0_381 = arith.constant 0 : index
      %c0_382 = arith.constant 0 : index
      %533 = vector.load %arg7[%c5_379, %c6_380, %c0_381, %c0_382] : memref<7x7x2x32xf32, #tpu.memory_space<vmem>>, vector<1x1x2x32xf32>
      %534 = vector.shape_cast %533 : vector<1x1x2x32xf32> to vector<2x32xf32>
      %535 = arith.truncf %534 : vector<2x32xf32> to vector<2x32xbf16>
      %cst_383 = arith.constant dense<0.000000e+00> : vector<2x256xf32>
      %536 = tpu.matmul %535, %532, %cst_383 {dimension_numbers = #tpu.dot_dimension_numbers<[1], [0], [0], [1], [0, 0, 1, 1], [], []>} : vector<2x32xbf16>, vector<32x256xbf16>, vector<2x256xf32> -> vector<2x256xf32>
      %537 = arith.addf %531, %536 : vector<2x256xf32>
      %c0_384 = arith.constant 0 : index
      %c102 = arith.constant 102 : index
      %538 = vector.load %arg11[%c0_384, %c102] : memref<32x358xbf16, #tpu.memory_space<vmem>>, vector<32x256xbf16>
      %c6_385 = arith.constant 6 : index
      %c6_386 = arith.constant 6 : index
      %c0_387 = arith.constant 0 : index
      %c0_388 = arith.constant 0 : index
      %539 = vector.load %arg7[%c6_385, %c6_386, %c0_387, %c0_388] : memref<7x7x2x32xf32, #tpu.memory_space<vmem>>, vector<1x1x2x32xf32>
      %540 = vector.shape_cast %539 : vector<1x1x2x32xf32> to vector<2x32xf32>
      %541 = arith.truncf %540 : vector<2x32xf32> to vector<2x32xbf16>
      %cst_389 = arith.constant dense<0.000000e+00> : vector<2x256xf32>
      %542 = tpu.matmul %541, %538, %cst_389 {dimension_numbers = #tpu.dot_dimension_numbers<[1], [0], [0], [1], [0, 0, 1, 1], [], []>} : vector<2x32xbf16>, vector<32x256xbf16>, vector<2x256xf32> -> vector<2x256xf32>
      %543 = arith.addf %537, %542 : vector<2x256xf32>
      %c3_i32 = arith.constant 3 : i32
      %544 = vector.broadcast %c3_i32 : i32 to vector<1x256xi32>
      %545 = arith.addi %157, %544 : vector<1x256xi32>
      %c0_i32_390 = arith.constant 0 : i32
      %546 = vector.broadcast %c0_i32_390 : i32 to vector<1x256xi32>
      %547 = arith.cmpi sge, %545, %546 : vector<1x256xi32>
      %c3_i32_391 = arith.constant 3 : i32
      %548 = vector.broadcast %c3_i32_391 : i32 to vector<1x256xi32>
      %549 = arith.addi %157, %548 : vector<1x256xi32>
      %c16_i32_392 = arith.constant 16 : i32
      %550 = vector.broadcast %c16_i32_392 : i32 to vector<1x256xi32>
      %551 = arith.cmpi slt, %549, %550 : vector<1x256xi32>
      %552 = arith.andi %547, %551 : vector<1x256xi1>
      %cst_393 = arith.constant 0.000000e+00 : f32
      %553 = vector.shape_cast %552 : vector<1x256xi1> to vector<1x256xi1>
      %554 = vector.broadcast %553 : vector<1x256xi1> to vector<2x256xi1>
      %555 = vector.broadcast %cst_393 : f32 to vector<2x256xf32>
      %556 = arith.select %554, %543, %555 : vector<2x256xi1>, vector<2x256xf32>
      %557 = arith.addf %500, %556 : vector<2x256xf32>
      %c0_394 = arith.constant 0 : index
      %c0_395 = arith.constant 0 : index
      %558 = vector.load %arg8[%c0_394, %c0_395] : memref<2x1xf32, #tpu.memory_space<vmem>>, vector<2x1xf32>
      %559 = vector.broadcast %558 : vector<2x1xf32> to vector<2x256xf32>
      %560 = arith.addf %557, %559 : vector<2x256xf32>
      %c0_396 = arith.constant 0 : index
      %c0_397 = arith.constant 0 : index
      %c0_398 = arith.constant 0 : index
      %561 = vector.load %arg9[%c0_396, %c0_397, %c0_398] : memref<1x2x256xf32, #tpu.memory_space<vmem>>, vector<1x2x256xf32>
      %562 = vector.shape_cast %561 : vector<1x2x256xf32> to vector<2x256xf32>
      %563 = vector.shape_cast %560 : vector<2x256xf32> to vector<1x2x256xf32>
      tpu.vector_store %arg9[%c0_396, %c0_397, %c0_398], %563 {strides = array<i32>} : memref<1x2x256xf32, #tpu.memory_space<vmem>>, vector<1x2x256xf32>,
    } else {
    }
    %c256_i32 = arith.constant 256 : i32
    %3 = arith.muli %arg1, %c256_i32 : i32
    %4 = tpu.assume_multiple %3, 128 : i32
    %c0 = arith.constant 0 : index
    %c0_1 = arith.constant 0 : index
    %5 = arith.index_cast %4 : i32 to index
    %6 = vector.load %arg9[%c0, %c0_1, %5] : memref<1x2x256xf32, #tpu.memory_space<vmem>>, vector<1x2x256xf32>
    %7 = vector.shape_cast %6 : vector<1x2x256xf32> to vector<2x256xf32>
    %c0_2 = arith.constant 0 : index
    %c0_3 = arith.constant 0 : index
    %8 = vector.load %arg4[%c0_2, %c0_3] : memref<2x256xf32, #tpu.memory_space<vmem>>, vector<2x256xf32>
    %9 = vector.extract_strided_slice %8 {offsets = [0, 0], sizes = [1, 256], strides = [1, 1]} : vector<2x256xf32> to vector<1x256xf32>
    %10 = vector.extract_strided_slice %7 {offsets = [0, 0], sizes = [1, 256], strides = [1, 1]} : vector<2x256xf32> to vector<1x256xf32>
    %cst = arith.constant 0.13333334 : f32
    %11 = vector.broadcast %cst : f32 to vector<1x256xf32>
    %12 = arith.mulf %11, %10 : vector<1x256xf32>
    %13 = arith.addf %9, %12 : vector<1x256xf32>
    %14 = vector.extract_strided_slice %8 {offsets = [1, 0], sizes = [1, 256], strides = [1, 1]} : vector<2x256xf32> to vector<1x256xf32>
    %15 = vector.extract_strided_slice %7 {offsets = [1, 0], sizes = [1, 256], strides = [1, 1]} : vector<2x256xf32> to vector<1x256xf32>
    %cst_4 = arith.constant 0.13333334 : f32
    %16 = vector.broadcast %cst_4 : f32 to vector<1x256xf32>
    %17 = arith.mulf %16, %15 : vector<1x256xf32>
    %18 = arith.addf %14, %17 : vector<1x256xf32>
    %cst_5 = arith.constant 1.000000e+00 : f32
    %19 = vector.broadcast %cst_5 : f32 to vector<1x256xf32>
    %20 = arith.addf %13, %19 : vector<1x256xf32>
    %cst_6 = arith.constant 8.000000e+00 : f32
    %21 = vector.broadcast %cst_6 : f32 to vector<1x256xf32>
    %22 = arith.mulf %20, %21 : vector<1x256xf32>
    %cst_7 = arith.constant 5.000000e-01 : f32
    %23 = vector.broadcast %cst_7 : f32 to vector<1x256xf32>
    %24 = arith.subf %22, %23 : vector<1x256xf32>
    %cst_8 = arith.constant 1.000000e+00 : f32
    %25 = vector.broadcast %cst_8 : f32 to vector<1x256xf32>
    %26 = arith.addf %18, %25 : vector<1x256xf32>
    %cst_9 = arith.constant 8.000000e+00 : f32
    %27 = vector.broadcast %cst_9 : f32 to vector<1x256xf32>
    %28 = arith.mulf %26, %27 : vector<1x256xf32>
    %cst_10 = arith.constant 5.000000e-01 : f32
    %29 = vector.broadcast %cst_10 : f32 to vector<1x256xf32>
    %30 = arith.subf %28, %29 : vector<1x256xf32>
    %31 = math.floor %24 : vector<1x256xf32>
    %32 = math.floor %30 : vector<1x256xf32>
    %33 = arith.subf %24, %31 : vector<1x256xf32>
    %34 = arith.subf %30, %32 : vector<1x256xf32>
    %35 = arith.fptosi %31 : vector<1x256xf32> to vector<1x256xi32>
    %36 = arith.fptosi %32 : vector<1x256xf32> to vector<1x256xi32>
    %c1_i32 = arith.constant 1 : i32
    %37 = vector.broadcast %c1_i32 : i32 to vector<1x256xi32>
    %38 = arith.addi %35, %37 : vector<1x256xi32>
    %c1_i32_11 = arith.constant 1 : i32
    %39 = vector.broadcast %c1_i32_11 : i32 to vector<1x256xi32>
    %40 = arith.addi %36, %39 : vector<1x256xi32>
    %41 = tpu.iota {dimensions = array<i32: 0>} : vector<16x1xi32>
    %42 = tpu.iota {dimensions = array<i32: 0>} : vector<16x1xi32>
    %43 = vector.broadcast %41 : vector<16x1xi32> to vector<16x256xi32>
    %44 = vector.broadcast %35 : vector<1x256xi32> to vector<16x256xi32>
    %45 = arith.cmpi eq, %43, %44 : vector<16x256xi32>
    %cst_12 = arith.constant 1.000000e+00 : f32
    %46 = vector.broadcast %cst_12 : f32 to vector<1x256xf32>
    %47 = arith.subf %46, %33 : vector<1x256xf32>
    %cst_13 = arith.constant 0.000000e+00 : f32
    %48 = vector.shape_cast %47 : vector<1x256xf32> to vector<1x256xf32>
    %49 = vector.broadcast %48 : vector<1x256xf32> to vector<16x256xf32>
    %50 = vector.broadcast %cst_13 : f32 to vector<16x256xf32>
    %51 = arith.select %45, %49, %50 : vector<16x256xi1>, vector<16x256xf32>
    %52 = vector.broadcast %41 : vector<16x1xi32> to vector<16x256xi32>
    %53 = vector.broadcast %38 : vector<1x256xi32> to vector<16x256xi32>
    %54 = arith.cmpi eq, %52, %53 : vector<16x256xi32>
    %cst_14 = arith.constant 0.000000e+00 : f32
    %55 = vector.shape_cast %33 : vector<1x256xf32> to vector<1x256xf32>
    %56 = vector.broadcast %55 : vector<1x256xf32> to vector<16x256xf32>
    %57 = vector.broadcast %cst_14 : f32 to vector<16x256xf32>
    %58 = arith.select %54, %56, %57 : vector<16x256xi1>, vector<16x256xf32>
    %59 = arith.addf %51, %58 : vector<16x256xf32>
    %60 = vector.broadcast %42 : vector<16x1xi32> to vector<16x256xi32>
    %61 = vector.broadcast %36 : vector<1x256xi32> to vector<16x256xi32>
    %62 = arith.cmpi eq, %60, %61 : vector<16x256xi32>
    %cst_15 = arith.constant 1.000000e+00 : f32
    %63 = vector.broadcast %cst_15 : f32 to vector<1x256xf32>
    %64 = arith.subf %63, %34 : vector<1x256xf32>
    %cst_16 = arith.constant 0.000000e+00 : f32
    %65 = vector.shape_cast %64 : vector<1x256xf32> to vector<1x256xf32>
    %66 = vector.broadcast %65 : vector<1x256xf32> to vector<16x256xf32>
    %67 = vector.broadcast %cst_16 : f32 to vector<16x256xf32>
    %68 = arith.select %62, %66, %67 : vector<16x256xi1>, vector<16x256xf32>
    %69 = vector.broadcast %42 : vector<16x1xi32> to vector<16x256xi32>
    %70 = vector.broadcast %40 : vector<1x256xi32> to vector<16x256xi32>
    %71 = arith.cmpi eq, %69, %70 : vector<16x256xi32>
    %cst_17 = arith.constant 0.000000e+00 : f32
    %72 = vector.shape_cast %34 : vector<1x256xf32> to vector<1x256xf32>
    %73 = vector.broadcast %72 : vector<1x256xf32> to vector<16x256xf32>
    %74 = vector.broadcast %cst_17 : f32 to vector<16x256xf32>
    %75 = arith.select %71, %73, %74 : vector<16x256xi1>, vector<16x256xf32>
    %76 = arith.addf %68, %75 : vector<16x256xf32>
    %c0_18 = arith.constant 0 : index
    %c0_19 = arith.constant 0 : index
    %c0_20 = arith.constant 0 : index
    %77 = vector.load %arg3[%c0_18, %c0_19, %c0_20] : memref<1x48x16xbf16, #tpu.memory_space<vmem>>, vector<1x48x16xbf16>
    %78 = vector.shape_cast %77 : vector<1x48x16xbf16> to vector<48x16xbf16>
    %79 = arith.truncf %59 : vector<16x256xf32> to vector<16x256xbf16>
    %cst_21 = arith.constant dense<0.000000e+00> : vector<48x256xf32>
    %80 = tpu.matmul %78, %79, %cst_21 {dimension_numbers = #tpu.dot_dimension_numbers<[1], [0], [0], [1], [0, 0, 1, 1], [], []>} : vector<48x16xbf16>, vector<16x256xbf16>, vector<48x256xf32> -> vector<48x256xf32>
    %81 = vector.extract_strided_slice %80 {offsets = [0, 0], sizes = [16, 256], strides = [1, 1]} : vector<48x256xf32> to vector<16x256xf32>
    %82 = arith.mulf %81, %76 : vector<16x256xf32>
    %cst_22 = arith.constant dense<0.000000e+00> : vector<256xf32>
    %83 = vector.multi_reduction <add>, %82, %cst_22 [0] : vector<16x256xf32> to vector<256xf32>
    %84 = vector.shape_cast %83 : vector<256xf32> to vector<1x256xf32>
    %c0_23 = arith.constant 0 : index
    %c0_24 = arith.constant 0 : index
    %c0_25 = arith.constant 0 : index
    %85 = vector.load %arg10[%c0_23, %c0_24, %c0_25] : memref<1x3x256xf32, #tpu.memory_space<vmem>>, vector<1x1x256xf32>
    %86 = vector.shape_cast %85 : vector<1x1x256xf32> to vector<1x256xf32>
    %87 = vector.shape_cast %84 : vector<1x256xf32> to vector<1x1x256xf32>
    tpu.vector_store %arg10[%c0_23, %c0_24, %c0_25], %87 {strides = array<i32>} : memref<1x3x256xf32, #tpu.memory_space<vmem>>, vector<1x1x256xf32>,
    %88 = vector.extract_strided_slice %80 {offsets = [16, 0], sizes = [16, 256], strides = [1, 1]} : vector<48x256xf32> to vector<16x256xf32>
    %89 = arith.mulf %88, %76 : vector<16x256xf32>
    %cst_26 = arith.constant dense<0.000000e+00> : vector<256xf32>
    %90 = vector.multi_reduction <add>, %89, %cst_26 [0] : vector<16x256xf32> to vector<256xf32>
    %91 = vector.shape_cast %90 : vector<256xf32> to vector<1x256xf32>
    %c0_27 = arith.constant 0 : index
    %c1 = arith.constant 1 : index
    %c0_28 = arith.constant 0 : index
    %92 = vector.load %arg10[%c0_27, %c1, %c0_28] : memref<1x3x256xf32, #tpu.memory_space<vmem>>, vector<1x1x256xf32>
    %93 = vector.shape_cast %92 : vector<1x1x256xf32> to vector<1x256xf32>
    %94 = vector.shape_cast %91 : vector<1x256xf32> to vector<1x1x256xf32>
    tpu.vector_store %arg10[%c0_27, %c1, %c0_28], %94 {strides = array<i32>} : memref<1x3x256xf32, #tpu.memory_space<vmem>>, vector<1x1x256xf32>,
    %95 = vector.extract_strided_slice %80 {offsets = [32, 0], sizes = [16, 256], strides = [1, 1]} : vector<48x256xf32> to vector<16x256xf32>
    %96 = arith.mulf %95, %76 : vector<16x256xf32>
    %cst_29 = arith.constant dense<0.000000e+00> : vector<256xf32>
    %97 = vector.multi_reduction <add>, %96, %cst_29 [0] : vector<16x256xf32> to vector<256xf32>
    %98 = vector.shape_cast %97 : vector<256xf32> to vector<1x256xf32>
    %c0_30 = arith.constant 0 : index
    %c2 = arith.constant 2 : index
    %c0_31 = arith.constant 0 : index
    %99 = vector.load %arg10[%c0_30, %c2, %c0_31] : memref<1x3x256xf32, #tpu.memory_space<vmem>>, vector<1x1x256xf32>
    %100 = vector.shape_cast %99 : vector<1x1x256xf32> to vector<1x256xf32>
    %101 = vector.shape_cast %98 : vector<1x256xf32> to vector<1x1x256xf32>
    tpu.vector_store %arg10[%c0_30, %c2, %c0_31], %101 {strides = array<i32>} : memref<1x3x256xf32, #tpu.memory_space<vmem>>, vector<1x1x256xf32>,
    return
  }
  func.func @transform_0(%arg0: i32, %arg1: i32) -> (i32, i32, i32) {
    %c0_i32 = arith.constant 0 : i32
    %c0_i32_0 = arith.constant 0 : i32
    %c0_i32_1 = arith.constant 0 : i32
    return %arg0, %c0_i32, %c0_i32_0 : i32, i32, i32
  }
  func.func @transform_1(%arg0: i32, %arg1: i32) -> (i32, i32, i32) {
    %c0_i32 = arith.constant 0 : i32
    %c0_i32_0 = arith.constant 0 : i32
    %c0_i32_1 = arith.constant 0 : i32
    return %arg0, %c0_i32, %c0_i32_0 : i32, i32, i32
  }
  func.func @transform_2(%arg0: i32, %arg1: i32) -> (i32, i32) {
    %c0_i32 = arith.constant 0 : i32
    %c0_i32_0 = arith.constant 0 : i32
    return %c0_i32, %arg1 : i32, i32
  }
  func.func @transform_3(%arg0: i32, %arg1: i32) -> (i32, i32) {
    %c0_i32 = arith.constant 0 : i32
    %c0_i32_0 = arith.constant 0 : i32
    %c0_i32_1 = arith.constant 0 : i32
    return %c0_i32, %c0_i32_0 : i32, i32
  }
  func.func @transform_4(%arg0: i32, %arg1: i32) -> (i32, i32) {
    %c0_i32 = arith.constant 0 : i32
    %c0_i32_0 = arith.constant 0 : i32
    %c0_i32_1 = arith.constant 0 : i32
    return %c0_i32, %c0_i32_0 : i32, i32
  }
  func.func @transform_5(%arg0: i32, %arg1: i32) -> (i32, i32, i32, i32) {
    %c0_i32 = arith.constant 0 : i32
    %c0_i32_0 = arith.constant 0 : i32
    %c0_i32_1 = arith.constant 0 : i32
    %c0_i32_2 = arith.constant 0 : i32
    %c0_i32_3 = arith.constant 0 : i32
    return %c0_i32, %c0_i32_0, %c0_i32_1, %c0_i32_2 : i32, i32, i32, i32
  }
  func.func @transform_6(%arg0: i32, %arg1: i32) -> (i32, i32) {
    %c0_i32 = arith.constant 0 : i32
    %c0_i32_0 = arith.constant 0 : i32
    %c0_i32_1 = arith.constant 0 : i32
    return %c0_i32, %c0_i32_0 : i32, i32
  }
  func.func @transform_7(%arg0: i32, %arg1: i32) -> (i32, i32, i32) {
    %c0_i32 = arith.constant 0 : i32
    %c0_i32_0 = arith.constant 0 : i32
    %c0_i32_1 = arith.constant 0 : i32
    return %arg0, %c0_i32, %c0_i32_0 : i32, i32, i32
  }
  func.func @transform_8(%arg0: i32, %arg1: i32) -> (i32, i32, i32) {
    %c0_i32 = arith.constant 0 : i32
    %c0_i32_0 = arith.constant 0 : i32
    return %arg0, %c0_i32, %arg1 : i32, i32, i32
  }
}

</mosaic_0001>

<bundles_post_ra>
// kernel: tile.8
= control target key start
LH: loop header
LB: loop body
LE: loop exit
PB: predicated region body
PF: predicated region fallthrough
CT: control target
= control target key end

     0   :  { %s28_s0 = inlined_call_operand.vmem [shape: f32[16], index: 0, kind: input, shape index: {}]   ;;  %s29_s1 = inlined_call_operand.vmem [shape: f32[16,16], index: 1, kind: output, shape index: {}]  }
   0x1   :  { %v4_v0 = vld [vmem:[%s28_s0] ss:$0 sm:$0xff] }
   0x2   :  { %5 = vst [vmem:[%s29_s1] sm:$0xff] %v4_v0  ;;  %8 = vst [vmem:[%s29_s1 + $0x8] sm:$0xff] %v4_v0 }

// kernel: warping_net_forward.1
= control target key start
LH: loop header
LB: loop body
LE: loop exit
PB: predicated region body
PF: predicated region fallthrough
CT: control target
= control target key end

     0   :  { %s5185_s27 = smov 0   ;;  %s5187_s28 = smov 0   ;;  %s7177_s0 = inlined_call_operand.vmem [shape: f32[2,32,256], index: 0, kind: input, shape index: {}]   ;;  %s7178_s1 = inlined_call_operand.vmem [shape: bf16[2,48,16], index: 1, kind: input, shape index: {}]   ;;  %s7179_s2 = inlined_call_operand.vmem [shape: f32[2,256], index: 2, kind: input, shape index: {}]   ;;  %s7180_s3 = inlined_call_operand.vmem [shape: f32[32,1], index: 3, kind: input, shape index: {}]   ;;  %s7181_s4 = inlined_call_operand.vmem [shape: f32[32,1], index: 4, kind: input, shape index: {}]   ;;  %s7182_s5 = inlined_call_operand.vmem [shape: f32[7,7,2,32], index: 5, kind: input, shape index: {}]   ;;  %s7183_s6 = inlined_call_operand.vmem [shape: f32[2,1], index: 6, kind: input, shape index: {}]   ;;  %s7184_s7 = inlined_call_operand.vmem [shape: f32[2,2,256], index: 7, kind: output, shape index: {0}]   ;;  %s7185_s8 = inlined_call_operand.vmem [shape: f32[2,3,256], index: 8, kind: output, shape index: {1}]  }
   0x1   :  { %s5189_s29 = smov 0  }
   0x2 LB: > { %s31_s30 = sadd.s32 1, %s5082_s28  ;;  %p4703_p0 = scmp.ge.s32.totalorder %s5086_s29, 1  ;;  %s5086_s29 = sphi %s5189_s29, %s19_s29   ;;  %s5082_s28 = sphi %s5187_s28, %s7395_s28   ;;  %s5078_s27 = sphi %s5185_s27, %s7394_s27  }
   0x3   : > { %p33_p1 = scmp.ge.s32.totalorder %s31_s30, 2  ;;  %p300_p2 = scmp.lt.s32.totalorder %s5086_s29, 3 }
   0x5   : > { %s7397_s30 = smov (%p33_p1, %s31_s30), 0  ;;  %p301_p3 = pnand %p4703_p0, %p300_p2 }
   0x7   : > { %304 = sbr.rel (%p301_p3) target bundleno = 1661 (0x67d), region = 48 }
   0xe   : > { %p353_p4 = scmp.lt.s32.totalorder %s5078_s27, 1  ;;  %v468_v0 = vld [vmem:[%s7180_s3] sm:$0xff]  ;;  %v7208_v1 = vmov 0   ;;  %v469_v2 = vld [vmem:[%s7180_s3 + $0x8] sm:$0xff]  ;;  %v470_v19 = vld [vmem:[%s7180_s3 + $0x10] sm:$0xff]  ;;  %vm556_vm0 = vcmask 416768  }
   0xf   : > { %5050 = vset.pattern.permute.xlu1 %v7208_v1  ;;  %5051 = vset.pattern.permute.xlu0 %v7208_v1  ;;  %v501_v10 = vld [vmem:[%s7181_s4 + $0x8] sm:$0xff]  ;;  %v471_v28 = vld [vmem:[%s7180_s3 + $0x18] sm:$0xff]  ;;  %v502_v35 = vld [vmem:[%s7181_s4 + $0x10] sm:$0xff]  ;;  %557 = vst.msk [vmem:[#allocation2] sm:$0xff] %vm556_vm0, %v7208_v1  ;;  %s5089_s17 = smov 0.0   ;;  %s5090_s21 = smov 51  }
  0x10   : > { %s7399_s27 = smov (!%p353_p4, %s5078_s27), 1  ;;  %474 = vperm.xlu1 %5050, %v468_v0   ;;  %807 = vmatprep.mubr.bf16.mxu0 %v7208_v1  ;;  %v503_v37 = vld [vmem:[%s7181_s4 + $0x18] sm:$0xff]  ;;  %v500_v38 = vld [vmem:[%s7181_s4] sm:$0xff]  ;;  %558 = vst.msk [vmem:[#allocation2 + $0x18] sm:$0xff] %vm556_vm0, %v7208_v1  ;;  %vm559_vm7 = vcmask 834968   ;;  %vm587_vm10 = vcmask 1047960  }
  0x11   : > { %695 = vmatprep.mubr.bf16.mxu1 %v7208_v1  ;;  %s4820_s13 = sshll.u32 %s7399_s27, 6  ;;  %560 = vst.msk [vmem:[#allocation2 + $0x10] sm:$0xff] %vm559_vm7, %v7208_v1  ;;  %561 = vst.msk [vmem:[#allocation2 + $0x28] sm:$0xff] %vm559_vm7, %v7208_v1  ;;  %s5091_s22 = smov 96   ;;  %vm763_vm11 = vcmask 785408   ;;  %vm833_vm12 = vcmask 654336  }
  0x12   : > { %s5219_s16 = scalar_lea.vmem %s7177_s0, %s4820_s13  ;;  %s5092_s23 = smov 80   ;;  %vm659_vm13 = vcmask 261120   ;;  %vm903_vm14 = vcmask 523264   ;;  %vm650_vm15 = vcmask 916480   ;;  %vm1767_vm7 = vcmask 769024  }
  0x13   : > { %v5222_v3 = vld [vmem:[%s5219_s16] sm:$0xff]  ;;  %v5225_v4 = vld [vmem:[%s5219_s16 + $0x8] sm:$0xff]  ;;  %v5228_v5 = vld [vmem:[%s5219_s16 + $0x10] sm:$0xff]  ;;  %s5093_s24 = smov 64   ;;  %s5094_s25 = smov 48  }
  0x14   : > { %479 = vperm.xlu1 %5050, %v469_v2   ;;  %v397_v6 = vadd.f32 %v5225_v4, %v5222_v3  ;;  %v416_v7 = vmul.f32 %v5222_v3, %v5222_v3  ;;  %v417_v8 = vmul.f32 %v5225_v4, %v5225_v4  ;;  %v418_v9 = vmul.f32 %v5228_v5, %v5228_v5  ;;  %v5242_v11 = vld [vmem:[%s5219_s16 + $0x18] sm:$0xff]  ;;  %v5248_v15 = vld [vmem:[%s5219_s16 + $0x20] sm:$0xff]  ;;  %v5257_v20 = vld [vmem:[%s5219_s16 + $0x28] sm:$0xff]  ;;  %s5095_s26 = smov 32   ;;  %s5096_s9 = smov 110  }
  0x15   : > { %v419_v13 = vmul.f32 %v5242_v11, %v5242_v11  ;;  %v420_v17 = vmul.f32 %v5248_v15, %v5248_v15  ;;  %v421_v22 = vmul.f32 %v5257_v20, %v5257_v20  ;;  %v5263_v24 = vld [vmem:[%s5219_s16 + $0x30] sm:$0xff]  ;;  %v5272_v29 = vld [vmem:[%s5219_s16 + $0x38] sm:$0xff]  ;;  %s5097_s10 = smov 112  }
  0x16   : > { %v398_v12 = vadd.f32 %v397_v6, %v5228_v5  ;;  %v424_v14 = vadd.f32 %v417_v8, %v416_v7  ;;  %v422_v26 = vmul.f32 %v5263_v24, %v5263_v24  ;;  %v423_v31 = vmul.f32 %v5272_v29, %v5272_v29 }
  0x18   : > { %511 = vperm.xlu1 %5050, %v501_v10   ;;  %v399_v16 = vadd.f32 %v398_v12, %v5242_v11  ;;  %v425_v18 = vadd.f32 %v424_v14, %v418_v9 }
  0x1a   : > { %v400_v21 = vadd.f32 %v399_v16, %v5248_v15  ;;  %v426_v23 = vadd.f32 %v425_v18, %v419_v13 }
  0x1c   : > { %484 = vperm.xlu1 %5050, %v470_v19   ;;  %v401_v25 = vadd.f32 %v400_v21, %v5257_v20  ;;  %v427_v27 = vadd.f32 %v426_v23, %v420_v17 }
  0x1e   : > { %v402_v30 = vadd.f32 %v401_v25, %v5263_v24  ;;  %v428_v32 = vadd.f32 %v427_v27, %v421_v22 }
  0x20   : > { %489 = vperm.xlu1 %5050, %v471_v28   ;;  %v403_v33 = vadd.f32 %v402_v30, %v5272_v29  ;;  %v429_v34 = vadd.f32 %v428_v32, %v422_v26 }
  0x22   : > { %404 = vadd.xlane.f32.xlu0 %v403_v33  ;;  %v430_v36 = vadd.f32 %v429_v34, %v423_v31 }
  0x24   : > { %516 = vperm.xlu1 %5050, %v502_v35  }
  0x26   : > { %431 = vadd.xlane.f32.xlu0 %v430_v36 }
  0x28   : > { %521 = vperm.xlu1 %5050, %v503_v37  }
  0x3c   : > { %506 = vperm.xlu0 %5051, %v500_v38  }
  0x8f   : > { %v475_v55 = vpop.permute.xlu1 %474 }
  0x93   : > { %v480_v56 = vpop.permute.xlu1 %479 }
  0x97   : > { %v512_v57 = vpop.permute.xlu1 %511 }
  0x9b   : > { %v485_v58 = vpop.permute.xlu1 %484 }
  0x9f   : > { %v490_v60 = vpop.permute.xlu1 %489 }
  0xa3   : > { %v517_v10 = vpop.permute.xlu1 %516 }
  0xaf   : > { %v405_v39 = vpop.xlane.xlu0 %404 }
  0xb0   : > { %v406_v40 = vrot.slane %v405_v39, 4 }
  0xb2   : > { %v407_v41 = vadd.f32 %v406_v40, %v405_v39 }
  0xb3   : > { %v432_v42 = vpop.xlane.xlu0 %431 }
  0xb4   : > { %v433_v43 = vrot.slane %v432_v42, 4  ;;  %v408_v44 = vrot.slane %v407_v41, 2 }
  0xb6   : > { %v434_v45 = vadd.f32 %v433_v43, %v432_v42  ;;  %v409_v46 = vadd.f32 %v408_v44, %v407_v41 }
  0xb8   : > { %v410_v47 = vrot.slane %v409_v46, 1  ;;  %v435_v48 = vrot.slane %v434_v45, 2 }
  0xba   : > { %v411_v49 = vadd.f32 %v410_v47, %v409_v46  ;;  %v436_v50 = vadd.f32 %v435_v48, %v434_v45 }
  0xbb   : > { %v507_v16 = vpop.permute.xlu0 %506 }
  0xbc   : > { %4966 = vpush %v411_v49  ;;  %v437_v51 = vrot.slane %v436_v50, 1 }
  0xbe   : > { %v438_v52 = vadd.f32 %v437_v51, %v436_v50 }
  0xc0   : > { %4968 = vpush %v438_v52 }
  0xed   : > { %s4967_s11 = spop %4966 }
  0xee   : > { %s415_s12 = smul.f32 0.00012207031, %s4967_s11  ;;  %s5098_s11 = smov 126  }
  0xf0   : > { %s443_s13 = smul.f32 %s415_s12, %s415_s12  ;;  %v446_v59 = vstv %s415_s12  ;;  %s5099_s12 = smov 111  }
  0xf1   : > { %s4969_s14 = spop %4968  ;;  %v447_v61 = vsub.f32 %v5222_v3, %v446_v59  ;;  %v448_v62 = vsub.f32 %v5225_v4, %v446_v59  ;;  %v449_v63 = vsub.f32 %v5228_v5, %v446_v59  ;;  %v450_v0 = vsub.f32 %v5242_v11, %v446_v59 }
  0xf2   : > { %s442_s15 = smul.f32 0.00012207031, %s4969_s14  ;;  %v451_v2 = vsub.f32 %v5248_v15, %v446_v59  ;;  %v453_v7 = vsub.f32 %v5263_v24, %v446_v59  ;;  %v452_v8 = vsub.f32 %v5257_v20, %v446_v59  ;;  %v454_v9 = vsub.f32 %v5272_v29, %v446_v59  ;;  %v522_v29 = vpop.permute.xlu1 %521  ;;  %s5101_s14 = smov 127  }
  0xf4   : > { %s444_s16 = ssub.f32 %s442_s15, %s443_s13  ;;  %s5100_s13 = smov 94  }
  0xf5   : > { %s5102_s15 = smov 78  }
  0xf6   : > { %s445_s18 = smax.f32 %s5089_s17, %s444_s16  ;;  %s5103_s16 = smov 95  }
  0xf7   : > { %s455_s19 = sadd.f32 1e-05, %s445_s18  ;;  %s7188_s17 = smov 62  }
  0xf8   : > { %s5105_s18 = smov 79  }
  0xf9   : > { %v456_v53 = vstv %s455_s19  ;;  %s7186_s19 = smov 46  }
  0xfa   : > { %5055 = vrsqrt.f32 %v456_v53 }
 0x104   : > { %v5056_v54 = vpop.eup %5055 }
 0x105   : > { %4970 = vpush %v5056_v54 }
 0x136   : > { %s4971_s20 = spop %4970 }
 0x137   : > { %v459_v6 = vstv %s4971_s20  ;;  %s7192_s20 = smov 63  }
 0x138   : > { %v460_v12 = vmul.f32 %v459_v6, %v447_v61  ;;  %v461_v13 = vmul.f32 %v459_v6, %v448_v62  ;;  %v462_v3 = vmul.f32 %v459_v6, %v449_v63  ;;  %v463_v14 = vmul.f32 %v459_v6, %v450_v0 }
 0x139   : > { %v464_v4 = vmul.f32 %v459_v6, %v451_v2  ;;  %v466_v17 = vmul.f32 %v459_v6, %v453_v7  ;;  %v465_v5 = vmul.f32 %v459_v6, %v452_v8  ;;  %v467_v18 = vmul.f32 %v459_v6, %v454_v9 }
 0x13a   : > { %v492_v11 = vmul.f32 %v475_v55, %v460_v12  ;;  %v493_v19 = vmul.f32 %v475_v55, %v461_v13  ;;  %v494_v15 = vmul.f32 %v480_v56, %v462_v3  ;;  %v495_v21 = vmul.f32 %v480_v56, %v463_v14 }
 0x13b   : > { %v496_v22 = vmul.f32 %v485_v58, %v464_v4  ;;  %v498_v23 = vmul.f32 %v490_v60, %v466_v17  ;;  %v497_v27 = vmul.f32 %v485_v58, %v465_v5  ;;  %v499_v28 = vmul.f32 %v490_v60, %v467_v18 }
 0x13c   : > { %v524_v24 = vadd.f32 %v507_v16, %v492_v11  ;;  %v525_v20 = vadd.f32 %v507_v16, %v493_v19  ;;  %v526_v25 = vadd.f32 %v512_v57, %v494_v15  ;;  %v527_v26 = vadd.f32 %v512_v57, %v495_v21 }
 0x13d   : > { %v528_v31 = vadd.f32 %v517_v10, %v496_v22  ;;  %v530_v35 = vadd.f32 %v522_v29, %v498_v23  ;;  %v529_v39 = vadd.f32 %v517_v10, %v497_v27  ;;  %v531_v40 = vadd.f32 %v522_v29, %v499_v28 }
 0x13e   : > { %v540_v30 = vmul.f32 0.1, %v524_v24  ;;  %vm532_vm1 = vcmp.ge.f32.partialorder %v524_v24, 0.0  ;;  %vm534_vm2 = vcmp.ge.f32.partialorder %v526_v25, 0.0  ;;  %v541_v32 = vmul.f32 0.1, %v525_v20 }
 0x13f   : > { %v542_v33 = vmul.f32 0.1, %v526_v25  ;;  %v543_v34 = vmul.f32 0.1, %v527_v26  ;;  %vm533_vm3 = vcmp.ge.f32.partialorder %v525_v20, 0.0  ;;  %vm535_vm4 = vcmp.ge.f32.partialorder %v527_v26, 0.0 }
 0x140   : > { %v548_v36 = vsel %vm532_vm1, %v524_v24, %v540_v30  ;;  %v549_v41 = vsel %vm533_vm3, %v525_v20, %v541_v32  ;;  %v544_v43 = vmul.f32 0.1, %v528_v31  ;;  %v546_v44 = vmul.f32 0.1, %v530_v35 }
 0x141   : > { %v550_v37 = vsel %vm534_vm2, %v526_v25, %v542_v33  ;;  %v551_v42 = vsel %vm535_vm4, %v527_v26, %v543_v34  ;;  %vm536_vm5 = vcmp.ge.f32.partialorder %v528_v31, 0.0  ;;  %vm538_vm6 = vcmp.ge.f32.partialorder %v530_v35, 0.0 }
 0x142   : > { %v562_v38 = vpack.c.bf16 %v550_v37, %v548_v36  ;;  %v563_v45 = vpack.c.bf16 %v551_v42, %v549_v41  ;;  %v552_v46 = vsel %vm536_vm5, %v528_v31, %v544_v43  ;;  %v554_v47 = vsel %vm538_vm6, %v530_v35, %v546_v44 }
 0x143   : > { %v545_v48 = vmul.f32 0.1, %v529_v39  ;;  %v547_v49 = vmul.f32 0.1, %v531_v40  ;;  %vm537_vm8 = vcmp.ge.f32.partialorder %v529_v39, 0.0  ;;  %vm539_vm9 = vcmp.ge.f32.partialorder %v531_v40, 0.0 }
 0x144   : > { %570 = vrot.lane.b32.xlu1 %v562_v38, %s5090_s21  ;;  %v564_v50 = vpack.c.bf16 %v554_v47, %v552_v46  ;;  %vm1132_vm1 = vcmask 908288   ;;  %vm1197_vm2 = vcmask 1039360   ;;  %vm1634_vm3 = vcmask 900096  }
 0x145   : > { %v553_v51 = vsel %vm537_vm8, %v529_v39, %v545_v48  ;;  %v555_v52 = vsel %vm539_vm9, %v531_v40, %v547_v49  ;;  %vm1265_vm4 = vcmask 777216   ;;  %vm1699_vm5 = vcmask 1031168  }
 0x146   : > { %v565_v53 = vpack.c.bf16 %v555_v52, %v553_v51  ;;  %vm1335_vm6 = vcmask 646144   ;;  %vm1405_vm8 = vcmask 515072   ;;  %vm1837_vm9 = vcmask 637952  }
 0x148   : > { %572 = vrot.lane.b32.xlu1 %v563_v45, %s5090_s21 }
 0x14c   : > { %574 = vrot.lane.b32.xlu1 %v564_v50, %s5090_s21 }
 0x150   : > { %576 = vrot.lane.b32.xlu1 %v565_v53, %s5090_s21  ;;  %s7190_s21 = smov 30  }
 0x1b6   : > { %v571_v54 = vpop.permute.xlu1 %570 }
 0x1b7   : > { %588 = vst.msk [vmem:[#allocation2] sm:$0xff] %vm587_vm10, %v571_v54 }
 0x1ba   : > { %v573_v55 = vpop.permute.xlu1 %572 }
 0x1bb   : > { %v5302_v56 = vsel %vm556_vm0, %v571_v54, %v573_v55  ;;  %590 = vst.msk [vmem:[#allocation2 + $0x10] sm:$0xff] %vm556_vm0, %v573_v55 }
 0x1bc   : > { %589 = vst [vmem:[#allocation2 + $0x8] sm:$0xff] %v5302_v56 }
 0x1be   : > { %v5306_v57 = vld [vmem:[#allocation2] sm:$0xff]  ;;  %v575_v58 = vpop.permute.xlu1 %574 }
 0x1bf   : > { %591 = vst.msk [vmem:[#allocation2 + $0x18] sm:$0xff] %vm587_vm10, %v575_v58  ;;  %751 = vrot.lane.b32.xlu0 %v5306_v57, %s5091_s22  ;;  %vm1475_vm10 = vcmask 384000  }
 0x1c2   : > { %v5310_v59 = vld [vmem:[#allocation2 + $0x10] sm:$0xff]  ;;  %v577_v60 = vpop.permute.xlu1 %576 }
 0x1c3   : > { %v5313_v61 = vsel %vm556_vm0, %v575_v58, %v577_v60  ;;  %593 = vst.msk [vmem:[#allocation2 + $0x28] sm:$0xff] %vm556_vm0, %v577_v60  ;;  %755 = vrot.lane.b32.xlu1 %v5310_v59, %s5091_s22  ;;  %vm973_vm0 = vcmask 392192  }
 0x1c4   : > { %592 = vst [vmem:[#allocation2 + $0x20] sm:$0xff] %v5313_v61 }
 0x1c6   : > { %v5319_v62 = vld [vmem:[#allocation2 + $0x18] sm:$0xff] }
 0x1c7   : > { %757 = vrot.lane.b32.xlu1 %v5319_v62, %s5091_s22 }
 0x1ca   : > { %v5323_v63 = vld [vmem:[#allocation2 + $0x28] sm:$0xff] }
 0x1cb   : > { %825 = vrot.lane.b32.xlu1 %v5310_v59, %s5092_s23  ;;  %761 = vrot.lane.b32.xlu0 %v5323_v63, %s5091_s22 }
 0x1cf   : > { %827 = vrot.lane.b32.xlu1 %v5319_v62, %s5092_s23  ;;  %821 = vrot.lane.b32.xlu0 %v5306_v57, %s5092_s23 }
 0x1d3   : > { %895 = vrot.lane.b32.xlu1 %v5310_v59, %s5093_s24  ;;  %831 = vrot.lane.b32.xlu0 %v5323_v63, %s5092_s23 }
 0x1d7   : > { %897 = vrot.lane.b32.xlu1 %v5319_v62, %s5093_s24  ;;  %891 = vrot.lane.b32.xlu0 %v5306_v57, %s5093_s24 }
 0x1db   : > { %965 = vrot.lane.b32.xlu1 %v5310_v59, %s5094_s25  ;;  %901 = vrot.lane.b32.xlu0 %v5323_v63, %s5093_s24 }
 0x1df   : > { %967 = vrot.lane.b32.xlu1 %v5319_v62, %s5094_s25  ;;  %961 = vrot.lane.b32.xlu0 %v5306_v57, %s5094_s25 }
 0x1e3   : > { %1035 = vrot.lane.b32.xlu1 %v5310_v59, %s5095_s26  ;;  %971 = vrot.lane.b32.xlu0 %v5323_v63, %s5094_s25 }
 0x1e7   : > { %1037 = vrot.lane.b32.xlu1 %v5319_v62, %s5095_s26  ;;  %1031 = vrot.lane.b32.xlu0 %v5306_v57, %s5095_s26 }
 0x1eb   : > { %1626 = vrot.lane.b32.xlu1 %v5310_v59, %s5096_s9  ;;  %1041 = vrot.lane.b32.xlu0 %v5323_v63, %s5095_s26 }
 0x1ef   : > { %638 = vrot.lane.b32.xlu1 %v5306_v57, %s5097_s10  ;;  %1622 = vrot.lane.b32.xlu0 %v5306_v57, %s5096_s9 }
 0x1f3   : > { %1632 = vrot.lane.b32.xlu1 %v5323_v63, %s5096_s9  ;;  %642 = vrot.lane.b32.xlu0 %v5310_v59, %s5097_s10 }
 0x1f7   : > { %644 = vrot.lane.b32.xlu1 %v5319_v62, %s5097_s10  ;;  %1628 = vrot.lane.b32.xlu0 %v5319_v62, %s5096_s9 }
 0x1fb   : > { %1691 = vrot.lane.b32.xlu1 %v5310_v59, %s5098_s11  ;;  %648 = vrot.lane.b32.xlu0 %v5323_v63, %s5097_s10 }
 0x1ff   : > { %1693 = vrot.lane.b32.xlu1 %v5319_v62, %s5098_s11  ;;  %1687 = vrot.lane.b32.xlu0 %v5306_v57, %s5098_s11 }
 0x203   : > { %1124 = vrot.lane.b32.xlu1 %v5310_v59, %s5099_s12  ;;  %1697 = vrot.lane.b32.xlu0 %v5323_v63, %s5098_s11 }
 0x207   : > { %1755 = vrot.lane.b32.xlu1 %v5306_v57, %s5100_s13  ;;  %1120 = vrot.lane.b32.xlu0 %v5306_v57, %s5099_s12 }
 0x20b   : > { %1130 = vrot.lane.b32.xlu1 %v5323_v63, %s5099_s12  ;;  %1759 = vrot.lane.b32.xlu0 %v5310_v59, %s5100_s13 }
 0x20f   : > { %1761 = vrot.lane.b32.xlu1 %v5319_v62, %s5100_s13  ;;  %1126 = vrot.lane.b32.xlu0 %v5319_v62, %s5099_s12 }
 0x213   : > { %1189 = vrot.lane.b32.xlu1 %v5310_v59, %s5101_s14  ;;  %1765 = vrot.lane.b32.xlu0 %v5323_v63, %s5100_s13 }
 0x217   : > { %1825 = vrot.lane.b32.xlu1 %v5306_v57, %s5102_s15  ;;  %1185 = vrot.lane.b32.xlu0 %v5306_v57, %s5101_s14 }
 0x21b   : > { %1195 = vrot.lane.b32.xlu1 %v5323_v63, %s5101_s14  ;;  %1829 = vrot.lane.b32.xlu0 %v5310_v59, %s5102_s15 }
 0x21f   : > { %1831 = vrot.lane.b32.xlu1 %v5319_v62, %s5102_s15  ;;  %1191 = vrot.lane.b32.xlu0 %v5319_v62, %s5101_s14 }
 0x223   : > { %1257 = vrot.lane.b32.xlu1 %v5310_v59, %s5103_s16  ;;  %1835 = vrot.lane.b32.xlu0 %v5323_v63, %s5102_s15 }
 0x227   : > { %1895 = vrot.lane.b32.xlu1 %v5306_v57, %s7188_s17  ;;  %1253 = vrot.lane.b32.xlu0 %v5306_v57, %s5103_s16 }
 0x22b   : > { %1263 = vrot.lane.b32.xlu1 %v5323_v63, %s5103_s16  ;;  %1899 = vrot.lane.b32.xlu0 %v5310_v59, %s7188_s17 }
 0x22f   : > { %1901 = vrot.lane.b32.xlu1 %v5319_v62, %s7188_s17  ;;  %1259 = vrot.lane.b32.xlu0 %v5319_v62, %s5103_s16 }
 0x231   : > { %v5439_v2 = vpop.permute.xlu0 %751 }
 0x233   : > { %1327 = vrot.lane.b32.xlu1 %v5310_v59, %s5105_s18  ;;  %1905 = vrot.lane.b32.xlu0 %v5323_v63, %s7188_s17  ;;  %s7194_s17 = smov 47  }
 0x235   : > { %v5433_v0 = vpop.permute.xlu1 %755 }
 0x237   : > { %1965 = vrot.lane.b32.xlu1 %v5306_v57, %s7186_s19  ;;  %1323 = vrot.lane.b32.xlu0 %v5306_v57, %s5105_s18 }
 0x239   : > { %v5441_v6 = vpop.permute.xlu1 %757 }
 0x23b   : > { %1333 = vrot.lane.b32.xlu1 %v5323_v63, %s5105_s18  ;;  %1969 = vrot.lane.b32.xlu0 %v5310_v59, %s7186_s19 }
 0x23d   : > { %v5447_v7 = vpop.permute.xlu0 %761  ;;  %v5449_v8 = vpop.permute.xlu1 %825 }
 0x23f   : > { %1971 = vrot.lane.b32.xlu1 %v5319_v62, %s7186_s19  ;;  %1329 = vrot.lane.b32.xlu0 %v5319_v62, %s5105_s18 }
 0x241   : > { %v5455_v9 = vpop.permute.xlu0 %821  ;;  %v5457_v10 = vpop.permute.xlu1 %827 }
 0x243   : > { %1397 = vrot.lane.b32.xlu1 %v5310_v59, %s7192_s20  ;;  %1975 = vrot.lane.b32.xlu0 %v5323_v63, %s7186_s19  ;;  %s7196_s19 = smov 108  }
 0x245   : > { %v5463_v12 = vpop.permute.xlu0 %831  ;;  %v5465_v13 = vpop.permute.xlu1 %895 }
 0x247   : > { %2035 = vrot.lane.b32.xlu1 %v5306_v57, %s7190_s21  ;;  %1393 = vrot.lane.b32.xlu0 %v5306_v57, %s7192_s20 }
 0x249   : > { %v5471_v3 = vpop.permute.xlu0 %891  ;;  %v5473_v14 = vpop.permute.xlu1 %897 }
 0x24b   : > { %1403 = vrot.lane.b32.xlu1 %v5323_v63, %s7192_s20  ;;  %2039 = vrot.lane.b32.xlu0 %v5310_v59, %s7190_s21 }
 0x24d   : > { %v5479_v16 = vpop.permute.xlu0 %901  ;;  %v5481_v4 = vpop.permute.xlu1 %965 }
 0x24f   : > { %2041 = vrot.lane.b32.xlu1 %v5319_v62, %s7190_s21  ;;  %1399 = vrot.lane.b32.xlu0 %v5319_v62, %s7192_s20  ;;  %s7198_s20 = smov 31  }
 0x251   : > { %v5487_v17 = vpop.permute.xlu0 %961  ;;  %v5489_v5 = vpop.permute.xlu1 %967 }
 0x253   : > { %2628 = vrot.lane.b32.xlu1 %v5310_v59, %s7196_s19  ;;  %2045 = vrot.lane.b32.xlu0 %v5323_v63, %s7190_s21  ;;  %s5111_s21 = smov 124  }
 0x255   : > { %v5495_v18 = vpop.permute.xlu0 %971  ;;  %v5497_v11 = vpop.permute.xlu1 %1035 }
 0x257   : > { %1463 = vrot.lane.b32.xlu1 %v5306_v57, %s7194_s17  ;;  %2624 = vrot.lane.b32.xlu0 %v5306_v57, %s7196_s19 }
 0x259   : > { %v5503_v19 = vpop.permute.xlu0 %1031  ;;  %v5505_v15 = vpop.permute.xlu1 %1037 }
 0x25b   : > { %2634 = vrot.lane.b32.xlu1 %v5323_v63, %s7196_s19  ;;  %1467 = vrot.lane.b32.xlu0 %v5310_v59, %s7194_s17 }
 0x25d   : > { %v5511_v21 = vpop.permute.xlu0 %1041  ;;  %v5513_v22 = vpop.permute.xlu1 %1626 }
 0x25f   : > { %1469 = vrot.lane.b32.xlu1 %v5319_v62, %s7194_s17  ;;  %2630 = vrot.lane.b32.xlu0 %v5319_v62, %s7196_s19  ;;  %s7202_s19 = smov 92  }
 0x261   : > { %v5519_v23 = vpop.permute.xlu0 %1622  ;;  %v5521_v24 = vpop.permute.xlu1 %638 }
 0x263   : > { %2693 = vrot.lane.b32.xlu1 %v5310_v59, %s5111_s21  ;;  %1473 = vrot.lane.b32.xlu0 %v5323_v63, %s7194_s17  ;;  %s7200_s17 = smov 109  }
 0x265   : > { %v5527_v20 = vpop.permute.xlu0 %642  ;;  %v5529_v25 = vpop.permute.xlu1 %1632 }
 0x267   : > { %1533 = vrot.lane.b32.xlu1 %v5306_v57, %s7198_s20  ;;  %2689 = vrot.lane.b32.xlu0 %v5306_v57, %s5111_s21 }
 0x269   : > { %v5535_v26 = vpop.permute.xlu0 %1628  ;;  %v5537_v27 = vpop.permute.xlu1 %644 }
 0x26b   : > { %2699 = vrot.lane.b32.xlu1 %v5323_v63, %s5111_s21  ;;  %1537 = vrot.lane.b32.xlu0 %v5310_v59, %s7198_s20 }
 0x26d   : > { %v5543_v28 = vpop.permute.xlu0 %648  ;;  %v5545_v29 = vpop.permute.xlu1 %1691 }
 0x26f   : > { %1539 = vrot.lane.b32.xlu1 %v5319_v62, %s7198_s20  ;;  %2695 = vrot.lane.b32.xlu0 %v5319_v62, %s5111_s21 }
 0x271   : > { %v5551_v30 = vpop.permute.xlu0 %1687  ;;  %v5553_v31 = vpop.permute.xlu1 %1693 }
 0x273   : > { %2128 = vrot.lane.b32.xlu1 %v5310_v59, %s7200_s17  ;;  %1543 = vrot.lane.b32.xlu0 %v5323_v63, %s7198_s20  ;;  %s7204_s20 = smov 125  }
 0x275   : > { %v5559_v32 = vpop.permute.xlu0 %1697  ;;  %v5561_v33 = vpop.permute.xlu1 %1124 }
 0x277   : > { %2757 = vrot.lane.b32.xlu1 %v5306_v57, %s7202_s19  ;;  %2124 = vrot.lane.b32.xlu0 %v5306_v57, %s7200_s17 }
 0x279   : > { %v5567_v34 = vpop.permute.xlu0 %1120  ;;  %v5569_v35 = vpop.permute.xlu1 %1755 }
 0x27b   : > { %2134 = vrot.lane.b32.xlu1 %v5323_v63, %s7200_s17  ;;  %2761 = vrot.lane.b32.xlu0 %v5310_v59, %s7202_s19 }
 0x27d   : > { %v5575_v36 = vpop.permute.xlu0 %1759  ;;  %v5577_v37 = vpop.permute.xlu1 %1130 }
 0x27f   : > { %2763 = vrot.lane.b32.xlu1 %v5319_v62, %s7202_s19  ;;  %2130 = vrot.lane.b32.xlu0 %v5319_v62, %s7200_s17  ;;  %s7206_s17 = smov 76  }
 0x281   : > { %v5583_v38 = vpop.permute.xlu0 %1126  ;;  %v5585_v39 = vpop.permute.xlu1 %1761 }
 0x282   : > { %7218 = vst [vmem:[#allocation3_spill] sm:$0xff] %v5585_v39  ;;  %v4714_v39 = vld [vmem:[%s7182_s5 + $0x1c] sm:$0x3] }
 0x283   : > { %2193 = vrot.lane.b32.xlu1 %v5310_v59, %s7204_s20  ;;  %2767 = vrot.lane.b32.xlu0 %v5323_v63, %s7202_s19  ;;  %s7210_s19 = smov 93  }
 0x285   : > { %v5591_v40 = vpop.permute.xlu0 %1765  ;;  %v5593_v41 = vpop.permute.xlu1 %1189 }
 0x287   : > { %2189 = vrot.lane.b32.xlu0 %v5306_v57, %s7204_s20  ;;  %2195 = vrot.lane.b32.xlu1 %v5319_v62, %s7204_s20 }
 0x289   : > { %v5599_v42 = vpop.permute.xlu0 %1185  ;;  %v5601_v43 = vpop.permute.xlu1 %1825 }
 0x28a   : > { %7219 = vst [vmem:[#allocation4_spill] sm:$0xff] %v5601_v43 }
 0x28b   : > { %2199 = vrot.lane.b32.xlu0 %v5323_v63, %s7204_s20  ;;  %2831 = vrot.lane.b32.xlu1 %v5310_v59, %s7206_s17  ;;  %s7214_s20 = smov 77  }
 0x28d   : > { %v5607_v44 = vpop.permute.xlu0 %1829  ;;  %v5609_v45 = vpop.permute.xlu1 %1195 }
 0x28e   : > { %7220 = vst [vmem:[#allocation5_spill] sm:$0xff] %v5607_v44 }
 0x28f   : > { %2827 = vrot.lane.b32.xlu0 %v5306_v57, %s7206_s17  ;;  %2257 = vrot.lane.b32.xlu1 %v5306_v57, %s7210_s19 }
 0x291   : > { %v5615_v46 = vpop.permute.xlu0 %1191  ;;  %v5617_v47 = vpop.permute.xlu1 %1831 }
 0x292   : > { %7221 = vst [vmem:[#allocation6_spill] sm:$0xff] %v5617_v47 }
 0x293   : > { %2261 = vrot.lane.b32.xlu0 %v5310_v59, %s7210_s19  ;;  %2837 = vrot.lane.b32.xlu1 %v5323_v63, %s7206_s17 }
 0x295   : > { %v5623_v48 = vpop.permute.xlu0 %1835  ;;  %v5625_v49 = vpop.permute.xlu1 %1257 }
 0x296   : > { %7222 = vst [vmem:[#allocation7_spill] sm:$0xff] %v5623_v48 }
 0x297   : > { %2833 = vrot.lane.b32.xlu0 %v5319_v62, %s7206_s17  ;;  %2263 = vrot.lane.b32.xlu1 %v5319_v62, %s7210_s19  ;;  %s7212_s17 = smov 60  }
 0x299   : > { %v5631_v50 = vpop.permute.xlu0 %1253  ;;  %v5633_v51 = vpop.permute.xlu1 %1895 }
 0x29a   : > { %7223 = vst [vmem:[#allocation8_spill] sm:$0xff] %v5633_v51 }
 0x29b   : > { %2267 = vrot.lane.b32.xlu0 %v5323_v63, %s7210_s19  ;;  %2331 = vrot.lane.b32.xlu1 %v5310_v59, %s7214_s20  ;;  %s7216_s19 = smov 61  }
 0x29d   : > { %v5639_v52 = vpop.permute.xlu0 %1899  ;;  %v5641_v53 = vpop.permute.xlu1 %1263 }
 0x29e   : > { %7224 = vst [vmem:[#allocation9_spill] sm:$0xff] %v5639_v52 }
 0x29f   : > { %2327 = vrot.lane.b32.xlu0 %v5306_v57, %s7214_s20  ;;  %2897 = vrot.lane.b32.xlu1 %v5306_v57, %s7212_s17 }
 0x2a1   : > { %v5647_v54 = vpop.permute.xlu0 %1259  ;;  %v5649_v55 = vpop.permute.xlu1 %1901 }
 0x2a2   : > { %7225 = vst [vmem:[#allocation10_spill] sm:$0xff] %v5649_v55 }
 0x2a3   : > { %2901 = vrot.lane.b32.xlu0 %v5310_v59, %s7212_s17  ;;  %2337 = vrot.lane.b32.xlu1 %v5323_v63, %s7214_s20 }
 0x2a5   : > { %v5655_v58 = vpop.permute.xlu0 %1905  ;;  %v5657_v60 = vpop.permute.xlu1 %1327 }
 0x2a6   : > { %7226 = vst [vmem:[#allocation11_spill] sm:$0xff] %v5655_v58 }
 0x2a7   : > { %2333 = vrot.lane.b32.xlu0 %v5319_v62, %s7214_s20  ;;  %2903 = vrot.lane.b32.xlu1 %v5319_v62, %s7212_s17  ;;  %s5122_s20 = smov 45  }
 0x2a9   : > { %v5663_v1 = vpop.permute.xlu0 %1323  ;;  %v5665_v51 = vpop.permute.xlu1 %1965 }
 0x2aa   : > { %7227 = vst [vmem:[#allocation12_spill] sm:$0xff] %v5665_v51 }
 0x2ab   : > { %2907 = vrot.lane.b32.xlu0 %v5323_v63, %s7212_s17  ;;  %2401 = vrot.lane.b32.xlu1 %v5310_v59, %s7216_s19  ;;  %s5121_s17 = smov 44  }
 0x2ad   : > { %v5671_v55 = vpop.permute.xlu0 %1969  ;;  %v5673_v58 = vpop.permute.xlu1 %1333 }
 0x2ae   : > { %7228 = vst [vmem:[#allocation13_spill] sm:$0xff] %v5671_v55 }
 0x2af   : > { %2397 = vrot.lane.b32.xlu0 %v5306_v57, %s7216_s19  ;;  %2403 = vrot.lane.b32.xlu1 %v5319_v62, %s7216_s19 }
 0x2b1   : > { %v5679_v52 = vpop.permute.xlu0 %1329  ;;  %v5681_v51 = vpop.permute.xlu1 %1971 }
 0x2b2   : > { %7229 = vst [vmem:[#allocation14_spill] sm:$0xff] %v5679_v52  ;;  %7230 = vst [vmem:[#allocation15_spill] sm:$0xff] %v5681_v51 }
 0x2b3   : > { %2407 = vrot.lane.b32.xlu0 %v5323_v63, %s7216_s19  ;;  %2971 = vrot.lane.b32.xlu1 %v5310_v59, %s5121_s17  ;;  %s5123_s19 = smov 29  }
 0x2b5   : > { %v5687_v55 = vpop.permute.xlu0 %1975  ;;  %v5689_v47 = vpop.permute.xlu1 %1397 }
 0x2b6   : > { %7231 = vst [vmem:[#allocation16_spill] sm:$0xff] %v5687_v55  ;;  %7232 = vst [vmem:[#allocation17_spill] sm:$0xff] %v5689_v47 }
 0x2b7   : > { %2967 = vrot.lane.b32.xlu0 %v5306_v57, %s5121_s17  ;;  %2467 = vrot.lane.b32.xlu1 %v5306_v57, %s5122_s20 }
 0x2b9   : > { %v5695_v48 = vpop.permute.xlu0 %1393  ;;  %v5697_v51 = vpop.permute.xlu1 %2035 }
 0x2ba   : > { %7233 = vst [vmem:[#allocation18_spill] sm:$0xff] %v5695_v48  ;;  %7234 = vst [vmem:[#allocation19_spill] sm:$0xff] %v5697_v51 }
 0x2bb   : > { %2471 = vrot.lane.b32.xlu0 %v5310_v59, %s5122_s20  ;;  %2977 = vrot.lane.b32.xlu1 %v5323_v63, %s5121_s17 }
 0x2bd   : > { %v5703_v55 = vpop.permute.xlu0 %2039  ;;  %v5705_v43 = vpop.permute.xlu1 %1403 }
 0x2be   : > { %7235 = vst [vmem:[#allocation20_spill] sm:$0xff] %v5703_v55  ;;  %7236 = vst [vmem:[#allocation21_spill] sm:$0xff] %v5705_v43 }
 0x2bf   : > { %2973 = vrot.lane.b32.xlu0 %v5319_v62, %s5121_s17  ;;  %2473 = vrot.lane.b32.xlu1 %v5319_v62, %s5122_s20 }
 0x2c1   : > { %v5711_v44 = vpop.permute.xlu0 %1399  ;;  %v5713_v48 = vpop.permute.xlu1 %2041 }
 0x2c2   : > { %7237 = vst [vmem:[#allocation22_spill] sm:$0xff] %v5711_v44  ;;  %7238 = vst [vmem:[#allocation23_spill] sm:$0xff] %v5713_v48 }
 0x2c3   : > { %2477 = vrot.lane.b32.xlu0 %v5323_v63, %s5122_s20  ;;  %2541 = vrot.lane.b32.xlu1 %v5310_v59, %s5123_s19 }
 0x2c5   : > { %v5719_v51 = vpop.permute.xlu0 %2045  ;;  %v5721_v55 = vpop.permute.xlu1 %2628 }
 0x2c6   : > { %7239 = vst [vmem:[#allocation24_spill] sm:$0xff] %v5719_v51  ;;  %7240 = vst [vmem:[#allocation25_spill] sm:$0xff] %v5721_v55 }
 0x2c7   : > { %823 = vrot.lane.b32.xlu0 %v5302_v56, %s5092_s23  ;;  %753 = vrot.lane.b32.xlu1 %v5302_v56, %s5091_s22 }
 0x2c9   : > { %v5727_v44 = vpop.permute.xlu0 %2624  ;;  %v5729_v48 = vpop.permute.xlu1 %1463 }
 0x2ca   : > { %7241 = vst [vmem:[#allocation26_spill] sm:$0xff] %v5727_v44  ;;  %7242 = vst [vmem:[#allocation27_spill] sm:$0xff] %v5729_v48 }
 0x2cb   : > { %893 = vrot.lane.b32.xlu0 %v5302_v56, %s5093_s24  ;;  %759 = vrot.lane.b32.xlu1 %v5313_v61, %s5091_s22  ;;  %s7267_s22 = smov 62  }
 0x2cd   : > { %v5735_v43 = vpop.permute.xlu0 %1467  ;;  %v5737_v51 = vpop.permute.xlu1 %2634 }
 0x2ce   : > { %7243 = vst [vmem:[#allocation28_spill] sm:$0xff] %v5735_v43  ;;  %7244 = vst [vmem:[#allocation29_spill] sm:$0xff] %v5737_v51 }
 0x2cf   : > { %963 = vrot.lane.b32.xlu0 %v5302_v56, %s5094_s25  ;;  %829 = vrot.lane.b32.xlu1 %v5313_v61, %s5092_s23  ;;  %s7272_s23 = smov 63  }
 0x2d1   : > { %v5743_v55 = vpop.permute.xlu0 %2630  ;;  %v5745_v44 = vpop.permute.xlu1 %1469 }
 0x2d2   : > { %7245 = vst [vmem:[#allocation30_spill] sm:$0xff] %v5743_v55  ;;  %7246 = vst [vmem:[#allocation31_spill] sm:$0xff] %v5745_v44 }
 0x2d3   : > { %1033 = vrot.lane.b32.xlu0 %v5302_v56, %s5095_s26  ;;  %899 = vrot.lane.b32.xlu1 %v5313_v61, %s5093_s24  ;;  %s7273_s24 = smov 46  }
 0x2d5   : > { %v5751_v48 = vpop.permute.xlu0 %1473  ;;  %v5753_v43 = vpop.permute.xlu1 %2693 }
 0x2d6   : > { %7247 = vst [vmem:[#allocation32_spill] sm:$0xff] %v5751_v48  ;;  %7248 = vst [vmem:[#allocation33_spill] sm:$0xff] %v5753_v43 }
 0x2d7   : > { %1624 = vrot.lane.b32.xlu0 %v5302_v56, %s5096_s9  ;;  %969 = vrot.lane.b32.xlu1 %v5313_v61, %s5094_s25  ;;  %s7278_s25 = smov 108  }
 0x2d9   : > { %v5759_v51 = vpop.permute.xlu0 %2689  ;;  %v5761_v55 = vpop.permute.xlu1 %1533 }
 0x2da   : > { %7249 = vst [vmem:[#allocation34_spill] sm:$0xff] %v5759_v51  ;;  %7250 = vst [vmem:[#allocation35_spill] sm:$0xff] %v5761_v55 }
 0x2db   : > { %1630 = vrot.lane.b32.xlu0 %v5313_v61, %s5096_s9  ;;  %1039 = vrot.lane.b32.xlu1 %v5313_v61, %s5095_s26  ;;  %s7279_s26 = smov 30   ;;  %s7284_s9 = smov 47  }
 0x2dd   : > { %v5767_v44 = vpop.permute.xlu0 %1537  ;;  %v5769_v48 = vpop.permute.xlu1 %2699 }
 0x2de   : > { %7251 = vst [vmem:[#allocation36_spill] sm:$0xff] %v5767_v44  ;;  %7252 = vst [vmem:[#allocation37_spill] sm:$0xff] %v5769_v48 }
 0x2df   : > { %1689 = vrot.lane.b32.xlu0 %v5302_v56, %s5098_s11  ;;  %640 = vrot.lane.b32.xlu1 %v5302_v56, %s5097_s10 }
 0x2e1   : > { %v5775_v43 = vpop.permute.xlu0 %2695  ;;  %v5777_v51 = vpop.permute.xlu1 %1539 }
 0x2e2   : > { %7253 = vst [vmem:[#allocation38_spill] sm:$0xff] %v5775_v43  ;;  %7254 = vst [vmem:[#allocation39_spill] sm:$0xff] %v5777_v51 }
 0x2e3   : > { %1122 = vrot.lane.b32.xlu0 %v5302_v56, %s5099_s12  ;;  %646 = vrot.lane.b32.xlu1 %v5313_v61, %s5097_s10  ;;  %s7289_s10 = smov 109  }
 0x2e5   : > { %v5783_v55 = vpop.permute.xlu0 %1543  ;;  %v5785_v44 = vpop.permute.xlu1 %2128 }
 0x2e6   : > { %7255 = vst [vmem:[#allocation40_spill] sm:$0xff] %v5783_v55  ;;  %7256 = vst [vmem:[#allocation41_spill] sm:$0xff] %v5785_v44 }
 0x2e7   : > { %1128 = vrot.lane.b32.xlu0 %v5313_v61, %s5099_s12  ;;  %1695 = vrot.lane.b32.xlu1 %v5313_v61, %s5098_s11  ;;  %s7290_s11 = smov 31   ;;  %s7295_s12 = smov 125  }
 0x2e9   : > { %v5791_v48 = vpop.permute.xlu0 %2124  ;;  %v5793_v43 = vpop.permute.xlu1 %2757 }
 0x2ea   : > { %7257 = vst [vmem:[#allocation42_spill] sm:$0xff] %v5791_v48  ;;  %7258 = vst [vmem:[#allocation43_spill] sm:$0xff] %v5793_v43 }
 0x2eb   : > { %1187 = vrot.lane.b32.xlu0 %v5302_v56, %s5101_s14  ;;  %1757 = vrot.lane.b32.xlu1 %v5302_v56, %s5100_s13 }
 0x2ed   : > { %v5799_v51 = vpop.permute.xlu0 %2761  ;;  %v5801_v55 = vpop.permute.xlu1 %2134 }
 0x2ee   : > { %7259 = vst [vmem:[#allocation44_spill] sm:$0xff] %v5799_v51  ;;  %7260 = vst [vmem:[#allocation45_spill] sm:$0xff] %v5801_v55 }
 0x2ef   : > { %1193 = vrot.lane.b32.xlu0 %v5313_v61, %s5101_s14  ;;  %1763 = vrot.lane.b32.xlu1 %v5313_v61, %s5100_s13  ;;  %s7296_s13 = smov 92   ;;  %s7299_s14 = smov 76  }
 0x2f1   : > { %v5807_v44 = vpop.permute.xlu0 %2130  ;;  %v5809_v48 = vpop.permute.xlu1 %2763 }
 0x2f2   : > { %7261 = vst [vmem:[#allocation46_spill] sm:$0xff] %v5807_v44  ;;  %7262 = vst [vmem:[#allocation47_spill] sm:$0xff] %v5809_v48 }
 0x2f3   : > { %1255 = vrot.lane.b32.xlu0 %v5302_v56, %s5103_s16  ;;  %1827 = vrot.lane.b32.xlu1 %v5302_v56, %s5102_s15 }
 0x2f5   : > { %v5815_v43 = vpop.permute.xlu0 %2767  ;;  %v5817_v51 = vpop.permute.xlu1 %2193 }
 0x2f6   : > { %7263 = vst [vmem:[#allocation48_spill] sm:$0xff] %v5815_v43  ;;  %7264 = vst [vmem:[#allocation49_spill] sm:$0xff] %v5817_v51 }
 0x2f7   : > { %1261 = vrot.lane.b32.xlu0 %v5313_v61, %s5103_s16  ;;  %1833 = vrot.lane.b32.xlu1 %v5313_v61, %s5102_s15  ;;  %s7304_s15 = smov 77   ;;  %s7305_s16 = smov 93  }
 0x2f9   : > { %v5823_v55 = vpop.permute.xlu0 %2189  ;;  %v5825_v44 = vpop.permute.xlu1 %2195 }
 0x2fa   : > { %7265 = vst [vmem:[#allocation50_spill] sm:$0xff] %v5823_v55  ;;  %7266 = vst [vmem:[#allocation51_spill] sm:$0xff] %v5825_v44 }
 0x2fb   : > { %1325 = vrot.lane.b32.xlu0 %v5302_v56, %s5105_s18  ;;  %1897 = vrot.lane.b32.xlu1 %v5302_v56, %s7267_s22 }
 0x2fd   : > { %v5831_v48 = vpop.permute.xlu0 %2199  ;;  %v5833_v43 = vpop.permute.xlu1 %2831 }
 0x2fe   : > { %7268 = vst [vmem:[#allocation52_spill] sm:$0xff] %v5831_v48  ;;  %7269 = vst [vmem:[#allocation53_spill] sm:$0xff] %v5833_v43 }
 0x2ff   : > { %1331 = vrot.lane.b32.xlu0 %v5313_v61, %s5105_s18  ;;  %1903 = vrot.lane.b32.xlu1 %v5313_v61, %s7267_s22  ;;  %s7310_s18 = smov 61  }
 0x301   : > { %v5839_v51 = vpop.permute.xlu0 %2827  ;;  %v5841_v55 = vpop.permute.xlu1 %2257 }
 0x302   : > { %7270 = vst [vmem:[#allocation54_spill] sm:$0xff] %v5839_v51  ;;  %7271 = vst [vmem:[#allocation55_spill] sm:$0xff] %v5841_v55 }
 0x303   : > { %1395 = vrot.lane.b32.xlu0 %v5302_v56, %s7272_s23  ;;  %1967 = vrot.lane.b32.xlu1 %v5302_v56, %s7273_s24 }
 0x305   : > { %v5847_v44 = vpop.permute.xlu0 %2261  ;;  %v5849_v48 = vpop.permute.xlu1 %2837 }
 0x306   : > { %7274 = vst [vmem:[#allocation56_spill] sm:$0xff] %v5847_v44  ;;  %7275 = vst [vmem:[#allocation57_spill] sm:$0xff] %v5849_v48 }
 0x307   : > { %1401 = vrot.lane.b32.xlu0 %v5313_v61, %s7272_s23  ;;  %1973 = vrot.lane.b32.xlu1 %v5313_v61, %s7273_s24  ;;  %s5127_s23 = smov 123   ;;  %s5131_s24 = smov 75  }
 0x309   : > { %v5855_v43 = vpop.permute.xlu0 %2833  ;;  %v5857_v51 = vpop.permute.xlu1 %2263 }
 0x30a   : > { %7276 = vst [vmem:[#allocation58_spill] sm:$0xff] %v5855_v43  ;;  %7277 = vst [vmem:[#allocation59_spill] sm:$0xff] %v5857_v51 }
 0x30b   : > { %2626 = vrot.lane.b32.xlu0 %v5302_v56, %s7278_s25  ;;  %2037 = vrot.lane.b32.xlu1 %v5302_v56, %s7279_s26 }
 0x30d   : > { %v5863_v55 = vpop.permute.xlu0 %2267  ;;  %v5865_v44 = vpop.permute.xlu1 %2331 }
 0x30e   : > { %7280 = vst [vmem:[#allocation60_spill] sm:$0xff] %v5863_v55  ;;  %7281 = vst [vmem:[#allocation61_spill] sm:$0xff] %v5865_v44 }
 0x30f   : > { %2632 = vrot.lane.b32.xlu0 %v5313_v61, %s7278_s25  ;;  %2043 = vrot.lane.b32.xlu1 %v5313_v61, %s7279_s26  ;;  %s5124_s25 = smov 28   ;;  %s5128_s26 = smov 122  }
 0x311   : > { %v5871_v48 = vpop.permute.xlu0 %2327  ;;  %v5873_v43 = vpop.permute.xlu1 %2897 }
 0x312   : > { %7282 = vst [vmem:[#allocation62_spill] sm:$0xff] %v5871_v48  ;;  %7283 = vst [vmem:[#allocation63_spill] sm:$0xff] %v5873_v43 }
 0x313   : > { %2691 = vrot.lane.b32.xlu0 %v5302_v56, %s5111_s21  ;;  %1465 = vrot.lane.b32.xlu1 %v5302_v56, %s7284_s9 }
 0x315   : > { %v5879_v51 = vpop.permute.xlu0 %2901  ;;  %v5881_v55 = vpop.permute.xlu1 %2337 }
 0x316   : > { %7285 = vst [vmem:[#allocation64_spill] sm:$0xff] %v5879_v51  ;;  %7286 = vst [vmem:[#allocation65_spill] sm:$0xff] %v5881_v55 }
 0x317   : > { %2697 = vrot.lane.b32.xlu0 %v5313_v61, %s5111_s21  ;;  %1471 = vrot.lane.b32.xlu1 %v5313_v61, %s7284_s9  ;;  %s7311_s21 = smov 60   ;;  %s4965_s9 = smul.u32 24, %s7399_s27 }
 0x319   : > { %v5887_v44 = vpop.permute.xlu0 %2333  ;;  %v5889_v48 = vpop.permute.xlu1 %2903 }
 0x31a   : > { %7287 = vst [vmem:[#allocation66_spill] sm:$0xff] %v5887_v44  ;;  %7288 = vst [vmem:[#allocation67_spill] sm:$0xff] %v5889_v48 }
 0x31b   : > { %2126 = vrot.lane.b32.xlu0 %v5302_v56, %s7289_s10  ;;  %1535 = vrot.lane.b32.xlu1 %v5302_v56, %s7290_s11 }
 0x31d   : > { %v5895_v43 = vpop.permute.xlu0 %2907  ;;  %v5897_v51 = vpop.permute.xlu1 %2401 }
 0x31e   : > { %7291 = vst [vmem:[#allocation68_spill] sm:$0xff] %v5895_v43  ;;  %7292 = vst [vmem:[#allocation69_spill] sm:$0xff] %v5897_v51 }
 0x31f   : > { %2132 = vrot.lane.b32.xlu0 %v5313_v61, %s7289_s10  ;;  %1541 = vrot.lane.b32.xlu1 %v5313_v61, %s7290_s11  ;;  %s5132_s10 = smov 74   ;;  %s7078_s11 = scalar_lea.vmem %s7178_s1, %s4965_s9 }
 0x321   : > { %v5903_v55 = vpop.permute.xlu0 %2397  ;;  %v5905_v44 = vpop.permute.xlu1 %2403 }
 0x322   : > { %7293 = vst [vmem:[#allocation70_spill] sm:$0xff] %v5903_v55  ;;  %7294 = vst [vmem:[#allocation71_spill] sm:$0xff] %v5905_v44 }
 0x323   : > { %2191 = vrot.lane.b32.xlu0 %v5302_v56, %s7295_s12  ;;  %2759 = vrot.lane.b32.xlu1 %v5302_v56, %s7296_s13 }
 0x325   : > { %v5911_v48 = vpop.permute.xlu0 %2407  ;;  %v5913_v43 = vpop.permute.xlu1 %2971 }
 0x326   : > { %7297 = vst [vmem:[#allocation72_spill] sm:$0xff] %v5911_v48  ;;  %7298 = vst [vmem:[#allocation73_spill] sm:$0xff] %v5913_v43 }
 0x327   : > { %2829 = vrot.lane.b32.xlu0 %v5302_v56, %s7299_s14  ;;  %2765 = vrot.lane.b32.xlu1 %v5313_v61, %s7296_s13 }
 0x329   : > { %v5919_v51 = vpop.permute.xlu0 %2967  ;;  %v5921_v55 = vpop.permute.xlu1 %2467 }
 0x32a   : > { %7300 = vst [vmem:[#allocation74_spill] sm:$0xff] %v5919_v51  ;;  %7301 = vst [vmem:[#allocation75_spill] sm:$0xff] %v5921_v55 }
 0x32b   : > { %2835 = vrot.lane.b32.xlu0 %v5313_v61, %s7299_s14  ;;  %2197 = vrot.lane.b32.xlu1 %v5313_v61, %s7295_s12  ;;  %s5129_s12 = smov 91  }
 0x32d   : > { %v5927_v44 = vpop.permute.xlu0 %2471  ;;  %v5929_v48 = vpop.permute.xlu1 %2977 }
 0x32e   : > { %7302 = vst [vmem:[#allocation76_spill] sm:$0xff] %v5927_v44  ;;  %7303 = vst [vmem:[#allocation77_spill] sm:$0xff] %v5929_v48 }
 0x32f   : > { %2329 = vrot.lane.b32.xlu0 %v5302_v56, %s7304_s15  ;;  %2259 = vrot.lane.b32.xlu1 %v5302_v56, %s7305_s16 }
 0x331   : > { %v5935_v43 = vpop.permute.xlu0 %2973  ;;  %v5937_v51 = vpop.permute.xlu1 %2473 }
 0x332   : > { %7306 = vst [vmem:[#allocation78_spill] sm:$0xff] %v5935_v43  ;;  %7307 = vst [vmem:[#allocation79_spill] sm:$0xff] %v5937_v51 }
 0x333   : > { %2335 = vrot.lane.b32.xlu0 %v5313_v61, %s7304_s15  ;;  %2265 = vrot.lane.b32.xlu1 %v5313_v61, %s7305_s16  ;;  %s5126_s15 = smov 106   ;;  %s5133_s16 = smov 59  }
 0x335   : > { %v5943_v55 = vpop.permute.xlu0 %2477  ;;  %v5945_v44 = vpop.permute.xlu1 %2541 }
 0x336   : > { %7308 = vst [vmem:[#allocation80_spill] sm:$0xff] %v5943_v55  ;;  %7309 = vst [vmem:[#allocation81_spill] sm:$0xff] %v5945_v44 }
 0x337   : > { %2399 = vrot.lane.b32.xlu0 %v5302_v56, %s7310_s18  ;;  %2899 = vrot.lane.b32.xlu1 %v5302_v56, %s7311_s21 }
 0x339   : > { %v824_v43 = vpop.permute.xlu0 %823  ;;  %v754_v48 = vpop.permute.xlu1 %753 }
 0x33a   : > { %v765_v51 = vsel %vm763_vm11, %v754_v48, %v5433_v0  ;;  %v764_v47 = vsel %vm763_vm11, %v5439_v2, %v754_v48  ;;  %v750_v2 = vpack.c.bf16 %v4714_v39, %v4714_v39  ;;  %v835_v48 = vsel %vm833_vm12, %v824_v43, %v5449_v8 }
 0x33b   : > { %2969 = vrot.lane.b32.xlu0 %v5302_v56, %s5121_s17  ;;  %2905 = vrot.lane.b32.xlu1 %v5313_v61, %s7311_s21  ;;  %s4822_s21 = sshll.u32 %s7399_s27, 3 }
 0x33c   : > { %775 = vmatprep.subr.bf16.mxu0 %v765_v51 }
 0x33d   : > { %776 = vmatpush1.bf16.msra.mxu0 %v764_v47  ;;  %v894_v44 = vpop.permute.xlu0 %893  ;;  %v760_v55 = vpop.permute.xlu1 %759 }
 0x33e   : > { %v767_v52 = vsel %vm763_vm11, %v760_v55, %v5447_v7  ;;  %v766_v0 = vsel %vm763_vm11, %v5441_v6, %v760_v55  ;;  %v834_v6 = vsel %vm833_vm12, %v5455_v9, %v824_v43  ;;  %vm1907_vm11 = vcmask 506880  }
 0x33f   : > { %2975 = vrot.lane.b32.xlu0 %v5313_v61, %s5121_s17  ;;  %2405 = vrot.lane.b32.xlu1 %v5313_v61, %s7310_s18  ;;  %s5130_s18 = smov 90   ;;  %s5134_s17 = smov 58  }
 0x340   : > { %777 = vmatprep.subr.bf16.mxu0 %v767_v52  ;;  %v7312_v52 = vmov 0  }
 0x341   : > { %778 = vmatpush1.bf16.msra.mxu0 %v766_v0  ;;  %v5966_v47 = vpop.permute.xlu0 %963  ;;  %v830_v51 = vpop.permute.xlu1 %829  ;;  %v4716_v0 = vld [vmem:[%s7182_s5 + $0x2a] sm:$0x3] }
 0x342   : > { %845 = vmatprep.subr.bf16.mxu0 %v835_v48  ;;  %v837_v8 = vsel %vm833_vm12, %v830_v51, %v5463_v12  ;;  %v836_v9 = vsel %vm833_vm12, %v5457_v10, %v830_v51  ;;  %v905_v12 = vsel %vm903_vm14, %v894_v44, %v5465_v13  ;;  %v820_v10 = vpack.c.bf16 %v4716_v0, %v4716_v0  ;;  %v4718_v0 = vld [vmem:[%s7182_s5 + $0x38] sm:$0x3] }
 0x343   : > { %2539 = vrot.lane.b32.xlu0 %v5302_v56, %s5123_s19  ;;  %2469 = vrot.lane.b32.xlu1 %v5302_v56, %s5122_s20  ;;  %v904_v13 = vsel %vm903_vm14, %v5471_v3, %v894_v44  ;;  %vm1545_vm12 = vcmask 252928  }
 0x344   : > { %4715 = vmatmul.mubr.msk.bf16.vlgmr.msra.gmra.mrb[0].mxu0 %vm659_vm13, %v750_v2 }
 0x345   : > { %846 = vmatpush1.bf16.msra.mxu0 %v834_v6  ;;  %v5977_v7 = vpop.permute.xlu0 %1033  ;;  %v900_v39 = vpop.permute.xlu1 %899  ;;  %877 = vmatprep.mubr.bf16.mxu0 %v7312_v52 }
 0x346   : > { %847 = vmatprep.subr.bf16.mxu0 %v837_v8  ;;  %v907_v51 = vsel %vm903_vm14, %v900_v39, %v5479_v16  ;;  %v906_v3 = vsel %vm903_vm14, %v5473_v14, %v900_v39  ;;  %v975_v16 = vsel %vm973_vm0, %v5966_v47, %v5481_v4  ;;  %vm1977_vm14 = vcmask 375808  }
 0x347   : > { %2537 = vrot.lane.b32.xlu0 %v5306_v57, %s5123_s19  ;;  %2475 = vrot.lane.b32.xlu1 %v5313_v61, %s5122_s20  ;;  %s5137_s20 = smov 27  }
 0x349   : > { %848 = vmatpush1.bf16.msra.mxu0 %v836_v9  ;;  %v5988_v43 = vpop.permute.xlu0 %1624  ;;  %v5992_v55 = vpop.permute.xlu1 %969 }
 0x34a   : > { %915 = vmatprep.subr.bf16.mxu0 %v905_v12 }
 0x34b   : > { %3041 = vrot.lane.b32.xlu0 %v5310_v59, %s5124_s25  ;;  %3039 = vrot.lane.b32.xlu1 %v5302_v56, %s5124_s25 }
 0x34d   : > { %v6001_v2 = vpop.permute.xlu0 %1630  ;;  %v6003_v48 = vpop.permute.xlu1 %1039 }
 0x34f   : > { %2545 = vrot.lane.b32.xlu0 %v5313_v61, %s5123_s19  ;;  %3037 = vrot.lane.b32.xlu1 %v5306_v57, %s5124_s25 }
 0x350   : > { %4717 = vmatmul.mubr.msk.bf16.vlgmr.msra.gmra.mrb[0].mxu0 %vm659_vm13, %v820_v10  ;;  %v890_v10 = vpack.c.bf16 %v4718_v0, %v4718_v0 }
 0x351   : > { %916 = vmatpush1.bf16.msra.mxu0 %v904_v13  ;;  %v6014_v6 = vpop.permute.xlu0 %1689  ;;  %v641_v8 = vpop.permute.xlu1 %640  ;;  %947 = vmatprep.mubr.bf16.mxu0 %v7312_v52 }
 0x352   : > { %917 = vmatprep.subr.bf16.mxu0 %v907_v51  ;;  %v652_v9 = vsel %vm650_vm15, %v641_v8, %v5527_v20  ;;  %v651_v12 = vsel %vm650_vm15, %v5521_v24, %v641_v8  ;;  %v4711_v24 = vld [vmem:[%s7182_s5 + $0xe] sm:$0x3] }
 0x353   : > { %2543 = vrot.lane.b32.xlu0 %v5319_v62, %s5123_s19  ;;  %2547 = vrot.lane.b32.xlu1 %v5323_v63, %s5123_s19  ;;  %v631_v4 = vpack.c.bf16 %v4711_v24, %v4711_v24  ;;  %s5125_s19 = smov 107   ;;  %v1047_v24 = vsel %vm659_vm13, %v6003_v48, %v5511_v21  ;;  %v1046_v21 = vsel %vm659_vm13, %v5505_v15, %v6003_v48 }
 0x354   : > { %663 = vmatprep.subr.bf16.mxu1 %v652_v9 }
 0x355   : > { %918 = vmatpush1.bf16.msra.mxu0 %v906_v3  ;;  %664 = vmatpush1.bf16.msra.mxu1 %v651_v12  ;;  %v1123_v20 = vpop.permute.xlu0 %1122  ;;  %v647_v44 = vpop.permute.xlu1 %646 }
 0x356   : > { %985 = vmatprep.subr.bf16.mxu0 %v975_v16  ;;  %v654_v14 = vsel %vm650_vm15, %v647_v44, %v5543_v28  ;;  %v653_v39 = vsel %vm650_vm15, %v5537_v27, %v647_v44  ;;  %v974_v27 = vsel %vm973_vm0, %v5487_v17, %v5966_v47  ;;  %v977_v28 = vsel %vm973_vm0, %v5992_v55, %v5495_v18 }
 0x357   : > { %3047 = vrot.lane.b32.xlu0 %v5323_v63, %s5124_s25  ;;  %3045 = vrot.lane.b32.xlu1 %v5313_v61, %s5124_s25  ;;  %v976_v17 = vsel %vm973_vm0, %v5489_v5, %v5992_v55  ;;  %v1045_v18 = vsel %vm659_vm13, %v5977_v7, %v5497_v11  ;;  %v1134_v12 = vsel %vm1132_vm1, %v1123_v20, %v5561_v33  ;;  %v625_v5 = vld [vmem:[%s7182_s5] sm:$0x3]  ;;  %v4720_v55 = vld [vmem:[%s7182_s5 + $0x46] sm:$0x3]  ;;  %vm2047_vm15 = vcmask 244736  }
 0x358   : > { %665 = vmatprep.subr.bf16.mxu1 %v654_v14  ;;  %v626_v11 = vpack.c.bf16 %v625_v5, %v625_v5  ;;  %v960_v33 = vpack.c.bf16 %v4720_v55, %v4720_v55  ;;  %vm2136_vm0 = vcmask 891904  }
 0x359   : > { %666 = vmatpush1.bf16.msra.mxu1 %v653_v39  ;;  %v1129_v13 = vpop.permute.xlu0 %1128  ;;  %v6044_v51 = vpop.permute.xlu1 %1695 }
 0x35a   : > { %707 = vmatprep.subr.bf16.mxu1 %v5302_v56  ;;  %v1703_v5 = vsel %vm1699_vm5, %v6044_v51, %v5559_v32  ;;  %v1702_v32 = vsel %vm1699_vm5, %v5553_v31, %v6044_v51  ;;  %v4728_v31 = vld [vmem:[%s7182_s5 + $0x1e] sm:$0x3]  ;;  %v4738_v51 = vld [vmem:[%s7182_s5 + $0x4] sm:$0x3] }
 0x35b   : > { %3128 = vrot.lane.b32.xlu0 %v5302_v56, %s5125_s19  ;;  %3043 = vrot.lane.b32.xlu1 %v5319_v62, %s5124_s25 }
 0x35c   : > { %4712 = vmatmul.mubr.msk.bf16.vlgmr.msra.gmra.mrb[0].mxu1 %vm659_vm13, %v631_v4  ;;  %4719 = vmatmul.mubr.msk.bf16.vlgmr.msra.gmra.mrb[0].mxu0 %vm659_vm13, %v890_v10 }
 0x35d   : > { %986 = vmatpush1.bf16.msra.mxu0 %v974_v27  ;;  %708 = vmatpush1.bf16.msra.mxu1 %v5306_v57  ;;  %v6060_v8 = vpop.permute.xlu0 %1187  ;;  %v6062_v9 = vpop.permute.xlu1 %1757 }
 0x35e   : > { %987 = vmatprep.subr.bf16.mxu0 %v977_v28  ;;  %709 = vmatprep.subr.bf16.mxu1 %v5313_v61 }
 0x35f   : > { %3126 = vrot.lane.b32.xlu0 %v5306_v57, %s5125_s19  ;;  %3130 = vrot.lane.b32.xlu1 %v5310_v59, %s5125_s19 }
 0x360   : > { %739 = vmatprep.mubr.bf16.mxu1 %v7312_v52  ;;  %1017 = vmatprep.mubr.bf16.mxu0 %v7312_v52 }
 0x361   : > { %988 = vmatpush1.bf16.msra.mxu0 %v976_v17  ;;  %710 = vmatpush1.bf16.msra.mxu1 %v5319_v62  ;;  %v6078_v47 = vpop.permute.xlu0 %1193  ;;  %v6082_v3 = vpop.permute.xlu1 %1763 }
 0x362   : > { %1055 = vmatprep.subr.bf16.mxu0 %v1045_v18  ;;  %1144 = vmatprep.subr.bf16.mxu1 %v1134_v12  ;;  %v1201_v48 = vsel %vm1197_vm2, %v6078_v47, %v5609_v45  ;;  %v1635_v45 = vsel %vm1634_vm3, %v5519_v23, %v5988_v43  ;;  %v4739_v23 = vld [vmem:[%s7182_s5 + $0x12] sm:$0x3]  ;;  %v1701_v18 = vsel %vm1699_vm5, %v6014_v6, %v5545_v29 }
 0x363   : > { %3632 = vrot.lane.b32.xlu0 %v5310_v59, %s5126_s15  ;;  %3630 = vrot.lane.b32.xlu1 %v5302_v56, %s5126_s15  ;;  %v1044_v56 = vsel %vm659_vm13, %v5503_v19, %v5977_v7  ;;  %v1133_v59 = vsel %vm1132_vm1, %v5567_v34, %v1123_v20  ;;  %v4725_v19 = vld [vmem:[%s7182_s5 + $0x10] sm:$0x3]  ;;  %v1135_v34 = vsel %vm1132_vm1, %v5583_v38, %v1129_v13  ;;  %v4722_v38 = vld [vmem:[%s7182_s5 + $0x54] sm:$0x3] }
 0x364   : > { %v1636_v7 = vsel %vm1634_vm3, %v5988_v43, %v5513_v22  ;;  %v1198_v22 = vsel %vm1197_vm2, %v5599_v42, %v6060_v8  ;;  %v1200_v42 = vsel %vm1197_vm2, %v5615_v46, %v6078_v47  ;;  %v4724_v46 = vld [vmem:[%s7182_s5 + $0x2] sm:$0x3]  ;;  %v1637_v43 = vsel %vm1634_vm3, %v5535_v26, %v6001_v2 }
 0x365   : > { %v6094_v16 = vpop.permute.xlu0 %1255  ;;  %v6096_v44 = vpop.permute.xlu1 %1827  ;;  %v1621_v17 = vpack.c.bf16 %v4739_v23, %v4739_v23  ;;  %v1700_v29 = vsel %vm1699_vm5, %v5551_v30, %v6014_v6  ;;  %v1769_v6 = vsel %vm1767_vm7, %v6062_v9, %v5575_v36  ;;  %v1252_v36 = vpack.c.bf16 %v4728_v31, %v4728_v31  ;;  %v7319_v23 = vld [vmem:[#allocation21_spill] sm:$0xff]  ;;  %v4744_v31 = vld [vmem:[%s7182_s5 + $0x2e] sm:$0x3] }
 0x366   : > { %v1267_v10 = vsel %vm1265_vm4, %v6094_v16, %v5625_v49  ;;  %v6192_v49 = vld [vmem:[#allocation2] sm:$0xff]  ;;  %v1266_v26 = vsel %vm1265_vm4, %v5631_v50, %v6094_v16  ;;  %v1618_v16 = vpack.c.bf16 %v4738_v51, %v4738_v51  ;;  %vm2701_vm5 = vcmask 1014784  }
 0x367   : > { %3134 = vrot.lane.b32.xlu0 %v5313_v61, %s5125_s19  ;;  %3628 = vrot.lane.b32.xlu1 %v5306_v57, %s5126_s15  ;;  %v1136_v57 = vsel %vm1132_vm1, %v1129_v13, %v5577_v37  ;;  %v1119_v37 = vpack.c.bf16 %v4725_v19, %v4725_v19  ;;  %v1638_v13 = vsel %vm1634_vm3, %v6001_v2, %v5529_v25  ;;  %v6196_v25 = vld [vmem:[#allocation2 + $0x10] sm:$0xff]  ;;  %v6233_v50 = vld [vmem:[#allocation2 + $0x20] sm:$0xff]  ;;  %vm2201_vm1 = vcmask 1022976  }
 0x368   : > { %4713 = vmatmul.mubr.msk.bf16.vlgmr.msra.gmra.mrb[0].mxu1 %vm659_vm13, %v626_v11  ;;  %4721 = vmatmul.mubr.msk.bf16.vlgmr.msra.gmra.mrb[0].mxu0 %vm659_vm13, %v960_v33  ;;  %v1771_v19 = vsel %vm1767_vm7, %v6082_v3, %v5591_v40  ;;  %v7314_v40 = vld [vmem:[#allocation3_spill] sm:$0xff]  ;;  %vm3049_vm3 = vcmask 228352  }
 0x369   : > { %1056 = vmatpush1.bf16.msra.mxu0 %v1044_v56  ;;  %1145 = vmatpush1.bf16.msra.mxu1 %v1133_v59  ;;  %v6114_v0 = vpop.permute.xlu0 %1261  ;;  %v6116_v14 = vpop.permute.xlu1 %1833 }
 0x36a   : > { %1057 = vmatprep.subr.bf16.mxu0 %v1047_v24  ;;  %1146 = vmatprep.subr.bf16.mxu1 %v1136_v57  ;;  %v1269_v2 = vsel %vm1265_vm4, %v6114_v0, %v5641_v53  ;;  %v1268_v30 = vsel %vm1265_vm4, %v5647_v54, %v6114_v0  ;;  %v1768_v57 = vsel %vm1767_vm7, %v5569_v35, %v6062_v9  ;;  %v7315_v9 = vld [vmem:[#allocation17_spill] sm:$0xff]  ;;  %vm2269_vm4 = vcmask 760832  }
 0x36b   : > { %3132 = vrot.lane.b32.xlu0 %v5319_v62, %s5125_s19  ;;  %3136 = vrot.lane.b32.xlu1 %v5323_v63, %s5125_s19  ;;  %v1199_v62 = vsel %vm1197_vm2, %v6060_v8, %v5593_v41  ;;  %v1030_v41 = vpack.c.bf16 %v4722_v38, %v4722_v38  ;;  %v1116_v8 = vpack.c.bf16 %v4724_v46, %v4724_v46  ;;  %vm2636_vm2 = vcmask 883712  }
 0x36c   : > { %1176 = vmatprep.mubr.bf16.mxu1 %v7312_v52  ;;  %1087 = vmatprep.mubr.bf16.mxu0 %v7312_v52 }
 0x36d   : > { %1058 = vmatpush1.bf16.msra.mxu0 %v1046_v21  ;;  %1147 = vmatpush1.bf16.msra.mxu1 %v1135_v34  ;;  %v6138_v20 = vpop.permute.xlu0 %1325  ;;  %v6140_v15 = vpop.permute.xlu1 %1897 }
 0x36e   : > { %1209 = vmatprep.subr.bf16.mxu1 %v1199_v62  ;;  %1646 = vmatprep.subr.bf16.mxu0 %v1636_v7  ;;  %v1337_v53 = vsel %vm1335_vm6, %v6138_v20, %v5657_v60  ;;  %v6265_v60 = vld [vmem:[#allocation2 + $0x28] sm:$0xff]  ;;  %v1336_v24 = vsel %vm1335_vm6, %v5663_v1, %v6138_v20  ;;  %v7316_v62 = vld [vmem:[#allocation5_spill] sm:$0xff] }
 0x36f   : > { %3638 = vrot.lane.b32.xlu0 %v5323_v63, %s5126_s15  ;;  %3636 = vrot.lane.b32.xlu1 %v5313_v61, %s5126_s15  ;;  %v6161_v61 = vld [vmem:[#allocation2 + $0x8] sm:$0xff]  ;;  %v6165_v63 = vld [vmem:[#allocation2 + $0x18] sm:$0xff]  ;;  %v1839_v7 = vsel %vm1837_vm9, %v6096_v44, %v7316_v62 }
 0x370   : > { %4726 = vmatmul.mubr.msk.bf16.vlgmr.msra.gmra.mrb[4].mxu1 %vm659_vm13, %v1119_v37  ;;  %v7313_v1 = vld [vmem:[#allocation14_spill] sm:$0xff] }
 0x371   : > { %1210 = vmatpush1.bf16.msra.mxu1 %v1198_v22  ;;  %v6156_v39 = vpop.permute.xlu0 %1331  ;;  %v6158_v4 = vpop.permute.xlu1 %1903  ;;  %1241 = vmatprep.mubr.bf16.mxu1 %v7312_v52  ;;  %v4742_v22 = vld [vmem:[%s7182_s5 + $0x20] sm:$0x3] }
 0x372   : > { %1211 = vmatprep.subr.bf16.mxu1 %v1201_v48  ;;  %v1339_v0 = vsel %vm1335_vm6, %v6156_v39, %v5673_v58  ;;  %v1338_v35 = vsel %vm1335_vm6, %v7313_v1, %v6156_v39  ;;  %v1770_v58 = vsel %vm1767_vm7, %v7314_v40, %v6082_v3  ;;  %v4730_v3 = vld [vmem:[%s7182_s5 + $0x2c] sm:$0x3]  ;;  %v1754_v48 = vpack.c.bf16 %v4742_v22, %v4742_v22  ;;  %v7331_v22 = vld [vmem:[#allocation36_spill] sm:$0xff] }
 0x373   : > { %3193 = vrot.lane.b32.xlu0 %v6161_v61, %s5127_s23  ;;  %3634 = vrot.lane.b32.xlu1 %v6165_v63, %s5126_s15  ;;  %vm2339_vm6 = vcmask 629760   ;;  %vm2769_vm7 = vcmask 752640   ;;  %s5136_s15 = smov 42  }
 0x374   : > { %4723 = vmatmul.mubr.msk.bf16.vlgmr.msra.gmra.mrb[0].mxu0 %vm659_vm13, %v1030_v41  ;;  %v1322_v41 = vpack.c.bf16 %v4730_v3, %v4730_v3 }
 0x375   : > { %1212 = vmatpush1.bf16.msra.mxu1 %v1200_v42  ;;  %1647 = vmatpush1.bf16.msra.mxu0 %v1635_v45  ;;  %v6182_v27 = vpop.permute.xlu0 %1395  ;;  %v6184_v28 = vpop.permute.xlu1 %1967  ;;  %v7317_v45 = vld [vmem:[#allocation18_spill] sm:$0xff] }
 0x376   : > { %1277 = vmatprep.subr.bf16.mxu1 %v1267_v10  ;;  %1648 = vmatprep.subr.bf16.mxu0 %v1638_v13  ;;  %v1407_v37 = vsel %vm1405_vm8, %v6182_v27, %v7315_v9  ;;  %v1406_v10 = vsel %vm1405_vm8, %v7317_v45, %v6182_v27  ;;  %v7318_v13 = vld [vmem:[#allocation4_spill] sm:$0xff] }
 0x377   : > { %3191 = vrot.lane.b32.xlu0 %v6192_v49, %s5127_s23  ;;  %3195 = vrot.lane.b32.xlu1 %v6196_v25, %s5127_s23  ;;  %v1838_v46 = vsel %vm1837_vm9, %v7318_v13, %v6096_v44  ;;  %v7321_v44 = vld [vmem:[#allocation22_spill] sm:$0xff]  ;;  %v4746_v13 = vld [vmem:[%s7182_s5 + $0x3c] sm:$0x3] }
 0x378   : > { %1678 = vmatprep.mubr.bf16.mxu0 %v7312_v52 }
 0x379   : > { %1649 = vmatpush1.bf16.msra.mxu0 %v1637_v43  ;;  %v6207_v47 = vpop.permute.xlu0 %1401  ;;  %v6209_v12 = vpop.permute.xlu1 %1973 }
 0x37a   : > { %1711 = vmatprep.subr.bf16.mxu0 %v1701_v18  ;;  %v1409_v43 = vsel %vm1405_vm8, %v6207_v47, %v7319_v23  ;;  %v1408_v27 = vsel %vm1405_vm8, %v7321_v44, %v6207_v47  ;;  %v1894_v23 = vpack.c.bf16 %v4746_v13, %v4746_v13  ;;  %vm2409_vm8 = vcmask 498688  }
 0x37b   : > { %3697 = vrot.lane.b32.xlu0 %v6196_v25, %s5128_s26  ;;  %3695 = vrot.lane.b32.xlu1 %v6161_v61, %s5128_s26 }
 0x37c   : > { %4727 = vmatmul.mubr.msk.bf16.vlgmr.msra.gmra.mrb[4].mxu1 %vm659_vm13, %v1116_v8  ;;  %4740 = vmatmul.mubr.msk.bf16.vlgmr.msra.gmra.mrb[4].mxu0 %vm659_vm13, %v1621_v17  ;;  %v7320_v8 = vld [vmem:[#allocation7_spill] sm:$0xff] }
 0x37d   : > { %1278 = vmatpush1.bf16.msra.mxu1 %v1266_v26  ;;  %1712 = vmatpush1.bf16.msra.mxu0 %v1700_v29  ;;  %v6229_v55 = vpop.permute.xlu0 %2626  ;;  %v6231_v11 = vpop.permute.xlu1 %2037  ;;  %v1841_v17 = vsel %vm1837_vm9, %v6116_v14, %v7320_v8  ;;  %v7322_v29 = vld [vmem:[#allocation6_spill] sm:$0xff] }
 0x37e   : > { %1279 = vmatprep.subr.bf16.mxu1 %v1269_v2  ;;  %1713 = vmatprep.subr.bf16.mxu0 %v1703_v5  ;;  %v1840_v2 = vsel %vm1837_vm9, %v7322_v29, %v6116_v14  ;;  %v7323_v5 = vld [vmem:[#allocation28_spill] sm:$0xff]  ;;  %vm2479_vm9 = vcmask 367616  }
 0x37f   : > { %3199 = vrot.lane.b32.xlu0 %v6233_v50, %s5127_s23  ;;  %3693 = vrot.lane.b32.xlu1 %v6192_v49, %s5128_s26  ;;  %v4732_v14 = vld [vmem:[%s7182_s5 + $0x3a] sm:$0x3] }
 0x380   : > { %1309 = vmatprep.mubr.bf16.mxu1 %v7312_v52  ;;  %1743 = vmatprep.mubr.bf16.mxu0 %v7312_v52  ;;  %v1392_v51 = vpack.c.bf16 %v4732_v14, %v4732_v14 }
 0x381   : > { %1280 = vmatpush1.bf16.msra.mxu1 %v1268_v30  ;;  %1714 = vmatpush1.bf16.msra.mxu0 %v1702_v32  ;;  %v6253_v33 = vpop.permute.xlu0 %2632  ;;  %v6255_v54 = vpop.permute.xlu1 %2043  ;;  %v7324_v32 = vld [vmem:[#allocation9_spill] sm:$0xff] }
 0x382   : > { %1347 = vmatprep.subr.bf16.mxu1 %v1337_v53  ;;  %1779 = vmatprep.subr.bf16.mxu0 %v1769_v6  ;;  %v1909_v53 = vsel %vm1907_vm11, %v6140_v15, %v7324_v32 }
 0x383   : > { %3197 = vrot.lane.b32.xlu0 %v6165_v63, %s5127_s23  ;;  %3201 = vrot.lane.b32.xlu1 %v6265_v60, %s5127_s23 }
 0x385   : > { %v6269_v56 = vpop.permute.xlu0 %2691  ;;  %v6271_v59 = vpop.permute.xlu1 %1465 }
 0x386   : > { %v1477_v30 = vsel %vm1475_vm10, %v6271_v59, %v7323_v5 }
 0x387   : > { %3703 = vrot.lane.b32.xlu0 %v6265_v60, %s5128_s26  ;;  %3701 = vrot.lane.b32.xlu1 %v6233_v50, %s5128_s26 }
 0x388   : > { %4729 = vmatmul.mubr.msk.bf16.vlgmr.msra.gmra.mrb[4].mxu1 %vm659_vm13, %v1252_v36  ;;  %4741 = vmatmul.mubr.msk.bf16.vlgmr.msra.gmra.mrb[4].mxu0 %vm659_vm13, %v1618_v16  ;;  %v1824_v36 = vpack.c.bf16 %v4744_v31, %v4744_v31  ;;  %v7338_v31 = vld [vmem:[#allocation15_spill] sm:$0xff] }
 0x389   : > { %1348 = vmatpush1.bf16.msra.mxu1 %v1336_v24  ;;  %1780 = vmatpush1.bf16.msra.mxu0 %v1768_v57  ;;  %v6291_v21 = vpop.permute.xlu0 %2697  ;;  %v6293_v34 = vpop.permute.xlu1 %1471  ;;  %v7325_v57 = vld [vmem:[#allocation27_spill] sm:$0xff] }
 0x38a   : > { %1349 = vmatprep.subr.bf16.mxu1 %v1339_v0  ;;  %1781 = vmatprep.subr.bf16.mxu0 %v1771_v19  ;;  %v1476_v0 = vsel %vm1475_vm10, %v7325_v57, %v6271_v59  ;;  %v7326_v19 = vld [vmem:[#allocation8_spill] sm:$0xff] }
 0x38b   : > { %3261 = vrot.lane.b32.xlu0 %v6161_v61, %s5129_s12  ;;  %3699 = vrot.lane.b32.xlu1 %v6165_v63, %s5128_s26  ;;  %v1908_v1 = vsel %vm1907_vm11, %v7326_v19, %v6140_v15  ;;  %v7329_v15 = vld [vmem:[#allocation31_spill] sm:$0xff] }
 0x38c   : > { %1379 = vmatprep.mubr.bf16.mxu1 %v7312_v52  ;;  %1811 = vmatprep.mubr.bf16.mxu0 %v7312_v52  ;;  %v1478_v59 = vsel %vm1475_vm10, %v7329_v15, %v6293_v34 }
 0x38d   : > { %1350 = vmatpush1.bf16.msra.mxu1 %v1338_v35  ;;  %1782 = vmatpush1.bf16.msra.mxu0 %v1770_v58  ;;  %v6313_v20 = vpop.permute.xlu0 %2126  ;;  %v6315_v38 = vpop.permute.xlu1 %1535  ;;  %v7327_v35 = vld [vmem:[#allocation32_spill] sm:$0xff]  ;;  %v7328_v58 = vld [vmem:[#allocation11_spill] sm:$0xff] }
 0x38e   : > { %1417 = vmatprep.subr.bf16.mxu1 %v1407_v37  ;;  %1849 = vmatprep.subr.bf16.mxu0 %v1839_v7  ;;  %v1479_v40 = vsel %vm1475_vm10, %v6293_v34, %v7327_v35  ;;  %v1911_v9 = vsel %vm1907_vm11, %v6158_v4, %v7328_v58  ;;  %v7330_v7 = vld [vmem:[#allocation10_spill] sm:$0xff]  ;;  %vm2839_vm10 = vcmask 621568  }
 0x38f   : > { %3259 = vrot.lane.b32.xlu0 %v6192_v49, %s5129_s12  ;;  %3263 = vrot.lane.b32.xlu1 %v6196_v25, %s5129_s12  ;;  %v1910_v3 = vsel %vm1907_vm11, %v7330_v7, %v6158_v4  ;;  %v4734_v4 = vld [vmem:[%s7182_s5 + $0x48] sm:$0x3]  ;;  %v4748_v35 = vld [vmem:[%s7182_s5 + $0x4a] sm:$0x3]  ;;  %vm2549_vm11 = vcmask 236544  }
 0x390   : > { %v1964_v58 = vpack.c.bf16 %v4748_v35, %v4748_v35 }
 0x391   : > { %v6327_v39 = vpop.permute.xlu0 %2132  ;;  %v6329_v42 = vpop.permute.xlu1 %1541 }
 0x393   : > { %3765 = vrot.lane.b32.xlu0 %v6196_v25, %s5130_s18  ;;  %3763 = vrot.lane.b32.xlu1 %v6161_v61, %s5130_s18 }
 0x394   : > { %4731 = vmatmul.mubr.msk.bf16.vlgmr.msra.gmra.mrb[4].mxu1 %vm659_vm13, %v1322_v41  ;;  %4743 = vmatmul.mubr.msk.bf16.vlgmr.msra.gmra.mrb[4].mxu0 %vm659_vm13, %v1754_v48  ;;  %v1547_v41 = vsel %vm1545_vm12, %v6315_v38, %v7331_v22  ;;  %v7332_v48 = vld [vmem:[#allocation13_spill] sm:$0xff] }
 0x395   : > { %1418 = vmatpush1.bf16.msra.mxu1 %v1406_v10  ;;  %1850 = vmatpush1.bf16.msra.mxu0 %v1838_v46  ;;  %v6349_v18 = vpop.permute.xlu0 %2191  ;;  %v6351_v26 = vpop.permute.xlu1 %2759  ;;  %v1979_v45 = vsel %vm1977_vm14, %v6184_v28, %v7332_v48  ;;  %v1462_v46 = vpack.c.bf16 %v4734_v4, %v4734_v4 }
 0x396   : > { %1419 = vmatprep.subr.bf16.mxu1 %v1409_v43  ;;  %1851 = vmatprep.subr.bf16.mxu0 %v1841_v17  ;;  %v7333_v17 = vld [vmem:[#allocation35_spill] sm:$0xff] }
 0x397   : > { %3267 = vrot.lane.b32.xlu0 %v6233_v50, %s5129_s12  ;;  %3761 = vrot.lane.b32.xlu1 %v6192_v49, %s5130_s18  ;;  %v1546_v44 = vsel %vm1545_vm12, %v7333_v17, %v6315_v38  ;;  %v7346_v17 = vld [vmem:[#allocation46_spill] sm:$0xff] }
 0x398   : > { %1449 = vmatprep.mubr.bf16.mxu1 %v7312_v52  ;;  %1881 = vmatprep.mubr.bf16.mxu0 %v7312_v52 }
 0x399   : > { %1420 = vmatpush1.bf16.msra.mxu1 %v1408_v27  ;;  %1852 = vmatpush1.bf16.msra.mxu0 %v1840_v2  ;;  %v6371_v6 = vpop.permute.xlu0 %2829  ;;  %v6373_v47 = vpop.permute.xlu1 %2765  ;;  %v7334_v27 = vld [vmem:[#allocation12_spill] sm:$0xff] }
 0x39a   : > { %1487 = vmatprep.subr.bf16.mxu1 %v1477_v30  ;;  %1919 = vmatprep.subr.bf16.mxu0 %v1909_v53  ;;  %v1978_v29 = vsel %vm1977_vm14, %v7334_v27, %v6184_v28  ;;  %v7335_v2 = vld [vmem:[#allocation40_spill] sm:$0xff]  ;;  %v7337_v28 = vld [vmem:[#allocation39_spill] sm:$0xff] }
 0x39b   : > { %3265 = vrot.lane.b32.xlu0 %v6165_v63, %s5129_s12  ;;  %3269 = vrot.lane.b32.xlu1 %v6265_v60, %s5129_s12  ;;  %v1549_v5 = vsel %vm1545_vm12, %v6329_v42, %v7335_v2  ;;  %v7336_v30 = vld [vmem:[#allocation16_spill] sm:$0xff]  ;;  %v1548_v38 = vsel %vm1545_vm12, %v7337_v28, %v6329_v42  ;;  %s5135_s12 = smov 43   ;;  %vm2909_vm12 = vcmask 490496  }
 0x39c   : > { %v1981_v32 = vsel %vm1977_vm14, %v6209_v12, %v7336_v30 }
 0x39d   : > { %v6385_v16 = vpop.permute.xlu0 %2835  ;;  %v6387_v24 = vpop.permute.xlu1 %2197 }
 0x39f   : > { %3771 = vrot.lane.b32.xlu0 %v6265_v60, %s5130_s18  ;;  %3769 = vrot.lane.b32.xlu1 %v6233_v50, %s5130_s18 }
 0x3a0   : > { %4733 = vmatmul.mubr.msk.bf16.vlgmr.msra.gmra.mrb[4].mxu1 %vm659_vm13, %v1392_v51  ;;  %4745 = vmatmul.mubr.msk.bf16.vlgmr.msra.gmra.mrb[4].mxu0 %vm659_vm13, %v1824_v36  ;;  %v1980_v51 = vsel %vm1977_vm14, %v7338_v31, %v6209_v12  ;;  %v7339_v36 = vld [vmem:[#allocation20_spill] sm:$0xff]  ;;  %v4736_v12 = vld [vmem:[%s7182_s5 + $0x56] sm:$0x3]  ;;  %vm3138_vm14 = vcmask 875520  }
 0x3a1   : > { %1488 = vmatpush1.bf16.msra.mxu1 %v1476_v0  ;;  %1920 = vmatpush1.bf16.msra.mxu0 %v1908_v1  ;;  %v6407_v37 = vpop.permute.xlu0 %2329  ;;  %v6409_v62 = vpop.permute.xlu1 %2259  ;;  %v2049_v57 = vsel %vm2047_vm15, %v6231_v11, %v7339_v36  ;;  %v7340_v0 = vld [vmem:[#allocation41_spill] sm:$0xff]  ;;  %v7350_v36 = vld [vmem:[#allocation52_spill] sm:$0xff] }
 0x3a2   : > { %1489 = vmatprep.subr.bf16.mxu1 %v1479_v40  ;;  %1921 = vmatprep.subr.bf16.mxu0 %v1911_v9  ;;  %v2138_v19 = vsel %vm2136_vm0, %v6313_v20, %v7340_v0  ;;  %v1532_v40 = vpack.c.bf16 %v4736_v12, %v4736_v12  ;;  %v4752_v12 = vld [vmem:[%s7182_s5 + $0x6] sm:$0x3] }
 0x3a3   : > { %3331 = vrot.lane.b32.xlu0 %v6161_v61, %s5131_s24  ;;  %3767 = vrot.lane.b32.xlu1 %v6165_v63, %s5130_s18 }
 0x3a4   : > { %1519 = vmatprep.mubr.bf16.mxu1 %v7312_v52  ;;  %1951 = vmatprep.mubr.bf16.mxu0 %v7312_v52 }
 0x3a5   : > { %1490 = vmatpush1.bf16.msra.mxu1 %v1478_v59  ;;  %1922 = vmatpush1.bf16.msra.mxu0 %v1910_v3  ;;  %v6429_v10 = vpop.permute.xlu0 %2335  ;;  %v6431_v34 = vpop.permute.xlu1 %2265  ;;  %v7341_v59 = vld [vmem:[#allocation19_spill] sm:$0xff]  ;;  %v7342_v3 = vld [vmem:[#allocation42_spill] sm:$0xff] }
 0x3a6   : > { %1557 = vmatprep.subr.bf16.mxu1 %v1547_v41  ;;  %1989 = vmatprep.subr.bf16.mxu0 %v1979_v45  ;;  %v2048_v7 = vsel %vm2047_vm15, %v7341_v59, %v6231_v11  ;;  %v2137_v22 = vsel %vm2136_vm0, %v7342_v3, %v6313_v20  ;;  %v7343_v41 = vld [vmem:[#allocation24_spill] sm:$0xff]  ;;  %v7344_v45 = vld [vmem:[#allocation45_spill] sm:$0xff]  ;;  %v4753_v11 = vld [vmem:[%s7182_s5 + $0x14] sm:$0x3] }
 0x3a7   : > { %3329 = vrot.lane.b32.xlu0 %v6192_v49, %s5131_s24  ;;  %3333 = vrot.lane.b32.xlu1 %v6196_v25, %s5131_s24  ;;  %v2051_v48 = vsel %vm2047_vm15, %v6255_v54, %v7343_v41  ;;  %v2140_v4 = vsel %vm2136_vm0, %v6327_v39, %v7344_v45  ;;  %v7345_v20 = vld [vmem:[#allocation23_spill] sm:$0xff]  ;;  %v2123_v27 = vpack.c.bf16 %v4753_v11, %v4753_v11  ;;  %v7353_v3 = vld [vmem:[#allocation56_spill] sm:$0xff]  ;;  %v7354_v41 = vld [vmem:[#allocation29_spill] sm:$0xff] }
 0x3a9   : > { %v6443_v43 = vpop.permute.xlu0 %2399  ;;  %v6445_v8 = vpop.permute.xlu1 %2899 }
 0x3ab   : > { %3835 = vrot.lane.b32.xlu0 %v6196_v25, %s5132_s10  ;;  %3833 = vrot.lane.b32.xlu1 %v6161_v61, %s5132_s10 }
 0x3ac   : > { %4735 = vmatmul.mubr.msk.bf16.vlgmr.msra.gmra.mrb[4].mxu1 %vm659_vm13, %v1462_v46  ;;  %4747 = vmatmul.mubr.msk.bf16.vlgmr.msra.gmra.mrb[4].mxu0 %vm659_vm13, %v1894_v23  ;;  %v2050_v23 = vsel %vm2047_vm15, %v7345_v20, %v6255_v54  ;;  %v7356_v20 = vld [vmem:[#allocation30_spill] sm:$0xff]  ;;  %vm3203_vm15 = vcmask 1006592  }
 0x3ad   : > { %1558 = vmatpush1.bf16.msra.mxu1 %v1546_v44  ;;  %1990 = vmatpush1.bf16.msra.mxu0 %v1978_v29  ;;  %v6465_v53 = vpop.permute.xlu0 %2969  ;;  %v6467_v14 = vpop.permute.xlu1 %2905  ;;  %v2139_v44 = vsel %vm2136_vm0, %v7346_v17, %v6327_v39  ;;  %v7347_v29 = vld [vmem:[#allocation49_spill] sm:$0xff]  ;;  %v4750_v39 = vld [vmem:[%s7182_s5 + $0x58] sm:$0x3]  ;;  %vm2979_vm0 = vcmask 359424  }
 0x3ae   : > { %1559 = vmatprep.subr.bf16.mxu1 %v1549_v5  ;;  %1991 = vmatprep.subr.bf16.mxu0 %v1981_v32  ;;  %v2203_v2 = vsel %vm2201_vm1, %v6349_v18, %v7347_v29  ;;  %v7348_v5 = vld [vmem:[#allocation25_spill] sm:$0xff] }
 0x3af   : > { %3337 = vrot.lane.b32.xlu0 %v6233_v50, %s5131_s24  ;;  %3831 = vrot.lane.b32.xlu1 %v6192_v49, %s5132_s10  ;;  %v2638_v30 = vsel %vm2636_vm2, %v6229_v55, %v7348_v5  ;;  %v7358_v29 = vld [vmem:[#allocation33_spill] sm:$0xff] }
 0x3b0   : > { %1589 = vmatprep.mubr.bf16.mxu1 %v7312_v52  ;;  %2021 = vmatprep.mubr.bf16.mxu0 %v7312_v52 }
 0x3b1   : > { %1560 = vmatpush1.bf16.msra.mxu1 %v1548_v38  ;;  %1992 = vmatpush1.bf16.msra.mxu0 %v1980_v51  ;;  %v6487_v1 = vpop.permute.xlu0 %2975  ;;  %v6489_v42 = vpop.permute.xlu1 %2405  ;;  %v7349_v38 = vld [vmem:[#allocation50_spill] sm:$0xff]  ;;  %v2034_v51 = vpack.c.bf16 %v4750_v39, %v4750_v39 }
 0x3b2   : > { %2059 = vmatprep.subr.bf16.mxu0 %v2049_v57  ;;  %2148 = vmatprep.subr.bf16.mxu1 %v2138_v19  ;;  %v2202_v31 = vsel %vm2201_vm1, %v7349_v38, %v6349_v18  ;;  %v2205_v57 = vsel %vm2201_vm1, %v6387_v24, %v7350_v36  ;;  %v7351_v18 = vld [vmem:[#allocation51_spill] sm:$0xff]  ;;  %v7362_v36 = vld [vmem:[#allocation37_spill] sm:$0xff] }
 0x3b3   : > { %3335 = vrot.lane.b32.xlu0 %v6165_v63, %s5131_s24  ;;  %3339 = vrot.lane.b32.xlu1 %v6265_v60, %s5131_s24 }
 0x3b5   : > { %v6501_v9 = vpop.permute.xlu0 %2539  ;;  %v6503_v15 = vpop.permute.xlu1 %2469 }
 0x3b7   : > { %3841 = vrot.lane.b32.xlu0 %v6265_v60, %s5132_s10  ;;  %3839 = vrot.lane.b32.xlu1 %v6233_v50, %s5132_s10 }
 0x3b8   : > { %4737 = vmatmul.mubr.msk.bf16.vlgmr.msra.gmra.mrb[4].mxu1 %vm659_vm13, %v1532_v40  ;;  %4749 = vmatmul.mubr.msk.bf16.vlgmr.msra.gmra.mrb[4].mxu0 %vm659_vm13, %v1964_v58  ;;  %v2204_v40 = vsel %vm2201_vm1, %v7351_v18, %v6387_v24  ;;  %v7352_v58 = vld [vmem:[#allocation26_spill] sm:$0xff]  ;;  %v4767_v24 = vld [vmem:[%s7182_s5 + $0x16] sm:$0x3]  ;;  %vm3271_vm1 = vcmask 744448  }
 0x3b9   : > { %2060 = vmatpush1.bf16.msra.mxu0 %v2048_v7  ;;  %2149 = vmatpush1.bf16.msra.mxu1 %v2137_v22  ;;  %v6523_v13 = vpop.permute.xlu0 %2537  ;;  %v6525_v46 = vpop.permute.xlu1 %2475  ;;  %v2637_v59 = vsel %vm2636_vm2, %v7352_v58, %v6229_v55  ;;  %v2120_v7 = vpack.c.bf16 %v4752_v12, %v4752_v12  ;;  %v2271_v22 = vsel %vm2269_vm4, %v6409_v62, %v7353_v3  ;;  %v7355_v55 = vld [vmem:[#allocation55_spill] sm:$0xff]  ;;  %v7364_v18 = vld [vmem:[#allocation38_spill] sm:$0xff]  ;;  %v7365_v58 = vld [vmem:[#allocation65_spill] sm:$0xff] }
 0x3ba   : > { %2061 = vmatprep.subr.bf16.mxu0 %v2051_v48  ;;  %2150 = vmatprep.subr.bf16.mxu1 %v2140_v4  ;;  %v2640_v48 = vsel %vm2636_vm2, %v6253_v33, %v7354_v41  ;;  %v2270_v11 = vsel %vm2269_vm4, %v7355_v55, %v6409_v62  ;;  %v2623_v17 = vpack.c.bf16 %v4767_v24, %v4767_v24 }
 0x3bb   : > { %3401 = vrot.lane.b32.xlu0 %v6161_v61, %s5133_s16  ;;  %3837 = vrot.lane.b32.xlu1 %v6165_v63, %s5132_s10  ;;  %s5138_s10 = smov 26  }
 0x3bc   : > { %2180 = vmatprep.mubr.bf16.mxu1 %v7312_v52  ;;  %2091 = vmatprep.mubr.bf16.mxu0 %v7312_v52 }
 0x3bd   : > { %2062 = vmatpush1.bf16.msra.mxu0 %v2050_v23  ;;  %2151 = vmatpush1.bf16.msra.mxu1 %v2139_v44  ;;  %v3042_v54 = vpop.permute.xlu0 %3041  ;;  %v3040_v32 = vpop.permute.xlu1 %3039  ;;  %v2639_v23 = vsel %vm2636_vm2, %v7356_v20, %v6253_v33  ;;  %v7357_v44 = vld [vmem:[#allocation60_spill] sm:$0xff]  ;;  %v4756_v33 = vld [vmem:[%s7182_s5 + $0x22] sm:$0x3]  ;;  %vm3640_vm2 = vcmask 867328  }
 0x3be   : > { %2213 = vmatprep.subr.bf16.mxu1 %v2203_v2  ;;  %2648 = vmatprep.subr.bf16.mxu0 %v2638_v30  ;;  %v6552_v28 = vsel %vm3049_vm3, %v3040_v32, %v3042_v54  ;;  %v2703_v2 = vsel %vm2701_vm5, %v6269_v56, %v7358_v29  ;;  %v7359_v30 = vld [vmem:[#allocation59_spill] sm:$0xff]  ;;  %v2256_v38 = vpack.c.bf16 %v4756_v33, %v4756_v33  ;;  %v7368_v20 = vld [vmem:[#allocation69_spill] sm:$0xff]  ;;  %v7371_v33 = vld [vmem:[#allocation72_spill] sm:$0xff] }
 0x3bf   : > { %3399 = vrot.lane.b32.xlu0 %v6192_v49, %s5133_s16  ;;  %3403 = vrot.lane.b32.xlu1 %v6196_v25, %s5133_s16  ;;  %v2272_v54 = vsel %vm2269_vm4, %v7359_v30, %v6431_v34  ;;  %v7370_v29 = vld [vmem:[#allocation43_spill] sm:$0xff]  ;;  %v2413_v30 = vsel %vm2409_vm8, %v6489_v42, %v7371_v33 }
 0x3c0   : > { %4754 = vmatmul.mubr.msk.bf16.vlgmr.msra.gmra.mrb[8].mxu1 %vm659_vm13, %v2123_v27  ;;  %v2273_v27 = vsel %vm2269_vm4, %v6431_v34, %v7357_v44  ;;  %vm3341_vm4 = vcmask 613376  }
 0x3c1   : > { %2214 = vmatpush1.bf16.msra.mxu1 %v2202_v31  ;;  %v6565_v0 = vpop.permute.xlu0 %2545  ;;  %v3038_v19 = vpop.permute.xlu1 %3037  ;;  %2245 = vmatprep.mubr.bf16.mxu1 %v7312_v52  ;;  %v7361_v31 = vld [vmem:[#allocation61_spill] sm:$0xff] }
 0x3c2   : > { %2215 = vmatprep.subr.bf16.mxu1 %v2205_v57  ;;  %v6572_v35 = vsel %vm3049_vm3, %v3038_v19, %v3040_v32  ;;  %v7360_v32 = vld [vmem:[#allocation34_spill] sm:$0xff]  ;;  %v2705_v57 = vsel %vm2701_vm5, %v6291_v21, %v7362_v36 }
 0x3c3   : > { %3905 = vrot.lane.b32.xlu0 %v6196_v25, %s5134_s17  ;;  %3903 = vrot.lane.b32.xlu1 %v6161_v61, %s5134_s17  ;;  %v2702_v39 = vsel %vm2701_vm5, %v7360_v32, %v6269_v56  ;;  %v7363_v56 = vld [vmem:[#allocation62_spill] sm:$0xff] }
 0x3c4   : > { %4751 = vmatmul.mubr.msk.bf16.vlgmr.msra.gmra.mrb[4].mxu0 %vm659_vm13, %v2034_v51  ;;  %v2341_v51 = vsel %vm2339_vm6, %v6407_v37, %v7361_v31  ;;  %v2340_v12 = vsel %vm2339_vm6, %v7363_v56, %v6407_v37  ;;  %v4758_v37 = vld [vmem:[%s7182_s5 + $0x30] sm:$0x3]  ;;  %v7375_v56 = vld [vmem:[#allocation76_spill] sm:$0xff] }
 0x3c5   : > { %2216 = vmatpush1.bf16.msra.mxu1 %v2204_v40  ;;  %2649 = vmatpush1.bf16.msra.mxu0 %v2637_v59  ;;  %v6591_v45 = vpop.permute.xlu0 %2543  ;;  %v6593_v4 = vpop.permute.xlu1 %2547  ;;  %v2704_v40 = vsel %vm2701_vm5, %v7364_v18, %v6291_v21  ;;  %v2343_v59 = vsel %vm2339_vm6, %v6429_v10, %v7365_v58  ;;  %v4766_v21 = vld [vmem:[%s7182_s5 + $0x8] sm:$0x3]  ;;  %v7376_v18 = vld [vmem:[#allocation53_spill] sm:$0xff]  ;;  %vm3773_vm5 = vcmask 736256  }
 0x3c6   : > { %2281 = vmatprep.subr.bf16.mxu1 %v2271_v22  ;;  %2650 = vmatprep.subr.bf16.mxu0 %v2640_v48  ;;  %v7367_v48 = vld [vmem:[#allocation66_spill] sm:$0xff]  ;;  %v2620_v55 = vpack.c.bf16 %v4766_v21, %v4766_v21  ;;  %v7378_v21 = vld [vmem:[#allocation80_spill] sm:$0xff] }
 0x3c7   : > { %3407 = vrot.lane.b32.xlu0 %v6233_v50, %s5133_s16  ;;  %3901 = vrot.lane.b32.xlu1 %v6192_v49, %s5134_s17  ;;  %v2342_v24 = vsel %vm2339_vm6, %v7367_v48, %v6429_v10  ;;  %v7369_v10 = vld [vmem:[#allocation70_spill] sm:$0xff]  ;;  %vm3843_vm6 = vcmask 605184  }
 0x3c8   : > { %4755 = vmatmul.mubr.msk.bf16.vlgmr.msra.gmra.mrb[12].mxu1 %vm659_vm13, %v2120_v7  ;;  %2680 = vmatprep.mubr.bf16.mxu0 %v7312_v52  ;;  %v7366_v7 = vld [vmem:[#allocation44_spill] sm:$0xff] }
 0x3c9   : > { %2282 = vmatpush1.bf16.msra.mxu1 %v2270_v11  ;;  %2651 = vmatpush1.bf16.msra.mxu0 %v2639_v23  ;;  %v6616_v5 = vpop.permute.xlu0 %3047  ;;  %v6618_v62 = vpop.permute.xlu1 %3045  ;;  %v2771_v3 = vsel %vm2769_vm7, %v6351_v26, %v7366_v7  ;;  %v2326_v11 = vpack.c.bf16 %v4758_v37, %v4758_v37  ;;  %v2411_v23 = vsel %vm2409_vm8, %v6443_v43, %v7368_v20  ;;  %v7380_v20 = vld [vmem:[#allocation54_spill] sm:$0xff] }
 0x3ca   : > { %2283 = vmatprep.subr.bf16.mxu1 %v2273_v27  ;;  %2713 = vmatprep.subr.bf16.mxu0 %v2703_v2  ;;  %v2410_v27 = vsel %vm2409_vm8, %v7369_v10, %v6443_v43  ;;  %v2770_v2 = vsel %vm2769_vm7, %v7370_v29, %v6351_v26  ;;  %v4760_v43 = vld [vmem:[%s7182_s5 + $0x3e] sm:$0x3]  ;;  %v7373_v26 = vld [vmem:[#allocation71_spill] sm:$0xff]  ;;  %v2483_v37 = vsel %vm2479_vm9, %v6525_v46, %v7378_v21 }
 0x3cb   : > { %3405 = vrot.lane.b32.xlu0 %v6165_v63, %s5133_s16  ;;  %3409 = vrot.lane.b32.xlu1 %v6265_v60, %s5133_s16  ;;  %v2412_v31 = vsel %vm2409_vm8, %v7373_v26, %v6489_v42  ;;  %v7384_v26 = vld [vmem:[#allocation64_spill] sm:$0xff]  ;;  %vm3913_vm8 = vcmask 474112  }
 0x3cc   : > { %4768 = vmatmul.mubr.msk.bf16.vlgmr.msra.gmra.mrb[8].mxu0 %vm659_vm13, %v2623_v17  ;;  %2313 = vmatprep.mubr.bf16.mxu1 %v7312_v52 }
 0x3cd   : > { %2284 = vmatpush1.bf16.msra.mxu1 %v2272_v54  ;;  %2714 = vmatpush1.bf16.msra.mxu0 %v2702_v39  ;;  %v6641_v34 = vpop.permute.xlu0 %3128  ;;  %v6643_v19 = vpop.permute.xlu1 %3043  ;;  %v7372_v54 = vld [vmem:[#allocation48_spill] sm:$0xff] }
 0x3ce   : > { %2351 = vmatprep.subr.bf16.mxu1 %v2341_v51  ;;  %2715 = vmatprep.subr.bf16.mxu0 %v2705_v57  ;;  %v2773_v32 = vsel %vm2769_vm7, %v6373_v47, %v7372_v54  ;;  %v7374_v51 = vld [vmem:[#allocation47_spill] sm:$0xff]  ;;  %v2396_v57 = vpack.c.bf16 %v4760_v43, %v4760_v43  ;;  %v7383_v54 = vld [vmem:[#allocation58_spill] sm:$0xff]  ;;  %v2553_v43 = vsel %vm2549_vm11, %v6565_v0, %v6593_v4 }
 0x3cf   : > { %3911 = vrot.lane.b32.xlu0 %v6265_v60, %s5134_s17  ;;  %3909 = vrot.lane.b32.xlu1 %v6233_v50, %s5134_s17  ;;  %v2772_v36 = vsel %vm2769_vm7, %v7374_v51, %v6373_v47  ;;  %v4770_v47 = vld [vmem:[%s7182_s5 + $0x24] sm:$0x3]  ;;  %v2552_v4 = vsel %vm2549_vm11, %v6591_v45, %v6565_v0  ;;  %v7385_v45 = vld [vmem:[#allocation63_spill] sm:$0xff]  ;;  %vm3411_vm7 = vcmask 482304  }
 0x3d0   : > { %4757 = vmatmul.mubr.msk.bf16.vlgmr.msra.gmra.mrb[16].mxu1 %vm659_vm13, %v2256_v38  ;;  %2745 = vmatprep.mubr.bf16.mxu0 %v7312_v52 }
 0x3d1   : > { %2352 = vmatpush1.bf16.msra.mxu1 %v2340_v12  ;;  %2716 = vmatpush1.bf16.msra.mxu0 %v2704_v40  ;;  %v6663_v22 = vpop.permute.xlu0 %3126  ;;  %v6665_v41 = vpop.permute.xlu1 %3130  ;;  %v2481_v12 = vsel %vm2479_vm9, %v6503_v15, %v7375_v56  ;;  %v2841_v40 = vsel %vm2839_vm10, %v6371_v6, %v7376_v18 }
 0x3d2   : > { %2353 = vmatprep.subr.bf16.mxu1 %v2343_v59  ;;  %2781 = vmatprep.subr.bf16.mxu0 %v2771_v3  ;;  %v7377_v59 = vld [vmem:[#allocation75_spill] sm:$0xff]  ;;  %v2756_v3 = vpack.c.bf16 %v4770_v47, %v4770_v47  ;;  %v3140_v56 = vsel %vm3138_vm14, %v6641_v34, %v6665_v41  ;;  %v3139_v0 = vsel %vm3138_vm14, %v6663_v22, %v6641_v34  ;;  %v4781_v22 = vld [vmem:[%s7182_s5 + $0x18] sm:$0x3] }
 0x3d3   : > { %3471 = vrot.lane.b32.xlu0 %v6161_v61, %s5135_s12  ;;  %3907 = vrot.lane.b32.xlu1 %v6165_v63, %s5134_s17  ;;  %v2480_v7 = vsel %vm2479_vm9, %v7377_v59, %v6503_v15  ;;  %v7379_v15 = vld [vmem:[#allocation79_spill] sm:$0xff]  ;;  %v2910_v41 = vsel %vm2909_vm12, %v7385_v45, %v6445_v8  ;;  %v3125_v21 = vpack.c.bf16 %v4781_v22, %v4781_v22  ;;  %s382_s17 = scalar_lea.vmem %s7185_s8, %s4822_s21 }
 0x3d4   : > { %2383 = vmatprep.mubr.bf16.mxu1 %v7312_v52 }
 0x3d5   : > { %2354 = vmatpush1.bf16.msra.mxu1 %v2342_v24  ;;  %v6684_v17 = vpop.permute.xlu0 %3632  ;;  %v6686_v44 = vpop.permute.xlu1 %3630 }
 0x3d6   : > { %2421 = vmatprep.subr.bf16.mxu1 %v2411_v23  ;;  %v2840_v23 = vsel %vm2839_vm10, %v7380_v20, %v6371_v6  ;;  %v2550_v6 = vsel %vm2549_vm11, %v6523_v13, %v6501_v9  ;;  %v4772_v13 = vld [vmem:[%s7182_s5 + $0x32] sm:$0x3] }
 0x3d7   : > { %3469 = vrot.lane.b32.xlu0 %v6192_v49, %s5135_s12  ;;  %3473 = vrot.lane.b32.xlu1 %v6196_v25, %s5135_s12 }
 0x3d8   : > { %4769 = vmatmul.mubr.msk.bf16.vlgmr.msra.gmra.mrb[8].mxu0 %vm659_vm13, %v2620_v55  ;;  %4759 = vmatmul.mubr.msk.bf16.vlgmr.msra.gmra.mrb[20].mxu1 %vm659_vm13, %v2326_v11  ;;  %v4762_v55 = vld [vmem:[%s7182_s5 + $0x4c] sm:$0x3]  ;;  %v2482_v11 = vsel %vm2479_vm9, %v7379_v15, %v6525_v46  ;;  %vm3481_vm9 = vcmask 351232  }
 0x3d9   : > { %2422 = vmatpush1.bf16.msra.mxu1 %v2410_v27  ;;  %2782 = vmatpush1.bf16.msra.mxu0 %v2770_v2  ;;  %v6706_v39 = vpop.permute.xlu0 %3134  ;;  %v6708_v38 = vpop.permute.xlu1 %3628  ;;  %v2466_v10 = vpack.c.bf16 %v4762_v55, %v4762_v55  ;;  %v7381_v27 = vld [vmem:[#allocation81_spill] sm:$0xff] }
 0x3da   : > { %2423 = vmatprep.subr.bf16.mxu1 %v2413_v30  ;;  %2783 = vmatprep.subr.bf16.mxu0 %v2773_v32  ;;  %v2551_v29 = vsel %vm2549_vm11, %v6501_v9, %v7381_v27  ;;  %v7382_v2 = vld [vmem:[#allocation57_spill] sm:$0xff]  ;;  %v2842_v32 = vsel %vm2839_vm10, %v7383_v54, %v6385_v16  ;;  %vm3551_vm11 = vcmask 220160  }
 0x3db   : > { %3975 = vrot.lane.b32.xlu0 %v6196_v25, %s5136_s15  ;;  %3973 = vrot.lane.b32.xlu1 %v6161_v61, %s5136_s15  ;;  %v2843_v33 = vsel %vm2839_vm10, %v6385_v16, %v7382_v2  ;;  %v4764_v16 = vld [vmem:[%s7182_s5 + $0x5a] sm:$0x3]  ;;  %v4124_v54 = vld [vmem:[%s7183_s6] sm:$0x3]  ;;  %vm3983_vm10 = vcmask 343040  }
 0x3dc   : > { %2453 = vmatprep.mubr.bf16.mxu1 %v7312_v52  ;;  %2813 = vmatprep.mubr.bf16.mxu0 %v7312_v52 }
 0x3dd   : > { %2424 = vmatpush1.bf16.msra.mxu1 %v2412_v31  ;;  %2784 = vmatpush1.bf16.msra.mxu0 %v2772_v36  ;;  %v6731_v42 = vpop.permute.xlu0 %3132  ;;  %v6733_v58 = vpop.permute.xlu1 %3136  ;;  %v2911_v31 = vsel %vm2909_vm12, %v6445_v8, %v7384_v26  ;;  %v2826_v36 = vpack.c.bf16 %v4772_v13, %v4772_v13 }
 0x3de   : > { %2491 = vmatprep.subr.bf16.mxu1 %v2481_v12  ;;  %2851 = vmatprep.subr.bf16.mxu0 %v2841_v40  ;;  %v7386_v40 = vld [vmem:[#allocation68_spill] sm:$0xff]  ;;  %v3142_v59 = vsel %vm3138_vm14, %v6706_v39, %v6733_v58  ;;  %v3141_v8 = vsel %vm3138_vm14, %v6731_v42, %v6706_v39  ;;  %v7387_v58 = vld [vmem:[#allocation67_spill] sm:$0xff] }
 0x3df   : > { %3477 = vrot.lane.b32.xlu0 %v6233_v50, %s5135_s12  ;;  %3971 = vrot.lane.b32.xlu1 %v6192_v49, %s5136_s15  ;;  %v2913_v47 = vsel %vm2909_vm12, %v6467_v14, %v7386_v40 }
 0x3e0   : > { %4761 = vmatmul.mubr.msk.bf16.vlgmr.msra.gmra.mrb[24].mxu1 %vm659_vm13, %v2396_v57  ;;  %v2536_v57 = vpack.c.bf16 %v4764_v16, %v4764_v16 }
 0x3e1   : > { %2492 = vmatpush1.bf16.msra.mxu1 %v2480_v7  ;;  %v6749_v48 = vpop.permute.xlu0 %3638  ;;  %v6751_v24 = vpop.permute.xlu1 %3636  ;;  %2523 = vmatprep.mubr.bf16.mxu1 %v7312_v52 }
 0x3e2   : > { %2493 = vmatprep.subr.bf16.mxu1 %v2483_v37  ;;  %v7388_v37 = vld [vmem:[#allocation73_spill] sm:$0xff] }
 0x3e3   : > { %3475 = vrot.lane.b32.xlu0 %v6165_v63, %s5135_s12  ;;  %3479 = vrot.lane.b32.xlu1 %v6265_v60, %s5135_s12  ;;  %s4821_s12 = sshll.u32 %s7399_s27, 2 }
 0x3e4   : > { %4771 = vmatmul.mubr.msk.bf16.vlgmr.msra.gmra.mrb[8].mxu0 %vm659_vm13, %v2756_v3  ;;  %v2912_v3 = vsel %vm2909_vm12, %v7387_v58, %v6467_v14  ;;  %v4774_v14 = vld [vmem:[%s7182_s5 + $0x40] sm:$0x3]  ;;  %vm4053_vm12 = vcmask 211968  }
 0x3e5   : > { %2494 = vmatpush1.bf16.msra.mxu1 %v2482_v11  ;;  %2852 = vmatpush1.bf16.msra.mxu0 %v2840_v23  ;;  %v6774_v30 = vpop.permute.xlu0 %3193  ;;  %v6776_v46 = vpop.permute.xlu1 %3634  ;;  %v2896_v11 = vpack.c.bf16 %v4774_v14, %v4774_v14 }
 0x3e6   : > { %2561 = vmatprep.subr.bf16.mxu1 %v2551_v29  ;;  %2853 = vmatprep.subr.bf16.mxu0 %v2843_v33  ;;  %v7390_v29 = vld [vmem:[#allocation77_spill] sm:$0xff] }
 0x3e7   : > { %3981 = vrot.lane.b32.xlu0 %v6265_v60, %s5136_s15  ;;  %3979 = vrot.lane.b32.xlu1 %v6233_v50, %s5136_s15  ;;  %v2983_v2 = vsel %vm2979_vm0, %v6487_v1, %v7390_v29 }
 0x3e8   : > { %4763 = vmatmul.mubr.msk.bf16.vlgmr.msra.gmra.mrb[28].mxu1 %vm659_vm13, %v2466_v10  ;;  %2883 = vmatprep.mubr.bf16.mxu0 %v7312_v52  ;;  %v7389_v10 = vld [vmem:[#allocation74_spill] sm:$0xff] }
 0x3e9   : > { %2562 = vmatpush1.bf16.msra.mxu1 %v2550_v6  ;;  %2854 = vmatpush1.bf16.msra.mxu0 %v2842_v32  ;;  %v3192_v51 = vpop.permute.xlu0 %3191  ;;  %v3196_v9 = vpop.permute.xlu1 %3195  ;;  %v2980_v27 = vsel %vm2979_vm0, %v7389_v10, %v6465_v53 }
 0x3ea   : > { %2563 = vmatprep.subr.bf16.mxu1 %v2553_v43  ;;  %2921 = vmatprep.subr.bf16.mxu0 %v2911_v31  ;;  %v3204_v15 = vsel %vm3203_vm15, %v3192_v51, %v6774_v30 }
 0x3eb   : > { %3541 = vrot.lane.b32.xlu0 %v6161_v61, %s5137_s20  ;;  %3977 = vrot.lane.b32.xlu1 %v6165_v63, %s5136_s15  ;;  %s373_s15 = scalar_lea.vmem %s7184_s7, %s4821_s12 }
 0x3ec   : > { %2593 = vmatprep.mubr.bf16.mxu1 %v7312_v52 }
 0x3ed   : > { %2564 = vmatpush1.bf16.msra.mxu1 %v2552_v4  ;;  %v6813_v12 = vpop.permute.xlu0 %3697  ;;  %v6815_v18 = vpop.permute.xlu1 %3695 }
 0x3ee   : > { %3150 = vmatprep.subr.bf16.mxu1 %v3140_v56 }
 0x3ef   : > { %3539 = vrot.lane.b32.xlu0 %v6192_v49, %s5137_s20  ;;  %3543 = vrot.lane.b32.xlu1 %v6196_v25, %s5137_s20 }
 0x3f0   : > { %4773 = vmatmul.mubr.msk.bf16.vlgmr.msra.gmra.mrb[8].mxu0 %vm659_vm13, %v2826_v36  ;;  %4765 = vmatmul.mubr.msk.bf16.vlgmr.msra.gmra.mrb[32].mxu1 %vm659_vm13, %v2536_v57  ;;  %v3052_v36 = vsel %vm3049_vm3, %v6643_v19, %v6618_v62  ;;  %v4784_v57 = vld [vmem:[%s7182_s5 + $0x26] sm:$0x3] }
 0x3f1   : > { %2922 = vmatpush1.bf16.msra.mxu0 %v2910_v41  ;;  %3151 = vmatpush1.bf16.msra.mxu1 %v3139_v0  ;;  %v3200_v7 = vpop.permute.xlu0 %3199  ;;  %v6835_v34 = vpop.permute.xlu1 %3693  ;;  %v4778_v0 = vld [vmem:[%s7182_s5 + $0x5c] sm:$0x3]  ;;  %v3258_v19 = vpack.c.bf16 %v4784_v57, %v4784_v57 }
 0x3f2   : > { %2923 = vmatprep.subr.bf16.mxu0 %v2913_v47  ;;  %3152 = vmatprep.subr.bf16.mxu1 %v3142_v59  ;;  %v3036_v41 = vpack.c.bf16 %v4778_v0, %v4778_v0  ;;  %v3644_v59 = vsel %vm3640_vm2, %v6751_v24, %v6749_v48 }
 0x3f3   : > { %4045 = vrot.lane.b32.xlu0 %v6196_v25, %s5138_s10  ;;  %4043 = vrot.lane.b32.xlu1 %v6161_v61, %s5138_s10  ;;  %v2981_v25 = vsel %vm2979_vm0, %v6465_v53, %v7388_v37  ;;  %v3205_v61 = vsel %vm3203_vm15, %v6774_v30, %v3196_v9  ;;  %v7391_v53 = vld [vmem:[#allocation78_spill] sm:$0xff] }
 0x3f4   : > { %3182 = vmatprep.mubr.bf16.mxu1 %v7312_v52  ;;  %2953 = vmatprep.mubr.bf16.mxu0 %v7312_v52  ;;  %v2982_v6 = vsel %vm2979_vm0, %v7391_v53, %v6487_v1  ;;  %v5063_v1 = vld [vmem:[#allocation2 + $0x18] sm:$0xff] }
 0x3f5   : > { %2924 = vmatpush1.bf16.msra.mxu0 %v2912_v3  ;;  %3153 = vmatpush1.bf16.msra.mxu1 %v3141_v8  ;;  %v3198_v55 = vpop.permute.xlu0 %3197  ;;  %v3202_v39 = vpop.permute.xlu1 %3201  ;;  %v4795_v8 = vld [vmem:[%s7182_s5 + $0x1a] sm:$0x3] }
 0x3f6   : > { %2991 = vmatprep.subr.bf16.mxu0 %v2981_v25  ;;  %3215 = vmatprep.subr.bf16.mxu1 %v3205_v61  ;;  %v3207_v42 = vsel %vm3203_vm15, %v3200_v7, %v3202_v39  ;;  %v4794_v39 = vld [vmem:[%s7182_s5 + $0xc] sm:$0x3] }
 0x3f7   : > { %3547 = vrot.lane.b32.xlu0 %v6233_v50, %s5137_s20  ;;  %4041 = vrot.lane.b32.xlu1 %v6192_v49, %s5138_s10  ;;  %v3206_v49 = vsel %vm3203_vm15, %v3198_v55, %v3200_v7  ;;  %v3624_v14 = vpack.c.bf16 %v4794_v39, %v4794_v39 }
 0x3f8   : > { %4782 = vmatmul.mubr.msk.bf16.vlgmr.msra.gmra.mrb[36].mxu1 %vm659_vm13, %v3125_v21 }
 0x3f9   : > { %3216 = vmatpush1.bf16.msra.mxu1 %v3204_v15  ;;  %v6868_v20 = vpop.permute.xlu0 %3703  ;;  %v6870_v23 = vpop.permute.xlu1 %3701  ;;  %3247 = vmatprep.mubr.bf16.mxu1 %v7312_v52 }
 0x3fa   : > { %3217 = vmatprep.subr.bf16.mxu1 %v3207_v42  ;;  %v4786_v42 = vld [vmem:[%s7182_s5 + $0x34] sm:$0x3] }
 0x3fb   : > { %3545 = vrot.lane.b32.xlu0 %v6165_v63, %s5137_s20  ;;  %3549 = vrot.lane.b32.xlu1 %v6265_v60, %s5137_s20  ;;  %v4780_v63 = vld [vmem:[%s7182_s5 + $0xa] sm:$0x3] }
 0x3fc   : > { %4775 = vmatmul.mubr.msk.bf16.vlgmr.msra.gmra.mrb[8].mxu0 %vm659_vm13, %v2896_v11  ;;  %v3122_v32 = vpack.c.bf16 %v4780_v63, %v4780_v63 }
 0x3fd   : > { %2992 = vmatpush1.bf16.msra.mxu0 %v2980_v27  ;;  %3218 = vmatpush1.bf16.msra.mxu1 %v3206_v49  ;;  %v3262_v33 = vpop.permute.xlu0 %3261  ;;  %v6885_v30 = vpop.permute.xlu1 %3699  ;;  %v3328_v49 = vpack.c.bf16 %v4786_v42, %v4786_v42 }
 0x3fe   : > { %2993 = vmatprep.subr.bf16.mxu0 %v2983_v2  ;;  %3023 = vmatprep.mubr.bf16.mxu0 %v7312_v52 }
 0x3ff   : > { %4051 = vrot.lane.b32.xlu0 %v6265_v60, %s5138_s10  ;;  %4049 = vrot.lane.b32.xlu1 %v6233_v50, %s5138_s10  ;;  %v4776_v60 = vld [vmem:[%s7182_s5 + $0x4e] sm:$0x3] }
 0x400   : > { %v2966_v51 = vpack.c.bf16 %v4776_v60, %v4776_v60 }
 0x401   : > { %2994 = vmatpush1.bf16.msra.mxu0 %v2982_v6  ;;  %v3260_v43 = vpop.permute.xlu0 %3259  ;;  %v3264_v26 = vpop.permute.xlu1 %3263  ;;  %v4798_v6 = vld [vmem:[%s7182_s5 + $0x28] sm:$0x3] }
 0x402   : > { %3061 = vmatprep.subr.bf16.mxu0 %v6552_v28  ;;  %v3272_v50 = vsel %vm3271_vm1, %v3260_v43, %v3262_v33  ;;  %v3273_v31 = vsel %vm3271_vm1, %v3262_v33, %v3264_v26  ;;  %v3053_v28 = vsel %vm3049_vm3, %v6618_v62, %v6616_v5  ;;  %vm3705_vm3 = vcmask 998400  }
 0x403   : > { %4127 = vperm.xlu0 %5051, %v4124_v54   ;;  %4047 = vrot.lane.b32.xlu1 %v5063_v1, %s5138_s10  ;;  %v3707_v48 = vsel %vm3705_vm3, %v6815_v18, %v6813_v12  ;;  %v3706_v25 = vsel %vm3705_vm3, %v6835_v34, %v6815_v18  ;;  %v3708_v61 = vsel %vm3705_vm3, %v6885_v30, %v6870_v23 }
 0x404   : > { %3283 = vmatprep.subr.bf16.mxu1 %v3273_v31  ;;  %4783 = vmatmul.mubr.msk.bf16.vlgmr.msra.gmra.mrb[36].mxu1 %vm659_vm13, %v3122_v32  ;;  %v3760_v54 = vpack.c.bf16 %v4798_v6, %v4798_v6 }
 0x405   : > { %3284 = vmatpush1.bf16.msra.mxu1 %v3272_v50  ;;  %v6909_v9 = vpop.permute.xlu0 %3765  ;;  %v6911_v13 = vpop.permute.xlu1 %3763  ;;  %3315 = vmatprep.mubr.bf16.mxu1 %v7312_v52 }
 0x406   : > { %v3775_v18 = vsel %vm3773_vm5, %v6911_v13, %v6909_v9 }
 0x408   : > { %4777 = vmatmul.mubr.msk.bf16.vlgmr.msra.gmra.mrb[8].mxu0 %vm659_vm13, %v2966_v51 }
 0x409   : > { %3062 = vmatpush1.bf16.msra.mxu0 %v6572_v35  ;;  %v3268_v16 = vpop.permute.xlu0 %3267  ;;  %v6919_v4 = vpop.permute.xlu1 %3761  ;;  %3093 = vmatprep.mubr.bf16.mxu0 %v7312_v52  ;;  %v3642_v35 = vsel %vm3640_vm2, %v6686_v44, %v6684_v17  ;;  %v3641_v17 = vsel %vm3640_vm2, %v6708_v38, %v6686_v44  ;;  %v3643_v44 = vsel %vm3640_vm2, %v6776_v46, %v6751_v24 }
 0x40a   : > { %3063 = vmatprep.subr.bf16.mxu0 %v3053_v28  ;;  %v3627_v38 = vpack.c.bf16 %v4795_v8, %v4795_v8  ;;  %v3709_v24 = vsel %vm3705_vm3, %v6870_v23, %v6868_v20  ;;  %v3774_v10 = vsel %vm3773_vm5, %v6919_v4, %v6911_v13  ;;  %v4800_v4 = vld [vmem:[%s7182_s5 + $0x36] sm:$0x3] }
 0x40b   : > { %v3830_v57 = vpack.c.bf16 %v4800_v4, %v4800_v4 }
 0x40d   : > { %3064 = vmatpush1.bf16.msra.mxu0 %v3052_v36  ;;  %v3266_v5 = vpop.permute.xlu0 %3265  ;;  %v3270_v56 = vpop.permute.xlu1 %3269 }
 0x40e   : > { %3652 = vmatprep.subr.bf16.mxu0 %v3642_v35  ;;  %v3274_v45 = vsel %vm3271_vm1, %v3266_v5, %v3268_v16  ;;  %v3275_v62 = vsel %vm3271_vm1, %v3268_v16, %v3270_v56  ;;  %v4788_v5 = vld [vmem:[%s7182_s5 + $0x42] sm:$0x3] }
 0x40f   : > { %3285 = vmatprep.subr.bf16.mxu1 %v3275_v62 }
 0x410   : > { %3286 = vmatpush1.bf16.msra.mxu1 %v3274_v45 }
 0x411   : > { %v3772_v40 = vpop.permute.xlu0 %3771  ;;  %v3770_v47 = vpop.permute.xlu1 %3769 }
 0x412   : > { %v3777_v27 = vsel %vm3773_vm5, %v3770_v47, %v3772_v40 }
 0x413   : > { %4785 = vmatmul.mubr.msk.bf16.vlgmr.msra.gmra.mrb[36].mxu1 %vm659_vm13, %v3258_v19 }
 0x414   : > { %4779 = vmatmul.mubr.msk.bf16.vlgmr.msra.gmra.mrb[8].mxu0 %vm659_vm13, %v3036_v41  ;;  %3385 = vmatprep.mubr.bf16.mxu1 %v7312_v52  ;;  %v3398_v41 = vpack.c.bf16 %v4788_v5, %v4788_v5 }
 0x415   : > { %3653 = vmatpush1.bf16.msra.mxu0 %v3641_v17  ;;  %v3332_v7 = vpop.permute.xlu0 %3331  ;;  %v3768_v22 = vpop.permute.xlu1 %3767  ;;  %3684 = vmatprep.mubr.bf16.mxu0 %v7312_v52 }
 0x416   : > { %3654 = vmatprep.subr.bf16.mxu0 %v3644_v59  ;;  %v3776_v33 = vsel %vm3773_vm5, %v3768_v22, %v3770_v47 }
 0x419   : > { %3655 = vmatpush1.bf16.msra.mxu0 %v3643_v44  ;;  %v3330_v58 = vpop.permute.xlu0 %3329  ;;  %v3334_v3 = vpop.permute.xlu1 %3333  ;;  %v4802_v44 = vld [vmem:[%s7182_s5 + $0x44] sm:$0x3] }
 0x41a   : > { %3717 = vmatprep.subr.bf16.mxu0 %v3707_v48  ;;  %v3342_v21 = vsel %vm3341_vm4, %v3330_v58, %v3332_v7  ;;  %v3343_v37 = vsel %vm3341_vm4, %v3332_v7, %v3334_v3 }
 0x41b   : > { %3353 = vmatprep.subr.bf16.mxu1 %v3343_v37 }
 0x41c   : > { %4796 = vmatmul.mubr.msk.bf16.vlgmr.msra.gmra.mrb[12].mxu0 %vm659_vm13, %v3627_v38  ;;  %3354 = vmatpush1.bf16.msra.mxu1 %v3342_v21  ;;  %v3900_v21 = vpack.c.bf16 %v4802_v44, %v4802_v44 }
 0x41d   : > { %3718 = vmatpush1.bf16.msra.mxu0 %v3706_v25  ;;  %v3836_v46 = vpop.permute.xlu0 %3835  ;;  %v3834_v12 = vpop.permute.xlu1 %3833  ;;  %3749 = vmatprep.mubr.bf16.mxu0 %v7312_v52 }
 0x41e   : > { %3719 = vmatprep.subr.bf16.mxu0 %v3709_v24  ;;  %v3845_v30 = vsel %vm3843_vm6, %v3834_v12, %v3836_v46 }
 0x421   : > { %3720 = vmatpush1.bf16.msra.mxu0 %v3708_v61  ;;  %v3338_v34 = vpop.permute.xlu0 %3337  ;;  %v3832_v55 = vpop.permute.xlu1 %3831 }
 0x422   : > { %3785 = vmatprep.subr.bf16.mxu0 %v3775_v18  ;;  %v3844_v50 = vsel %vm3843_vm6, %v3832_v55, %v3834_v12 }
 0x425   : > { %v3336_v15 = vpop.permute.xlu0 %3335  ;;  %v3340_v11 = vpop.permute.xlu1 %3339 }
 0x426   : > { %v3344_v20 = vsel %vm3341_vm4, %v3336_v15, %v3338_v34  ;;  %v3345_v23 = vsel %vm3341_vm4, %v3338_v34, %v3340_v11 }
 0x427   : > { %3355 = vmatprep.subr.bf16.mxu1 %v3345_v23 }
 0x428   : > { %4797 = vmatmul.mubr.msk.bf16.vlgmr.msra.gmra.mrb[12].mxu0 %vm659_vm13, %v3624_v14  ;;  %3356 = vmatpush1.bf16.msra.mxu1 %v3344_v20  ;;  %v4790_v20 = vld [vmem:[%s7182_s5 + $0x50] sm:$0x3] }
 0x429   : > { %3786 = vmatpush1.bf16.msra.mxu0 %v3774_v10  ;;  %v3842_v29 = vpop.permute.xlu0 %3841  ;;  %v3840_v2 = vpop.permute.xlu1 %3839  ;;  %3817 = vmatprep.mubr.bf16.mxu0 %v7312_v52 }
 0x42a   : > { %3787 = vmatprep.subr.bf16.mxu0 %v3777_v27  ;;  %v3847_v31 = vsel %vm3843_vm6, %v3840_v2, %v3842_v29  ;;  %v3468_v27 = vpack.c.bf16 %v4790_v20, %v4790_v20 }
 0x42b   : > { %4787 = vmatmul.mubr.msk.bf16.vlgmr.msra.gmra.mrb[36].mxu1 %vm659_vm13, %v3328_v49 }
 0x42c   : > { %3455 = vmatprep.mubr.bf16.mxu1 %v7312_v52 }
 0x42d   : > { %3788 = vmatpush1.bf16.msra.mxu0 %v3776_v33  ;;  %v3402_v63 = vpop.permute.xlu0 %3401  ;;  %v3838_v53 = vpop.permute.xlu1 %3837 }
 0x42e   : > { %3855 = vmatprep.subr.bf16.mxu0 %v3845_v30  ;;  %v3846_v13 = vsel %vm3843_vm6, %v3838_v53, %v3840_v2  ;;  %v4804_v30 = vld [vmem:[%s7182_s5 + $0x52] sm:$0x3] }
 0x431   : > { %v3400_v32 = vpop.permute.xlu0 %3399  ;;  %v3404_v43 = vpop.permute.xlu1 %3403 }
 0x432   : > { %v3412_v26 = vsel %vm3411_vm7, %v3400_v32, %v3402_v63  ;;  %v3413_v60 = vsel %vm3411_vm7, %v3402_v63, %v3404_v43 }
 0x433   : > { %3423 = vmatprep.subr.bf16.mxu1 %v3413_v60 }
 0x434   : > { %4799 = vmatmul.mubr.msk.bf16.vlgmr.msra.gmra.mrb[12].mxu0 %vm659_vm13, %v3760_v54  ;;  %3424 = vmatpush1.bf16.msra.mxu1 %v3412_v26  ;;  %v3970_v54 = vpack.c.bf16 %v4804_v30, %v4804_v30 }
 0x435   : > { %3856 = vmatpush1.bf16.msra.mxu0 %v3844_v50  ;;  %v3906_v1 = vpop.permute.xlu0 %3905  ;;  %v3904_v51 = vpop.permute.xlu1 %3903  ;;  %3887 = vmatprep.mubr.bf16.mxu0 %v7312_v52 }
 0x436   : > { %3857 = vmatprep.subr.bf16.mxu0 %v3847_v31  ;;  %v3915_v9 = vsel %vm3913_vm8, %v3904_v51, %v3906_v1 }
 0x439   : > { %3858 = vmatpush1.bf16.msra.mxu0 %v3846_v13  ;;  %v3408_v28 = vpop.permute.xlu0 %3407  ;;  %v3902_v16 = vpop.permute.xlu1 %3901 }
 0x43a   : > { %3925 = vmatprep.subr.bf16.mxu0 %v3915_v9  ;;  %v3914_v47 = vsel %vm3913_vm8, %v3902_v16, %v3904_v51  ;;  %v4792_v16 = vld [vmem:[%s7182_s5 + $0x5e] sm:$0x3] }
 0x43b   : > { %v741_v36 = vpop.f32.mrb[0].mxu1 }
 0x43c   : > { %v743_v35 = vpop.f32.mrb[1].mxu1 }
 0x43d   : > { %v3406_v56 = vpop.permute.xlu0 %3405  ;;  %v3410_v0 = vpop.permute.xlu1 %3409 }
 0x43e   : > { %v3414_v45 = vsel %vm3411_vm7, %v3406_v56, %v3408_v28  ;;  %v3415_v62 = vsel %vm3411_vm7, %v3408_v28, %v3410_v0  ;;  %v745_v19 = vpop.f32.mrb[2].mxu1 }
 0x43f   : > { %3425 = vmatprep.subr.bf16.mxu1 %v3415_v62  ;;  %v746_v40 = vpop.f32.mrb[3].mxu1  ;;  %v594_v19 = vlaneseq }
 0x440   : > { %4801 = vmatmul.mubr.msk.bf16.vlgmr.msra.gmra.mrb[12].mxu0 %vm659_vm13, %v3830_v57  ;;  %3426 = vmatpush1.bf16.msra.mxu1 %v3414_v45  ;;  %v4806_v45 = vld [vmem:[%s7182_s5 + $0x60] sm:$0x3] }
 0x441   : > { %3926 = vmatpush1.bf16.msra.mxu0 %v3914_v47  ;;  %v3912_v17 = vpop.permute.xlu0 %3911  ;;  %v3910_v59 = vpop.permute.xlu1 %3909  ;;  %3957 = vmatprep.mubr.bf16.mxu0 %v7312_v52  ;;  %v4040_v40 = vpack.c.bf16 %v4806_v45, %v4806_v45  ;;  %v595_v47 = vand.u32 127, %v594_v19 }
 0x442   : > { %v3917_v7 = vsel %vm3913_vm8, %v3910_v59, %v3912_v17 }
 0x443   : > { %3927 = vmatprep.subr.bf16.mxu0 %v3917_v7  ;;  %4789 = vmatmul.mubr.msk.bf16.vlgmr.msra.gmra.mrb[36].mxu1 %vm659_vm13, %v3398_v41  ;;  %v596_v17 = vadd.s32 128, %v595_v47 }
 0x444   : > { %3525 = vmatprep.mubr.bf16.mxu1 %v7312_v52 }
 0x445   : > { %v3472_v22 = vpop.permute.xlu0 %3471  ;;  %v3908_v8 = vpop.permute.xlu1 %3907  ;;  %v7062_v7 = vand.u32 15, %v596_v17 }
 0x446   : > { %v3916_v38 = vsel %vm3913_vm8, %v3908_v8, %v3910_v59  ;;  %v7060_v59 = vand.u32 15, %v595_v47 }
 0x447   : > { %v1089_v48 = vpop.f32.mrb[0].mxu0  ;;  %3928 = vmatpush1.bf16.msra.mxu0 %v3916_v38  ;;  %v1099_v44 = vadd.s32 4294967293, %v7062_v7  ;;  %v1601_v38 = vadd.s32 4294967294, %v7062_v7 }
 0x448   : > { %v7018_v58 = vadd.f32 %v1089_v48, %v741_v36  ;;  %v1091_v3 = vpop.f32.mrb[1].mxu0  ;;  %v1600_v8 = vadd.s32 4294967294, %v7060_v59 }
 0x449   : > { %v7020_v37 = vadd.f32 %v1091_v3, %v743_v35  ;;  %v1093_v25 = vpop.f32.mrb[2].mxu0  ;;  %v3470_v24 = vpop.permute.xlu0 %3469  ;;  %v3538_v35 = vpack.c.bf16 %v4792_v16, %v4792_v16  ;;  %vm1101_vm0 = vcmp.ge.s32.totalorder %v1099_v44, 0  ;;  %vm1603_vm1 = vcmp.ge.s32.totalorder %v1601_v38, 0 }
 0x44a   : > { %v3482_v46 = vsel %vm3481_vm9, %v3470_v24, %v3472_v22  ;;  %v1094_v12 = vpop.f32.mrb[3].mxu0  ;;  %v3474_v61 = vpop.permute.xlu1 %3473  ;;  %vm1602_vm15 = vcmp.ge.s32.totalorder %v1600_v8, 0 }
 0x44b   : > { %v3483_v18 = vsel %vm3481_vm9, %v3472_v22, %v3474_v61  ;;  %v1098_v22 = vadd.s32 4294967293, %v7060_v59 }
 0x44c   : > { %3493 = vmatprep.subr.bf16.mxu1 %v3483_v18  ;;  %4803 = vmatmul.mubr.msk.bf16.vlgmr.msra.gmra.mrb[12].mxu0 %vm659_vm13, %v3900_v21 }
 0x44d   : > { %3494 = vmatpush1.bf16.msra.mxu1 %v3482_v46  ;;  %v3976_v34 = vpop.permute.xlu0 %3975  ;;  %4027 = vmatprep.mubr.bf16.mxu0 %v7312_v52  ;;  %vm1100_vm14 = vcmp.ge.s32.totalorder %v1098_v22, 0  ;;  %v1111_v46 = vsel %vm1101_vm0, %v7020_v37, 0.0 }
 0x44e   : > { %v3974_v55 = vpop.permute.xlu1 %3973  ;;  %v1110_v3 = vsel %vm1100_vm14, %v7018_v58, 0.0 }
 0x44f   : > { %v3985_v39 = vsel %vm3983_vm10, %v3974_v55, %v3976_v34 }
 0x450   : > { %3995 = vmatprep.subr.bf16.mxu0 %v3985_v39  ;;  %v2103_v39 = vadd.s32 4294967295, %v7062_v7 }
 0x451   : > { %v3478_v14 = vpop.permute.xlu0 %3477 }
 0x452   : > { %v3972_v42 = vpop.permute.xlu1 %3971  ;;  %vm2105_vm2 = vcmp.ge.s32.totalorder %v2103_v39, 0 }
 0x453   : > { %v3984_v15 = vsel %vm3983_vm10, %v3972_v42, %v3974_v55  ;;  %v2102_v55 = vadd.s32 4294967295, %v7060_v59 }
 0x454   : > { %3996 = vmatpush1.bf16.msra.mxu0 %v3984_v15 }
 0x455   : > { %v3476_v11 = vpop.permute.xlu0 %3475 }
 0x456   : > { %v3484_v23 = vsel %vm3481_vm9, %v3476_v11, %v3478_v14  ;;  %v3480_v49 = vpop.permute.xlu1 %3479 }
 0x457   : > { %v3485_v10 = vsel %vm3481_vm9, %v3478_v14, %v3480_v49 }
 0x458   : > { %3495 = vmatprep.subr.bf16.mxu1 %v3485_v10 }
 0x459   : > { %3496 = vmatpush1.bf16.msra.mxu1 %v3484_v23  ;;  %v3982_v29 = vpop.permute.xlu0 %3981 }
 0x45a   : > { %v3980_v2 = vpop.permute.xlu1 %3979 }
 0x45b   : > { %v3987_v33 = vsel %vm3983_vm10, %v3980_v2, %v3982_v29 }
 0x45c   : > { %3997 = vmatprep.subr.bf16.mxu0 %v3987_v33  ;;  %4791 = vmatmul.mubr.msk.bf16.vlgmr.msra.gmra.mrb[36].mxu1 %vm659_vm13, %v3468_v27 }
 0x45d   : > { %v3542_v63 = vpop.permute.xlu0 %3541  ;;  %3595 = vmatprep.mubr.bf16.mxu1 %v7312_v52 }
 0x45e   : > { %v3978_v53 = vpop.permute.xlu1 %3977 }
 0x45f   : > { %v3986_v6 = vsel %vm3983_vm10, %v3978_v53, %v3980_v2 }
 0x460   : > { %3998 = vmatpush1.bf16.msra.mxu0 %v3986_v6 }
 0x461   : > { %v3540_v32 = vpop.permute.xlu0 %3539 }
 0x462   : > { %v3552_v43 = vsel %vm3551_vm11, %v3540_v32, %v3542_v63  ;;  %v3544_v26 = vpop.permute.xlu1 %3543 }
 0x463   : > { %v3553_v60 = vsel %vm3551_vm11, %v3542_v63, %v3544_v26  ;;  %4805 = vmatmul.mubr.msk.bf16.vlgmr.msra.gmra.mrb[12].mxu0 %vm659_vm13, %v3970_v54 }
 0x464   : > { %3563 = vmatprep.subr.bf16.mxu1 %v3553_v60  ;;  %4097 = vmatprep.mubr.bf16.mxu0 %v7312_v52 }
 0x465   : > { %3564 = vmatpush1.bf16.msra.mxu1 %v3552_v43  ;;  %v4046_v50 = vpop.permute.xlu0 %4045 }
 0x466   : > { %v4044_v31 = vpop.permute.xlu1 %4043 }
 0x467   : > { %v4055_v1 = vsel %vm4053_vm12, %v4044_v31, %v4046_v50 }
 0x468   : > { %4065 = vmatprep.subr.bf16.mxu0 %v4055_v1 }
 0x469   : > { %v3548_v51 = vpop.permute.xlu0 %3547 }
 0x46a   : > { %v4042_v9 = vpop.permute.xlu1 %4041 }
 0x46b   : > { %v4054_v13 = vsel %vm4053_vm12, %v4042_v9, %v4044_v31 }
 0x46c   : > { %4066 = vmatpush1.bf16.msra.mxu0 %v4054_v13 }
 0x46d   : > { %v3546_v28 = vpop.permute.xlu0 %3545 }
 0x46e   : > { %v3554_v4 = vsel %vm3551_vm11, %v3546_v28, %v3548_v51  ;;  %v3550_v36 = vpop.permute.xlu1 %3549 }
 0x46f   : > { %v3555_v57 = vsel %vm3551_vm11, %v3548_v51, %v3550_v36 }
 0x470   : > { %3565 = vmatprep.subr.bf16.mxu1 %v3555_v57 }
 0x471   : > { %3566 = vmatpush1.bf16.msra.mxu1 %v3554_v4  ;;  %v4052_v5 = vpop.permute.xlu0 %4051 }
 0x472   : > { %v4050_v56 = vpop.permute.xlu1 %4049 }
 0x473   : > { %v4057_v0 = vsel %vm4053_vm12, %v4050_v56, %v4052_v5 }
 0x474   : > { %4793 = vmatmul.mubr.msk.bf16.vlgmr.msra.gmra.mrb[36].mxu1 %vm659_vm13, %v3538_v35  ;;  %4067 = vmatprep.subr.bf16.mxu0 %v4057_v0 }
 0x475   : > { %4407 = vmatprep.mubr.bf16.mxu1 %v7312_v52 }
 0x476   : > { %v4048_v62 = vpop.permute.xlu1 %4047 }
 0x477   : > { %v4056_v41 = vsel %vm4053_vm12, %v4048_v62, %v4050_v56 }
 0x478   : > { %4068 = vmatpush1.bf16.msra.mxu0 %v4056_v41 }
 0x47b   : > { %4807 = vmatmul.mubr.msk.bf16.vlgmr.msra.gmra.mrb[12].mxu0 %vm659_vm13, %v4040_v40  ;;  %vm2104_vm13 = vcmp.ge.s32.totalorder %v2102_v55, 0 }
 0x48b   : > { %v1591_v48 = vpop.f32.mrb[4].mxu1 }
 0x48c   : > { %v1612_v21 = vsel %vm1602_vm15, %v1591_v48, 0.0  ;;  %v1593_v25 = vpop.f32.mrb[5].mxu1 }
 0x48d   : > { %v1614_v24 = vadd.f32 %v1612_v21, %v1110_v3  ;;  %v1613_v12 = vsel %vm1603_vm1, %v1593_v25, 0.0  ;;  %v1595_v61 = vpop.f32.mrb[6].mxu1  ;;  %v3104_v21 = vadd.s32 1, %v7060_v59  ;;  %v3105_v25 = vadd.s32 1, %v7062_v7 }
 0x48e   : > { %v1615_v18 = vadd.f32 %v1613_v12, %v1111_v46  ;;  %v1596_v34 = vpop.f32.mrb[7].mxu1 }
 0x48f   : > { %vm3108_vm3 = vcmp.lt.s32.totalorder %v3104_v21, 16  ;;  %vm3109_vm4 = vcmp.lt.s32.totalorder %v3105_v25, 16 }
 0x493   : > { %v2182_v14 = vpop.f32.mrb[8].mxu1 }
 0x494   : > { %v2184_v42 = vpop.f32.mrb[9].mxu1 }
 0x495   : > { %v2186_v15 = vpop.f32.mrb[10].mxu1 }
 0x496   : > { %v2187_v11 = vpop.f32.mrb[11].mxu1 }
 0x497   : > { %v2093_v58 = vpop.f32.mrb[4].mxu0 }
 0x498   : > { %v2114_v20 = vsel %vm2104_vm13, %v2093_v58, 0.0  ;;  %v2095_v23 = vpop.f32.mrb[5].mxu0 }
 0x499   : > { %v2116_v49 = vadd.f32 %v2114_v20, %v1614_v24  ;;  %v2115_v10 = vsel %vm2105_vm2, %v2095_v23, 0.0  ;;  %v2097_v37 = vpop.f32.mrb[6].mxu0  ;;  %v4108_v20 = vadd.s32 3, %v7060_v59  ;;  %vm4365_vm2 = vcmask 130048  }
 0x49a   : > { %v2117_v27 = vadd.f32 %v2115_v10, %v1615_v18  ;;  %v2098_v29 = vpop.f32.mrb[7].mxu0  ;;  %v4109_v37 = vadd.s32 3, %v7062_v7 }
 0x49b   : > { %v2247_v2 = vpop.f32.mrb[12].mxu1  ;;  %vm4112_vm7 = vcmp.lt.s32.totalorder %v4108_v20, 16 }
 0x49c   : > { %v2248_v33 = vadd.f32 %v2247_v2, %v2182_v14  ;;  %v2249_v30 = vpop.f32.mrb[13].mxu1  ;;  %v3606_v14 = vadd.s32 2, %v7060_v59  ;;  %vm4113_vm8 = vcmp.lt.s32.totalorder %v4109_v37, 16 }
 0x49d   : > { %v2250_v63 = vadd.f32 %v2249_v30, %v2184_v42  ;;  %v2251_v53 = vpop.f32.mrb[14].mxu1  ;;  %v3607_v42 = vadd.s32 2, %v7062_v7 }
 0x49e   : > { %v2252_v6 = vpop.f32.mrb[15].mxu1  ;;  %vm3610_vm5 = vcmp.lt.s32.totalorder %v3606_v14, 16 }
 0x49f   : > { %vm3611_vm6 = vcmp.lt.s32.totalorder %v3607_v42, 16 }
 0x4a3   : > { %v2315_v54 = vpop.f32.mrb[16].mxu1 }
 0x4a4   : > { %v2322_v32 = vadd.f32 %v2315_v54, %v2248_v33  ;;  %v2317_v43 = vpop.f32.mrb[17].mxu1  ;;  %v4128_v54 = vpop.permute.xlu0 %4127 }
 0x4a5   : > { %v2323_v26 = vadd.f32 %v2317_v43, %v2250_v63  ;;  %v2319_v60 = vpop.f32.mrb[18].mxu1 }
 0x4a6   : > { %v2320_v50 = vpop.f32.mrb[19].mxu1 }
 0x4a7   : > { %v4150_v50 = vld [vmem:[%s7179_s2] sm:$0xf] }
 0x4ab   : > { %v2385_v31 = vpop.f32.mrb[20].mxu1 }
 0x4ac   : > { %v2392_v1 = vadd.f32 %v2385_v31, %v2322_v32  ;;  %v2387_v51 = vpop.f32.mrb[21].mxu1 }
 0x4ad   : > { %v2393_v9 = vadd.f32 %v2387_v51, %v2323_v26  ;;  %v2389_v13 = vpop.f32.mrb[22].mxu1 }
 0x4ae   : > { %v2390_v28 = vpop.f32.mrb[23].mxu1 }
 0x4b3   : > { %v2455_v16 = vpop.f32.mrb[24].mxu1 }
 0x4b4   : > { %v2462_v4 = vadd.f32 %v2455_v16, %v2392_v1  ;;  %v2457_v36 = vpop.f32.mrb[25].mxu1 }
 0x4b5   : > { %v2463_v57 = vadd.f32 %v2457_v36, %v2393_v9  ;;  %v2459_v35 = vpop.f32.mrb[26].mxu1  ;;  %v7092_v9 = vshrl.u32 %v594_v19, 7 }
 0x4b6   : > { %v2460_v5 = vpop.f32.mrb[27].mxu1 }
 0x4b7   : > { %v4169_v36 = vsub.s32 2, %v7092_v9  ;;  %v7100_v35 = vsub.s32 3, %v7092_v9 }
 0x4bb   : > { %v2525_v56 = vpop.f32.mrb[28].mxu1 }
 0x4bc   : > { %v2532_v0 = vadd.f32 %v2525_v56, %v2462_v4  ;;  %v2527_v45 = vpop.f32.mrb[29].mxu1  ;;  %v4165_v4 = vsub.s32 0, %v7092_v9 }
 0x4bd   : > { %v2533_v62 = vadd.f32 %v2527_v45, %v2463_v57  ;;  %v2529_v41 = vpop.f32.mrb[30].mxu1  ;;  %v7097_v57 = vsub.s32 1, %v7092_v9 }
 0x4be   : > { %v2530_v40 = vpop.f32.mrb[31].mxu1 }
 0x4bf   : > { %v7108_v40 = vadd.s32 8, %v7092_v9 }
 0x4c3   : > { %v2595_v47 = vpop.f32.mrb[32].mxu1 }
 0x4c4   : > { %v2602_v17 = vadd.f32 %v2595_v47, %v2532_v0  ;;  %v2597_v22 = vpop.f32.mrb[33].mxu1 }
 0x4c5   : > { %v2603_v8 = vadd.f32 %v2597_v22, %v2533_v62  ;;  %v2599_v44 = vpop.f32.mrb[34].mxu1 }
 0x4c6   : > { %v2616_v38 = vadd.f32 %v2602_v17, %v2116_v49  ;;  %v2600_v48 = vpop.f32.mrb[35].mxu1 }
 0x4c7   : > { %v2617_v3 = vadd.f32 %v2603_v8, %v2117_v27 }
 0x4e7   : > { %v3095_v24 = vpop.f32.mrb[8].mxu0 }
 0x4e8   : > { %v3116_v46 = vsel %vm3108_vm3, %v3095_v24, 0.0  ;;  %v3097_v12 = vpop.f32.mrb[9].mxu0 }
 0x4e9   : > { %v3118_v61 = vadd.f32 %v3116_v46, %v2616_v38  ;;  %v3117_v18 = vsel %vm3109_vm4, %v3097_v12, 0.0  ;;  %v3099_v34 = vpop.f32.mrb[10].mxu0 }
 0x4ea   : > { %v3119_v55 = vadd.f32 %v3117_v18, %v2617_v3  ;;  %v3100_v39 = vpop.f32.mrb[11].mxu0 }
 0x547   : > { %v3597_v15 = vpop.f32.mrb[36].mxu1 }
 0x548   : > { %v3618_v11 = vsel %vm3610_vm5, %v3597_v15, 0.0  ;;  %v3599_v58 = vpop.f32.mrb[37].mxu1 }
 0x549   : > { %v3620_v23 = vadd.f32 %v3618_v11, %v3118_v61  ;;  %v3619_v49 = vsel %vm3611_vm6, %v3599_v58, 0.0  ;;  %v3601_v10 = vpop.f32.mrb[38].mxu1 }
 0x54a   : > { %v3621_v27 = vadd.f32 %v3619_v49, %v3119_v55  ;;  %v3602_v29 = vpop.f32.mrb[39].mxu1 }
 0x54e   : > { %v4099_v2 = vpop.f32.mrb[12].mxu0 }
 0x54f   : > { %v4120_v33 = vsel %vm4112_vm7, %v4099_v2, 0.0  ;;  %v4101_v30 = vpop.f32.mrb[13].mxu0 }
 0x550   : > { %v4122_v63 = vadd.f32 %v4120_v33, %v3620_v23  ;;  %v4121_v53 = vsel %vm4113_vm8, %v4101_v30, 0.0  ;;  %v4103_v6 = vpop.f32.mrb[14].mxu0 }
 0x551   : > { %v4123_v32 = vadd.f32 %v4121_v53, %v3621_v27  ;;  %v4104_v59 = vpop.f32.mrb[15].mxu0 }
 0x552   : > { %v4130_v43 = vadd.f32 %v4128_v54, %v4122_v63 }
 0x553   : > { %v4131_v26 = vadd.f32 %v4128_v54, %v4123_v32 }
 0x555   : > { %v4134_v7 = vcombine.low %v4130_v43, %v4131_v26  ;;  %v5052_v26 = vld [vmem:[%s7078_s11] sm:$0xff]  }
 0x557   : > { %4808 = vst.sshfl [vmem:[%s373_s15] sm:$0x33 pattern:$0x76325410] %v4134_v7 }
 0x55e   : > { %v4149_v60 = vld [vmem:[%s373_s15] sm:$0xf] }
 0x55f   : > { %v4151_v31 = vmul.f32 0.13333334, %v4149_v60 }
 0x561   : > { %v4152_v1 = vadd.f32 %v4151_v31, %v4150_v50 }
 0x563   : > { %v4153_v51 = vadd.f32 1.0, %v4152_v1 }
 0x565   : > { %v4154_v13 = vmul.f32 8.0, %v4153_v51 }
 0x567   : > { %v4809_v28 = vadd.f32 -0.5, %v4154_v13 }
 0x569   : > { %v4156_v16 = vfloor.f32 %v4809_v28 }
 0x56b   : > { %v7102_v5 = vsub.f32 %v4809_v28, %v4156_v16  ;;  %v4972_v56 = vtrunc.f32 %v4156_v16 }
 0x56d   : > { %v4973_v0 = vcvt.f32.s32 %v4972_v56  ;;  %v4183_v45 = vsub.f32 1.0, %v7102_v5  ;;  %v4235_v62 = vrot.slane %v7102_v5, %v4169_v36  ;;  %v4231_v41 = vrot.slane %v7102_v5, %v4165_v4 }
 0x56e   : > { %v4319_v47 = vrot.slane %v7102_v5, %v7097_v57  ;;  %v4323_v17 = vrot.slane %v7102_v5, %v7100_v35 }
 0x56f   : > { %v4159_v22 = vadd.s32 1, %v4973_v0  ;;  %v4170_v8 = vrot.slane %v4973_v0, %v4169_v36  ;;  %v4192_v44 = vrot.slane %v4183_v45, %v4169_v36  ;;  %v4245_v38 = vrot.slane %v4235_v62, %v4165_v4  ;;  %v5053_v62 = vld [vmem:[%s7078_s11 + $0x8] sm:$0xff]  }
 0x570   : > { %v4166_v48 = vrot.slane %v4973_v0, %v4165_v4  ;;  %v4188_v3 = vrot.slane %v4183_v45, %v4165_v4  ;;  %v4241_v21 = vrot.slane %v4231_v41, %v4165_v4  ;;  %v4257_v25 = vrot.slane %v4973_v0, %v7097_v57  ;;  %v5054_v41 = vld [vmem:[%s7078_s11 + $0x10] sm:$0xff]  }
 0x571   : > { %v4178_v24 = vrot.slane %v4170_v8, %v4165_v4  ;;  %v4202_v46 = vrot.slane %v4192_v44, %v4165_v4  ;;  %v4214_v12 = vrot.slane %v4159_v22, %v4169_v36  ;;  %v4210_v61 = vrot.slane %v4159_v22, %v4165_v4 }
 0x572   : > { %v4174_v18 = vrot.slane %v4166_v48, %v4165_v4  ;;  %v4198_v34 = vrot.slane %v4188_v3, %v4165_v4  ;;  %v4265_v55 = vrot.slane %v4257_v25, %v7097_v57  ;;  %v4277_v39 = vrot.slane %v4183_v45, %v7097_v57 }
 0x573   : > { %vm4180_vm9 = vcmp.eq.s32.totalorder %v7092_v9, %v4178_v24  ;;  %vm4182_vm10 = vcmp.eq.s32.totalorder %v7108_v40, %v4178_v24  ;;  %v4222_v14 = vrot.slane %v4214_v12, %v4165_v4  ;;  %v4218_v42 = vrot.slane %v4210_v61, %v4165_v4 }
 0x574   : > { %v4204_v15 = vsel %vm4180_vm9, %v4202_v46, 0.0  ;;  %v4206_v11 = vsel %vm4182_vm10, %v4202_v46, 0.0  ;;  %vm4179_vm11 = vcmp.eq.s32.totalorder %v7092_v9, %v4174_v18  ;;  %vm4181_vm12 = vcmp.eq.s32.totalorder %v7108_v40, %v4174_v18 }
 0x575   : > { %vm4224_vm14 = vcmp.eq.s32.totalorder %v7092_v9, %v4222_v14  ;;  %vm4226_vm15 = vcmp.eq.s32.totalorder %v7108_v40, %v4222_v14  ;;  %v4203_v58 = vsel %vm4179_vm11, %v4198_v34, 0.0  ;;  %v4205_v20 = vsel %vm4181_vm12, %v4198_v34, 0.0 }
 0x576   : > { %v4247_v23 = vsel %vm4224_vm14, %v4245_v38, 0.0  ;;  %v4249_v49 = vsel %vm4226_vm15, %v4245_v38, 0.0  ;;  %vm4223_vm0 = vcmp.eq.s32.totalorder %v7092_v9, %v4218_v42  ;;  %vm4225_vm1 = vcmp.eq.s32.totalorder %v7108_v40, %v4218_v42 }
 0x577   : > { %v4251_v10 = vadd.f32 %v4247_v23, %v4204_v15  ;;  %v4253_v37 = vadd.f32 %v4249_v49, %v4206_v11  ;;  %v4246_v27 = vsel %vm4223_vm0, %v4241_v21, 0.0  ;;  %v4248_v29 = vsel %vm4225_vm1, %v4241_v21, 0.0 }
 0x578   : > { %v4250_v2 = vadd.f32 %v4246_v27, %v4203_v58  ;;  %v4252_v33 = vadd.f32 %v4248_v29, %v4205_v20  ;;  %vm4270_vm13 = vcmp.eq.s32.totalorder %v7092_v9, %v4265_v55  ;;  %v4287_v30 = vrot.slane %v4277_v39, %v7097_v57 }
 0x579   : > { %v4349_v63 = vpack.c.bf16 %v4253_v37, %v4251_v10  ;;  %v4299_v53 = vrot.slane %v4159_v22, %v7097_v57  ;;  %v4261_v6 = vrot.slane %v4973_v0, %v7100_v35  ;;  %v4281_v59 = vrot.slane %v4183_v45, %v7100_v35 }
 0x57a   : > { %v4348_v54 = vpack.c.bf16 %v4252_v33, %v4250_v2  ;;  %v4292_v32 = vsel %vm4270_vm13, %v4287_v30, 0.0  ;;  %v4303_v43 = vrot.slane %v4159_v22, %v7100_v35  ;;  %v4329_v60 = vrot.slane %v4319_v47, %v7097_v57 }
 0x57b   : > { %4375 = vmatprep.subr.bf16.mxu1 %v4349_v63  ;;  %v4307_v7 = vrot.slane %v4299_v53, %v7097_v57  ;;  %v4269_v50 = vrot.slane %v4261_v6, %v7097_v57  ;;  %vm4272_vm3 = vcmp.eq.s32.totalorder %v7108_v40, %v4265_v55  ;;  %v4291_v31 = vrot.slane %v4281_v59, %v7097_v57 }
 0x57c   : > { %4376 = vmatpush1.bf16.msra.mxu1 %v4348_v54  ;;  %v4311_v1 = vrot.slane %v4303_v43, %v7097_v57  ;;  %v4333_v51 = vrot.slane %v4323_v17, %v7097_v57  ;;  %v4294_v13 = vsel %vm4272_vm3, %v4287_v30, 0.0  ;;  %v5139_v34 = vmov 1966171168  }
 0x57d   : > { %vm4312_vm4 = vcmp.eq.s32.totalorder %v7092_v9, %v4307_v7  ;;  %vm4271_vm5 = vcmp.eq.s32.totalorder %v7092_v9, %v4269_v50  ;;  %vm4314_vm6 = vcmp.eq.s32.totalorder %v7108_v40, %v4307_v7  ;;  %vm4273_vm7 = vcmp.eq.s32.totalorder %v7108_v40, %v4269_v50 }
 0x57e   : > { %v4334_v28 = vsel %vm4312_vm4, %v4329_v60, 0.0  ;;  %v4293_v16 = vsel %vm4271_vm5, %v4291_v31, 0.0  ;;  %vm4313_vm8 = vcmp.eq.s32.totalorder %v7092_v9, %v4311_v1  ;;  %v4336_v4 = vsel %vm4314_vm6, %v4329_v60, 0.0 }
 0x57f   : > { %4813 = vmatmul.mubr.msk.bf16.vlgmr.msra.gmra.mrb[40].mxu1 %vm4365_vm2, %v5052_v26  ;;  %v4338_v36 = vadd.f32 %v4334_v28, %v4292_v32  ;;  %v4335_v57 = vsel %vm4313_vm8, %v4333_v51, 0.0  ;;  %v4340_v35 = vadd.f32 %v4336_v4, %v4294_v13  ;;  %v4295_v5 = vsel %vm4273_vm7, %v4291_v31, 0.0 }
 0x580   : > { %4417 = vmatprep.mubr.bf16.mxu1 %v7312_v52  ;;  %v4339_v56 = vadd.f32 %v4335_v57, %v4293_v16  ;;  %vm4315_vm9 = vcmp.eq.s32.totalorder %v7108_v40, %v4311_v1  ;;  %v4460_v55 = vunpack.c.l.s4 %v5139_v34  ;;  %vm7158_vm10 = vcmp.lt.s32.totalorder %v594_v19, 256 }
 0x581   : > { %v4337_v0 = vsel %vm4315_vm9, %v4333_v51, 0.0 }
 0x582   : > { %v4341_v45 = vadd.f32 %v4337_v0, %v4295_v5  ;;  %v4461_v37 = vunpack.c.0.s8 %v4460_v55 }
 0x584   : > { %v4464_v43 = vsub.s32 %v4461_v37, %v7092_v9 }
 0x587   : > { %4814 = vmatmul.mubr.msk.bf16.gmra.mrb[44].mxu1 %vm4365_vm2, %v5053_v62 }
 0x588   : > { %4427 = vmatprep.mubr.bf16.mxu1 %v7312_v52 }
 0x58f   : > { %4815 = vmatmul.mubr.msk.bf16.gmra.mrb[48].mxu1 %vm4365_vm2, %v5054_v41 }
 0x652   : > { %v4409_v47 = vpop.f32.mrb[40].mxu1 }
 0x653   : > { %v4438_v17 = vmul.f32 %v4409_v47, %v4338_v36  ;;  %v4411_v22 = vpop.f32.mrb[41].mxu1 }
 0x654   : > { %v4439_v8 = vmul.f32 %v4411_v22, %v4339_v56  ;;  %v4413_v44 = vpop.f32.mrb[42].mxu1 }
 0x655   : > { %v4440_v38 = vmul.f32 %v4413_v44, %v4340_v35  ;;  %v4415_v48 = vpop.f32.mrb[43].mxu1 }
 0x656   : > { %v4441_v3 = vmul.f32 %v4415_v48, %v4341_v45 }
 0x657   : > { %v4442_v21 = vadd.f32 %v4440_v38, %v4438_v17 }
 0x658   : > { %v4449_v40 = vadd.f32 %v4441_v3, %v4439_v8 }
 0x659   : > { %v4443_v25 = vrot.slane %v4442_v21, 4 }
 0x65a   : > { %v4450_v24 = vrot.slane %v4449_v40, 4  ;;  %v4419_v46 = vpop.f32.mrb[44].mxu1 }
 0x65b   : > { %v4444_v12 = vadd.f32 %v4443_v25, %v4442_v21  ;;  %v4479_v61 = vmul.f32 %v4419_v46, %v4338_v36  ;;  %v4421_v18 = vpop.f32.mrb[45].mxu1 }
 0x65c   : > { %v4451_v52 = vadd.f32 %v4450_v24, %v4449_v40  ;;  %v4480_v39 = vmul.f32 %v4421_v18, %v4339_v56  ;;  %v4423_v14 = vpop.f32.mrb[46].mxu1 }
 0x65d   : > { %v4445_v42 = vrot.slane %v4444_v12, 2  ;;  %v4481_v15 = vmul.f32 %v4423_v14, %v4340_v35  ;;  %v4425_v11 = vpop.f32.mrb[47].mxu1 }
 0x65e   : > { %v4452_v58 = vrot.slane %v4451_v52, 2  ;;  %v4482_v20 = vmul.f32 %v4425_v11, %v4341_v45 }
 0x65f   : > { %v4446_v23 = vadd.f32 %v4445_v42, %v4444_v12  ;;  %v4483_v49 = vadd.f32 %v4481_v15, %v4479_v61 }
 0x660   : > { %v4453_v10 = vadd.f32 %v4452_v58, %v4451_v52  ;;  %v4490_v27 = vadd.f32 %v4482_v20, %v4480_v39 }
 0x661   : > { %v4447_v29 = vrot.slane %v4446_v23, 1  ;;  %v4484_v2 = vrot.slane %v4483_v49, 4 }
 0x662   : > { %v4454_v33 = vrot.slane %v4453_v10, 1  ;;  %v4491_v30 = vrot.slane %v4490_v27, 4  ;;  %v4429_v63 = vpop.f32.mrb[48].mxu1 }
 0x663   : > { %v4448_v53 = vadd.f32 %v4447_v29, %v4446_v23  ;;  %v4485_v6 = vadd.f32 %v4484_v2, %v4483_v49  ;;  %v4517_v54 = vmul.f32 %v4429_v63, %v4338_v36  ;;  %v4431_v32 = vpop.f32.mrb[49].mxu1 }
 0x664   : > { %v4455_v59 = vadd.f32 %v4454_v33, %v4453_v10  ;;  %v4492_v26 = vadd.f32 %v4491_v30, %v4490_v27  ;;  %v4518_v7 = vmul.f32 %v4431_v32, %v4339_v56  ;;  %v4433_v60 = vpop.f32.mrb[50].mxu1 }
 0x665   : > { %v4486_v50 = vrot.slane %v4485_v6, 2  ;;  %v4519_v31 = vmul.f32 %v4433_v60, %v4340_v35  ;;  %v4435_v1 = vpop.f32.mrb[51].mxu1 }
 0x666   : > { %v4458_v51 = vcombine.low %v4448_v53, %v4455_v59  ;;  %v4493_v13 = vrot.slane %v4492_v26, 2  ;;  %v4520_v28 = vmul.f32 %v4435_v1, %v4341_v45 }
 0x667   : > { %v4487_v16 = vadd.f32 %v4486_v50, %v4485_v6  ;;  %v4521_v4 = vadd.f32 %v4519_v31, %v4517_v54 }
 0x668   : > { %v4465_v57 = vrot.slane %v4458_v51, %v4464_v43  ;;  %v4494_v5 = vadd.f32 %v4493_v13, %v4492_v26  ;;  %v4528_v0 = vadd.f32 %v4520_v28, %v4518_v7 }
 0x669   : > { %v4488_v36 = vrot.slane %v4487_v16, 1  ;;  %v4522_v35 = vrot.slane %v4521_v4, 4 }
 0x66a   : > { %v4472_v56 = vrot.slane %v4465_v57, %v4464_v43  ;;  %v4495_v62 = vrot.slane %v4494_v5, 1  ;;  %v4529_v41 = vrot.slane %v4528_v0, 4 }
 0x66b   : > { %v4489_v45 = vadd.f32 %v4488_v36, %v4487_v16  ;;  %v4523_v47 = vadd.f32 %v4522_v35, %v4521_v4 }
 0x66c   : > { %4478 = vst.msk [vmem:[%s382_s17] ss:$4 sm:$0x3] %vm7158_vm10, %v4472_v56  ;;  %v4496_v17 = vadd.f32 %v4495_v62, %v4494_v5  ;;  %v4530_v22 = vadd.f32 %v4529_v41, %v4528_v0 }
 0x66d   : > { %v4524_v8 = vrot.slane %v4523_v47, 2 }
 0x66e   : > { %v4499_v44 = vcombine.low %v4489_v45, %v4496_v17  ;;  %v4531_v38 = vrot.slane %v4530_v22, 2 }
 0x66f   : > { %v4525_v48 = vadd.f32 %v4524_v8, %v4523_v47 }
 0x670   : > { %v4506_v19 = vrot.slane %v4499_v44, %v4464_v43  ;;  %v4532_v3 = vadd.f32 %v4531_v38, %v4530_v22 }
 0x671   : > { %v4526_v21 = vrot.slane %v4525_v48, 1 }
 0x672   : > { %v4513_v40 = vrot.slane %v4506_v19, %v4464_v43  ;;  %v4533_v25 = vrot.slane %v4532_v3, 1 }
 0x673   : > { %v4527_v24 = vadd.f32 %v4526_v21, %v4525_v48 }
 0x674   : > { %4816 = vst.msk [vmem:[%s382_s17 + $0x1] ss:$4 sm:$0x3] %vm7158_vm10, %v4513_v40  ;;  %v4534_v46 = vadd.f32 %v4533_v25, %v4532_v3 }
 0x676   : > { %v4537_v12 = vcombine.low %v4527_v24, %v4534_v46 }
 0x678   : > { %v4544_v61 = vrot.slane %v4537_v12, %v4464_v43 }
 0x67a   : > { %v4551_v18 = vrot.slane %v4544_v61, %v4464_v43 }
 0x67c   : > { %4817 = vst.msk [vmem:[%s382_s17 + $0x2] ss:$4 sm:$0x3] %vm7158_vm10, %v4551_v18 }
 0x67d PF: > { %s19_s29 = sadd.s32 1, %s5086_s29   ;;  %s7394_s27 = smov %s5082_s28 }
 0x67e   : > { %p16_p5 = scmp.ge.s32.totalorder %s19_s29, 4   ;;  %s7395_s28 = smov %s7397_s30 }
 0x680   :  { %18 = sbr.rel (!%p16_p5) target bundleno = 2 (0x2), region = 151 }

</bundles_post_ra>
